<compile_context>
chip_gen: v5e
topology: v5e:2x2
jax: 0.10.0
libtpu: 0.0.40
codegen_flags: <defaults>
</compile_context>

<pallas_src>
import jax
import jax.numpy as jnp
from jax.experimental import pallas as pl
from jax.experimental.pallas import tpu as pltpu


def rgcn_kernel(agg_ref, inv_ref, w_ref, b_ref, o_ref):
    # agg_ref: (R, TN, in_feat)        bf16  un-normalized per-relation neighbor sums
    # inv_ref: (R, TN, 1)              f32   1 / max(in_deg_r(v), 1)
    # w_ref  : (R, in_feat, out_feat)  bf16  per-relation weights W_r (VMEM-resident,
    #                                        constant index_map -> fetched once)
    # b_ref  : (1, out_feat)           f32   bias
    # o_ref  : (TN, out_feat)          f32   output node features
    num_rels = agg_ref.shape[0]

    acc = None
    # Static (trace-time) unrolled loop over relations: one MXU matmul per
    # relation, f32 accumulation, per-row degree scaling folded in after the
    # matmul ((S/d) @ W == (S @ W)/d).
    for r in range(num_rels):
        part = jnp.dot(agg_ref[r], w_ref[r], preferred_element_type=jnp.float32)
        part = part * inv_ref[r]                      # (TN, out) * (TN, 1)
        acc = part if acc is None else acc + part

    h = acc + b_ref[...]                              # bias broadcast over rows
    o_ref[...] = jnp.maximum(h, 0.0)                  # ReLU
    # TODO(synk): dropout p>0 would use pltpu.prng_seed + pltpu.stateful_bernoulli
    # here; GAIN uses p=0.0 (identity).
    # TODO(synk): self_loop=True would add jnp.dot(x_tile, loop_weight) before the
    # bias; GAIN uses self_loop=False.
    # TODO(synk): use_basis=True (num_bases < num_rels) would compose W_r from the
    # basis at trace time in the wrapper; GAIN uses the per-relation weight path.


def aggregate_messages_unnormalized(x, src, dst, rel, num_nodes, num_rels):
    """Sparse glue: per-relation scatter-add sums and inverse in-degrees.

    Returns (summed[R, N, F] f32, inv_deg[R, N, 1] f32). The degree
    normalization (GraphConv norm='right') is applied inside the Pallas kernel.
    """
    seg = rel * num_nodes + dst                              # combined (rel, dst) id
    summed = jax.ops.segment_sum(x[src], seg,
                                 num_segments=num_rels * num_nodes)
    deg = jax.ops.segment_sum(jnp.ones(src.shape, jnp.float32), seg,
                              num_segments=num_rels * num_nodes)
    inv_deg = 1.0 / jnp.maximum(deg, 1.0)                    # clamp(min=1) like DGL
    return (summed.reshape(num_rels, num_nodes, x.shape[1]),
            inv_deg.reshape(num_rels, num_nodes, 1))


def rel_graph_conv_layer(x, src, dst, rel, weight, bias, *, num_rels, tn=512):
    """RelGraphConvLayer forward for a single node type.

    x      : [N, in_feat]  f32 node features
    src    : [E] int32 source node per edge
    dst    : [E] int32 destination node per edge
    rel    : [E] int32 relation id per edge
    weight : [R, in_feat, out_feat]  per-relation weights (use_basis=False path)
    bias   : [out_feat]
    returns: [N, out_feat] f32
    """
    N, in_feat = x.shape
    out_feat = weight.shape[-1]

    # --- sparse message passing glue (plain JAX) ---
    summed, inv_deg = aggregate_messages_unnormalized(x, src, dst, rel, N, num_rels)

    # --- bf16 at the boundary for the big streamed tensors; f32 accumulation inside ---
    agg_bf16 = summed.astype(jnp.bfloat16)                   # [R, N, F], single cast pass
    w_bf16 = weight.astype(jnp.bfloat16)                     # [R, F, O]
    b2d = bias.reshape(1, out_feat).astype(jnp.float32)

    n_tiles = pl.cdiv(N, tn)   # no explicit padding: Pallas masks the partial last block

    out = pl.pallas_call(
        rgcn_kernel,
        out_shape=jax.ShapeDtypeStruct((N, out_feat), jnp.float32),
        grid_spec=pltpu.PrefetchScalarGridSpec(
            num_scalar_prefetch=0,
            grid=(n_tiles,),                                  # node tiles only
            in_specs=[
                # streamed per node tile: all relations' rows for this tile
                pl.BlockSpec((num_rels, tn, in_feat), lambda i: (0, i, 0)),
                pl.BlockSpec((num_rels, tn, 1), lambda i: (0, i, 0)),
                # constant block index -> fetched once, VMEM-resident thereafter
                pl.BlockSpec((num_rels, in_feat, out_feat), lambda i: (0, 0, 0)),
                pl.BlockSpec((1, out_feat), lambda i: (0, 0)),
            ],
            out_specs=pl.BlockSpec((tn, out_feat), lambda i: (i, 0)),
        ),
        compiler_params=pltpu.CompilerParams(
            # single node-tile axis; "parallel" lets it shard across TensorCores.
            # TODO(synk): on v7x verify 2-way core sharding; if not, switch this
            # axis to pltpu.CORE_PARALLEL.
            dimension_semantics=("parallel",)),
    )(agg_bf16, inv_deg, w_bf16, b2d)
    # TODO(synk): for very large in_feat, add a K-axis 'arbitrary' grid dim (with a
    # small f32 accumulator) to keep per-step tiles within v7x's 64 MiB VMEM.
    # TODO(synk): on v5e, if the agg DMA is exposed, try pipeline_mode=pl.Buffered(3)
    # on the first in_spec.
    return out


if __name__ == "__main__":
    # Small deterministic problem: one node type, R relations, random edges.
    in_feat, out_feat = 128, 128
    num_rels = 3
    N = 700                    # not a multiple of the 512 tile -> exercises partial block
    e_per_rel = 800
    E = num_rels * e_per_rel

    key = jax.random.PRNGKey(0)
    kx, kw, kb, ks, kd = jax.random.split(key, 5)

    x = jax.random.normal(kx, (N, in_feat), dtype=jnp.float32)
    weight = jax.random.normal(kw, (num_rels, in_feat, out_feat),
                               dtype=jnp.float32) * 0.05
    bias = jax.random.normal(kb, (out_feat,), dtype=jnp.float32) * 0.05

    src = jax.random.randint(ks, (E,), 0, N, dtype=jnp.int32)
    dst = jax.random.randint(kd, (E,), 0, N, dtype=jnp.int32)
    rel = jnp.repeat(jnp.arange(num_rels, dtype=jnp.int32), e_per_rel)

    out = rel_graph_conv_layer(x, src, dst, rel, weight, bias,
                               num_rels=num_rels, tn=512)
    out = jax.block_until_ready(out)

    # Reference (plain JAX) with the same bf16 matmul inputs / f32 accumulation
    # and the same post-matmul degree normalization.
    summed, inv_deg = aggregate_messages_unnormalized(x, src, dst, rel, N, num_rels)
    part = jnp.einsum("rni,rio->rno",
                      summed.astype(jnp.bfloat16), weight.astype(jnp.bfloat16),
                      preferred_element_type=jnp.float32)
    ref = jnp.maximum((part * inv_deg).sum(axis=0) + bias, 0.0)

    assert out.shape == (N, out_feat)
    assert jnp.allclose(out, ref, atol=2e-2, rtol=2e-2)

    print("KERNEL_OK")
</pallas_src>

<mosaic_0001>
module attributes {stable_mosaic.version = 11 : i64} {
  func.func @rgcn_kernel(%arg0: i32, %arg1: memref<3x512x128xbf16, #tpu.memory_space<vmem>>, %arg2: memref<3x512x1xf32, #tpu.memory_space<vmem>>, %arg3: memref<3x128x128xbf16, #tpu.memory_space<vmem>>, %arg4: memref<1x128xf32, #tpu.memory_space<vmem>>, %arg5: memref<512x128xf32, #tpu.memory_space<vmem>>) attributes {dimension_semantics = [#tpu.dimension_semantics<parallel>], iteration_bounds = array<i64: 2>, scalar_prefetch = 0 : i64, scratch_operands = 0 : i64, tpu.core_type = #tpu.core_type<tc>, window_params = [{transform_indices = @transform_0, window_bounds = array<i64: 3, 512, 128>}, {transform_indices = @transform_1, window_bounds = array<i64: 3, 512, 1>}, {pipeline_mode = #tpu.pipeline_mode<synchronous>, transform_indices = @transform_2, window_bounds = array<i64: 3, 128, 128>}, {pipeline_mode = #tpu.pipeline_mode<synchronous>, transform_indices = @transform_3, window_bounds = array<i64: 1, 128>}, {transform_indices = @transform_4, window_bounds = array<i64: 512, 128>}]} {
    %c0 = arith.constant 0 : index
    %c0_0 = arith.constant 0 : index
    %c0_1 = arith.constant 0 : index
    %0 = vector.load %arg1[%c0, %c0_0, %c0_1] : memref<3x512x128xbf16, #tpu.memory_space<vmem>>, vector<1x512x128xbf16>
    %1 = vector.shape_cast %0 : vector<1x512x128xbf16> to vector<512x128xbf16>
    %c0_2 = arith.constant 0 : index
    %c0_3 = arith.constant 0 : index
    %c0_4 = arith.constant 0 : index
    %2 = vector.load %arg3[%c0_2, %c0_3, %c0_4] : memref<3x128x128xbf16, #tpu.memory_space<vmem>>, vector<1x128x128xbf16>
    %3 = vector.shape_cast %2 : vector<1x128x128xbf16> to vector<128x128xbf16>
    %cst = arith.constant dense<0.000000e+00> : vector<512x128xf32>
    %4 = tpu.matmul %1, %3, %cst {dimension_numbers = #tpu.dot_dimension_numbers<[1], [0], [0], [1], [0, 0, 1, 1], [], []>} : vector<512x128xbf16>, vector<128x128xbf16>, vector<512x128xf32> -> vector<512x128xf32>
    %c0_5 = arith.constant 0 : index
    %c0_6 = arith.constant 0 : index
    %c0_7 = arith.constant 0 : index
    %5 = vector.load %arg2[%c0_5, %c0_6, %c0_7] : memref<3x512x1xf32, #tpu.memory_space<vmem>>, vector<1x512x1xf32>
    %6 = vector.shape_cast %5 : vector<1x512x1xf32> to vector<512x1xf32>
    %7 = vector.broadcast %6 : vector<512x1xf32> to vector<512x128xf32>
    %8 = arith.mulf %4, %7 : vector<512x128xf32>
    %c1 = arith.constant 1 : index
    %c0_8 = arith.constant 0 : index
    %c0_9 = arith.constant 0 : index
    %9 = vector.load %arg1[%c1, %c0_8, %c0_9] : memref<3x512x128xbf16, #tpu.memory_space<vmem>>, vector<1x512x128xbf16>
    %10 = vector.shape_cast %9 : vector<1x512x128xbf16> to vector<512x128xbf16>
    %c1_10 = arith.constant 1 : index
    %c0_11 = arith.constant 0 : index
    %c0_12 = arith.constant 0 : index
    %11 = vector.load %arg3[%c1_10, %c0_11, %c0_12] : memref<3x128x128xbf16, #tpu.memory_space<vmem>>, vector<1x128x128xbf16>
    %12 = vector.shape_cast %11 : vector<1x128x128xbf16> to vector<128x128xbf16>
    %cst_13 = arith.constant dense<0.000000e+00> : vector<512x128xf32>
    %13 = tpu.matmul %10, %12, %cst_13 {dimension_numbers = #tpu.dot_dimension_numbers<[1], [0], [0], [1], [0, 0, 1, 1], [], []>} : vector<512x128xbf16>, vector<128x128xbf16>, vector<512x128xf32> -> vector<512x128xf32>
    %c1_14 = arith.constant 1 : index
    %c0_15 = arith.constant 0 : index
    %c0_16 = arith.constant 0 : index
    %14 = vector.load %arg2[%c1_14, %c0_15, %c0_16] : memref<3x512x1xf32, #tpu.memory_space<vmem>>, vector<1x512x1xf32>
    %15 = vector.shape_cast %14 : vector<1x512x1xf32> to vector<512x1xf32>
    %16 = vector.broadcast %15 : vector<512x1xf32> to vector<512x128xf32>
    %17 = arith.mulf %13, %16 : vector<512x128xf32>
    %18 = arith.addf %8, %17 : vector<512x128xf32>
    %c2 = arith.constant 2 : index
    %c0_17 = arith.constant 0 : index
    %c0_18 = arith.constant 0 : index
    %19 = vector.load %arg1[%c2, %c0_17, %c0_18] : memref<3x512x128xbf16, #tpu.memory_space<vmem>>, vector<1x512x128xbf16>
    %20 = vector.shape_cast %19 : vector<1x512x128xbf16> to vector<512x128xbf16>
    %c2_19 = arith.constant 2 : index
    %c0_20 = arith.constant 0 : index
    %c0_21 = arith.constant 0 : index
    %21 = vector.load %arg3[%c2_19, %c0_20, %c0_21] : memref<3x128x128xbf16, #tpu.memory_space<vmem>>, vector<1x128x128xbf16>
    %22 = vector.shape_cast %21 : vector<1x128x128xbf16> to vector<128x128xbf16>
    %cst_22 = arith.constant dense<0.000000e+00> : vector<512x128xf32>
    %23 = tpu.matmul %20, %22, %cst_22 {dimension_numbers = #tpu.dot_dimension_numbers<[1], [0], [0], [1], [0, 0, 1, 1], [], []>} : vector<512x128xbf16>, vector<128x128xbf16>, vector<512x128xf32> -> vector<512x128xf32>
    %c2_23 = arith.constant 2 : index
    %c0_24 = arith.constant 0 : index
    %c0_25 = arith.constant 0 : index
    %24 = vector.load %arg2[%c2_23, %c0_24, %c0_25] : memref<3x512x1xf32, #tpu.memory_space<vmem>>, vector<1x512x1xf32>
    %25 = vector.shape_cast %24 : vector<1x512x1xf32> to vector<512x1xf32>
    %26 = vector.broadcast %25 : vector<512x1xf32> to vector<512x128xf32>
    %27 = arith.mulf %23, %26 : vector<512x128xf32>
    %28 = arith.addf %18, %27 : vector<512x128xf32>
    %c0_26 = arith.constant 0 : index
    %c0_27 = arith.constant 0 : index
    %29 = vector.load %arg4[%c0_26, %c0_27] : memref<1x128xf32, #tpu.memory_space<vmem>>, vector<1x128xf32>
    %30 = vector.broadcast %29 : vector<1x128xf32> to vector<512x128xf32>
    %31 = arith.addf %28, %30 : vector<512x128xf32>
    %cst_28 = arith.constant 0.000000e+00 : f32
    %32 = vector.broadcast %cst_28 : f32 to vector<512x128xf32>
    %33 = arith.maximumf %31, %32 : vector<512x128xf32>
    %c0_29 = arith.constant 0 : index
    %c0_30 = arith.constant 0 : index
    %34 = vector.load %arg5[%c0_29, %c0_30] : memref<512x128xf32, #tpu.memory_space<vmem>>, vector<512x128xf32>
    tpu.vector_store %arg5[%c0_29, %c0_30], %33 {strides = array<i32>} : memref<512x128xf32, #tpu.memory_space<vmem>>, vector<512x128xf32>,
    return
  }
  func.func @transform_0(%arg0: i32) -> (i32, i32, i32) {
    %c0_i32 = arith.constant 0 : i32
    %c0_i32_0 = arith.constant 0 : i32
    %c0_i32_1 = arith.constant 0 : i32
    return %c0_i32, %arg0, %c0_i32_0 : i32, i32, i32
  }
  func.func @transform_1(%arg0: i32) -> (i32, i32, i32) {
    %c0_i32 = arith.constant 0 : i32
    %c0_i32_0 = arith.constant 0 : i32
    %c0_i32_1 = arith.constant 0 : i32
    return %c0_i32, %arg0, %c0_i32_0 : i32, i32, i32
  }
  func.func @transform_2(%arg0: i32) -> (i32, i32, i32) {
    %c0_i32 = arith.constant 0 : i32
    %c0_i32_0 = arith.constant 0 : i32
    %c0_i32_1 = arith.constant 0 : i32
    %c0_i32_2 = arith.constant 0 : i32
    return %c0_i32, %c0_i32_0, %c0_i32_1 : i32, i32, i32
  }
  func.func @transform_3(%arg0: i32) -> (i32, i32) {
    %c0_i32 = arith.constant 0 : i32
    %c0_i32_0 = arith.constant 0 : i32
    %c0_i32_1 = arith.constant 0 : i32
    return %c0_i32, %c0_i32_0 : i32, i32
  }
  func.func @transform_4(%arg0: i32) -> (i32, i32) {
    %c0_i32 = arith.constant 0 : i32
    %c0_i32_0 = arith.constant 0 : i32
    return %arg0, %c0_i32 : i32, i32
  }
}

</mosaic_0001>

<bundles_post_ra>
// kernel: tpu_custom_call.1
= control target key start
LH: loop header
LB: loop body
LE: loop exit
PB: predicated region body
PF: predicated region fallthrough
CT: control target
= control target key end

     0   :  { %9 = vsyncpa [#allocation5], 0  ;;  %s7308_s0 = inlined_call_operand.vmem [shape: bf16[3,700,128], index: 0, kind: input, shape index: {}]   ;;  %s7309_s1 = inlined_call_operand.vmem [shape: f32[3,700,1], index: 1, kind: input, shape index: {}]   ;;  %s7310_s2 = inlined_call_operand.vmem [shape: bf16[3,128,128], index: 2, kind: input, shape index: {}]   ;;  %s7311_s3 = inlined_call_operand.vmem [shape: f32[1,128], index: 3, kind: input, shape index: {}]   ;;  %s7312_s4 = inlined_call_operand.hbm [shape: f32[700,128], index: 4, kind: output, shape index: {}]  }
   0x1   :  { %11 = vsyncpa [#allocation5 + $0x1], 0  ;;  %s5498_s15 = smov 0   ;;  %s5500_s16 = smov 0  }
   0x2   :  { %s5502_s17 = smov 0   ;;  %s5504_s18 = smov 0  }
   0x3 LB: > { %s5519_s19 = sadd.s32 4294967295, %s5403_s18   ;;  %s4125_s20 = sadd.s32 4294967294, %s5403_s18   ;;  %s5403_s18 = sphi %s5504_s18, %s7540_s18   ;;  %s5399_s17 = sphi %s5502_s17, %s7539_s17   ;;  %s5395_s16 = sphi %s5500_s16, %s7538_s16   ;;  %s5391_s15 = sphi %s5498_s15, %s7537_s15  }
   0x4   : > { %s5523_s21 = sadd.s32 1, %s5403_s18   ;;  %s24_s22 = sadd.s32 1, %s5399_s17 }
   0x5   : > { %s21_s23 = ssub.s32 %s5403_s18, %s5523_s21  ;;  %p31_p0 = scmp.ne.s32.totalorder %s5399_s17, %s5395_s16 }
   0x6   : > { %p22_p1 = scmp.eq.s32.totalorder %s21_s23, 0  ;;  %p32_p2 = scmp.eq.s32.totalorder %s5403_s18, 0 }
   0x7   : > { %p129_p3 = scmp.eq.s32.totalorder %s5519_s19, 1  ;;  %p134_p4 = scmp.ne.s32.totalorder %s5395_s16, %s5391_s15 }
   0x8   : > { %s5535_s24 = scalar_select %p22_p1, %s5399_s17, %s24_s22  }
   0x9   : > { %p5537_p5 = por %p32_p2, %p31_p0  ;;  %p5541_p6 = por %p129_p3, %p31_p0 }
   0xa   : > { %p135_p7 = scmp.eq.s32.totalorder %s4125_s20, 1  ;;  %p4127_p9 = scmp.ge.s32.totalorder %s5403_s18, 2 }
   0xc   : > { %p5545_p8 = por %p135_p7, %p134_p4  ;;  %157 = sbr.rel (%p4127_p9) target bundleno = 189 (0xbd), region = 24 }
  0x11   : > { %160 = sbr.rel (!%p5537_p5) target bundleno = 103 (0x67), region = 28  ;;  %s162_s28 = sand.u32 (%p5537_p5), 1, %s5399_s17  }
  0x12   : > { %s4128_s29 = sshll.u32 (%p5537_p5), %s5403_s18, 6  ;;  %s5074_s30 = smul.u32 (%p5537_p5), 768, %s162_s28 }
  0x13   : > { %s166_s5 = ssub.s32 (%p5537_p5), 88, %s4128_s29  ;;  %s4927_s6 = sshll.u32 (%p5537_p5), %s5403_s18, 8 }
  0x14   : > { %p167_p10 = scmp.lt.s32.totalorder (%p5537_p5), %s166_s5, 64  ;;  %s5560_s9 = scalar_lea.vmem (%p5537_p5), %s7308_s0, %s4927_s6  }
  0x15   : > { %s5565_s11 = scalar_lea.vmem (%p5537_p5), [#allocation2], %s5074_s30  }
  0x16   : > { %s7542_s5 = smov (!%p167_p10, %s166_s5), 64 }
  0x17   : > { %s169_s10 = smul.u32 12, %s7542_s5 }
  0x19   : > { %p4131_p11 = scmp.eq.s32.totalorder %s169_s10, 0 }
  0x1a   : > { %5249 = sdivrem.u32 (!%p4131_p11), %s7542_s5, 11 }
  0x1b   : > { %175 = sbr.rel (%p4131_p11) target bundleno = 103 (0x67), region = 32 }
  0x23   : > { %s5568_s12 = spop.drf %5249 }
  0x24   : > { %s5251_s13 = spop.drf %5249  ;;  %p4132_p12 = scmp.le.s32.totalorder %s5568_s12, 0 }
  0x25   : > { %s7316_s14 = smov (!%p4132_p12), %s5565_s11  ;;  %s7317_s20 = smov (!%p4132_p12), %s5560_s9 }
  0x26   : > { %4047 = sbr.rel (%p4132_p12) target bundleno = 77 (0x4d), region = 220  ;;  %s5577_s22 = smov (!%p4132_p12), 0  }
  0x27   : > { %s5579_s23 = smov (!%p4132_p12), 0  }
  0x2b LB: >> { %v193_v0 = vld [vmem:[%s5411_s20] sm:$0xf]  ;;  %v195_v1 = vld [vmem:[%s5411_s20 + $0x4] sm:$0xf]  ;;  %v197_v2 = vld [vmem:[%s5411_s20 + $0x8] sm:$0xf]  ;;  %s5419_s23 = sphi %s5579_s23, %s187_s23   ;;  %s5415_s22 = sphi %s5577_s22, %s7320_s22   ;;  %s5411_s20 = sphi %s7317_s20, %s7319_s20   ;;  %s5407_s14 = sphi %s7316_s14, %s7318_s14  }
  0x2c   : >> { %194 = vst [vmem:[%s5407_s14] sm:$0xf] %v193_v0  ;;  %v199_v3 = vld [vmem:[%s5411_s20 + $0xc] sm:$0xf]  ;;  %v201_v4 = vld [vmem:[%s5411_s20 + $0x10] sm:$0xf]  ;;  %s259_s28 = sadd.s32 1, %s5415_s22 }
  0x2d   : >> { %196 = vst [vmem:[%s5407_s14 + $0x4] sm:$0xf] %v195_v1  ;;  %v203_v5 = vld [vmem:[%s5411_s20 + $0x14] sm:$0xf]  ;;  %v205_v6 = vld [vmem:[%s5411_s20 + $0x18] sm:$0xf]  ;;  %p260_p13 = scmp.ge.s32.totalorder %s259_s28, %s5568_s12 }
  0x2e   : >> { %198 = vst [vmem:[%s5407_s14 + $0x8] sm:$0xf] %v197_v2  ;;  %v207_v7 = vld [vmem:[%s5411_s20 + $0x1c] sm:$0xf]  ;;  %v209_v8 = vld [vmem:[%s5411_s20 + $0x20] sm:$0xf] }
  0x2f   : >> { %200 = vst [vmem:[%s5407_s14 + $0xc] sm:$0xf] %v199_v3  ;;  %v211_v9 = vld [vmem:[%s5411_s20 + $0x24] sm:$0xf]  ;;  %v213_v10 = vld [vmem:[%s5411_s20 + $0x28] sm:$0xf] }
  0x30   : >> { %202 = vst [vmem:[%s5407_s14 + $0x10] sm:$0xf] %v201_v4  ;;  %v215_v11 = vld [vmem:[%s5411_s20 + $0x160] sm:$0xf]  ;;  %v217_v12 = vld [vmem:[%s5411_s20 + $0x164] sm:$0xf] }
  0x31   : >> { %204 = vst [vmem:[%s5407_s14 + $0x14] sm:$0xf] %v203_v5  ;;  %v219_v13 = vld [vmem:[%s5411_s20 + $0x168] sm:$0xf]  ;;  %v221_v14 = vld [vmem:[%s5411_s20 + $0x16c] sm:$0xf] }
  0x32   : >> { %206 = vst [vmem:[%s5407_s14 + $0x18] sm:$0xf] %v205_v6  ;;  %v223_v15 = vld [vmem:[%s5411_s20 + $0x170] sm:$0xf]  ;;  %v225_v16 = vld [vmem:[%s5411_s20 + $0x174] sm:$0xf] }
  0x33   : >> { %208 = vst [vmem:[%s5407_s14 + $0x1c] sm:$0xf] %v207_v7  ;;  %v227_v17 = vld [vmem:[%s5411_s20 + $0x178] sm:$0xf]  ;;  %v229_v18 = vld [vmem:[%s5411_s20 + $0x17c] sm:$0xf] }
  0x34   : >> { %210 = vst [vmem:[%s5407_s14 + $0x20] sm:$0xf] %v209_v8  ;;  %s7544_s28 = smov (%p260_p13, %s259_s28), 0  ;;  %v231_v19 = vld [vmem:[%s5411_s20 + $0x180] sm:$0xf]  ;;  %s187_s23 = sadd.s32 1, %s5419_s23  }
  0x35   : >> { %212 = vst [vmem:[%s5407_s14 + $0x24] sm:$0xf] %v211_v9  ;;  %v233_v20 = vld [vmem:[%s5411_s20 + $0x184] sm:$0xf]  ;;  %s262_s29 = smul.u32 44, %s7544_s28  ;;  %p186_p0 = scmp.ge.s32.totalorder %s187_s23, %s5568_s12 }
  0x36   : >> { %214 = vst [vmem:[%s5407_s14 + $0x28] sm:$0xf] %v213_v10  ;;  %v235_v21 = vld [vmem:[%s5411_s20 + $0x188] sm:$0xf]  ;;  %v237_v22 = vld [vmem:[%s5411_s20 + $0x2c0] sm:$0xf]  ;;  %s7320_s22 = smov %s7544_s28 }
  0x37   : >> { %216 = vst [vmem:[%s5407_s14 + $0x100] sm:$0xf] %v215_v11  ;;  %s264_s30 = scalar_lea.vmem %s5560_s9, %s262_s29   ;;  %s265_s6 = scalar_lea.vmem %s5565_s11, %s262_s29 [#allocation2]   ;;  %v239_v23 = vld [vmem:[%s5411_s20 + $0x2c4] sm:$0xf]  ;;  %v241_v24 = vld [vmem:[%s5411_s20 + $0x2c8] sm:$0xf] }
  0x38   : >> { %218 = vst [vmem:[%s5407_s14 + $0x104] sm:$0xf] %v217_v12  ;;  %v243_v25 = vld [vmem:[%s5411_s20 + $0x2cc] sm:$0xf]  ;;  %v245_v26 = vld [vmem:[%s5411_s20 + $0x2d0] sm:$0xf] }
  0x39   : >> { %220 = vst [vmem:[%s5407_s14 + $0x108] sm:$0xf] %v219_v13  ;;  %v247_v27 = vld [vmem:[%s5411_s20 + $0x2d4] sm:$0xf]  ;;  %v249_v28 = vld [vmem:[%s5411_s20 + $0x2d8] sm:$0xf] }
  0x3a   : >> { %222 = vst [vmem:[%s5407_s14 + $0x10c] sm:$0xf] %v221_v14  ;;  %v251_v29 = vld [vmem:[%s5411_s20 + $0x2dc] sm:$0xf]  ;;  %v253_v30 = vld [vmem:[%s5411_s20 + $0x2e0] sm:$0xf] }
  0x3b   : >> { %224 = vst [vmem:[%s5407_s14 + $0x110] sm:$0xf] %v223_v15  ;;  %v255_v31 = vld [vmem:[%s5411_s20 + $0x2e4] sm:$0xf]  ;;  %v257_v32 = vld [vmem:[%s5411_s20 + $0x2e8] sm:$0xf]  ;;  %s7319_s20 = smov %s264_s30 }
  0x3c   : >> { %226 = vst [vmem:[%s5407_s14 + $0x114] sm:$0xf] %v225_v16 }
  0x3d   : >> { %228 = vst [vmem:[%s5407_s14 + $0x118] sm:$0xf] %v227_v17 }
  0x3e   : >> { %230 = vst [vmem:[%s5407_s14 + $0x11c] sm:$0xf] %v229_v18 }
  0x3f   : >> { %232 = vst [vmem:[%s5407_s14 + $0x120] sm:$0xf] %v231_v19 }
  0x40   : >> { %234 = vst [vmem:[%s5407_s14 + $0x124] sm:$0xf] %v233_v20 }
  0x41   : >> { %236 = vst [vmem:[%s5407_s14 + $0x128] sm:$0xf] %v235_v21 }
  0x42   : >> { %238 = vst [vmem:[%s5407_s14 + $0x200] sm:$0xf] %v237_v22 }
  0x43   : >> { %240 = vst [vmem:[%s5407_s14 + $0x204] sm:$0xf] %v239_v23 }
  0x44   : >> { %242 = vst [vmem:[%s5407_s14 + $0x208] sm:$0xf] %v241_v24 }
  0x45   : >> { %244 = vst [vmem:[%s5407_s14 + $0x20c] sm:$0xf] %v243_v25 }
  0x46   : >> { %246 = vst [vmem:[%s5407_s14 + $0x210] sm:$0xf] %v245_v26 }
  0x47   : >> { %248 = vst [vmem:[%s5407_s14 + $0x214] sm:$0xf] %v247_v27 }
  0x48   : >> { %250 = vst [vmem:[%s5407_s14 + $0x218] sm:$0xf] %v249_v28  ;;  %189 = sbr.rel (!%p186_p0) target bundleno = 43 (0x2b), region = 226 }
  0x49   : >> { %252 = vst [vmem:[%s5407_s14 + $0x21c] sm:$0xf] %v251_v29 }
  0x4a   : >> { %254 = vst [vmem:[%s5407_s14 + $0x220] sm:$0xf] %v253_v30 }
  0x4b   : >> { %256 = vst [vmem:[%s5407_s14 + $0x224] sm:$0xf] %v255_v31 }
  0x4c   : >> { %258 = vst [vmem:[%s5407_s14 + $0x228] sm:$0xf] %v257_v32  ;;  %s7318_s14 = smov %s265_s6 }
  0x4d PF: > { %5252 = sdivrem.u32 %s7542_s5, 11 }
  0x4e   : > { %s4133_s7 = smul.u32 44, %s5568_s12 }
  0x50   : > { %s5680_s8 = scalar_lea.vmem %s5560_s9, %s4133_s7   ;;  %s5683_s10 = scalar_lea.vmem %s5565_s11, %s4133_s7 [#allocation2]  }
  0x56   : > { %s5253_s13 = spop.drf %5252 }
  0x57   : > { %s5685_s29 = spop.drf %5252 }
  0x58   : > { %p4135_p1 = scmp.le.s32.totalorder %s5685_s29, 0 }
  0x59   : > { %s7321_s14 = smov (!%p4135_p1), %s5683_s10  ;;  %s5425_s20 = smov (!%p4135_p1), %s5680_s8  }
  0x5a   : > { %4061 = sbr.rel (%p4135_p1) target bundleno = 103 (0x67), region = 231  ;;  %s5429_s22 = smov (!%p4135_p1), 0  }
  0x5b   : > { %s5433_s23 = smov (!%p4135_p1), 0  }
  0x5f LB: >> { %v282_v33 = vld [vmem:[%s5427_s20] sm:$0xf]  ;;  %s288_s5 = sadd.s32 1, %s5431_s22  ;;  %s276_s23 = sadd.s32 1, %s5435_s23   ;;  %s5435_s23 = sphi %s5433_s23, %s276_s23   ;;  %s5431_s22 = sphi %s5429_s22, %s5430_s22   ;;  %s5427_s20 = sphi %s5425_s20, %s293_s20   ;;  %s5423_s14 = sphi %s7321_s14, %s294_s14  }
  0x60   : >> { %v284_v34 = vld [vmem:[%s5427_s20 + $0x160] sm:$0xf]  ;;  %283 = vst [vmem:[%s5423_s14] sm:$0xf] %v282_v33  ;;  %p289_p2 = scmp.ge.s32.totalorder %s288_s5, %s5685_s29  ;;  %p275_p3 = scmp.ge.s32.totalorder %s276_s23, %s5685_s29 }
  0x61   : >> { %v286_v35 = vld [vmem:[%s5427_s20 + $0x2c0] sm:$0xf]  ;;  %285 = vst [vmem:[%s5423_s14 + $0x100] sm:$0xf] %v284_v34 }
  0x62   : >> { %287 = vst [vmem:[%s5423_s14 + $0x200] sm:$0xf] %v286_v35  ;;  %s7546_s5 = smov (%p289_p2, %s288_s5), 0  ;;  %278 = sbr.rel (!%p275_p3) target bundleno = 95 (0x5f), region = 237 }
  0x63   : >> { %s4136_s9 = sshll.u32 %s7546_s5, 2  ;;  %s5430_s22 = smov %s7546_s5  }
  0x64   : >> { %s293_s20 = scalar_lea.vmem %s5680_s8, %s4136_s9   ;;  %s294_s14 = scalar_lea.vmem %s5683_s10, %s4136_s9 [#allocation2]  }
  0x67 PF: > { %455 = sbr.rel (!%p5537_p5) target bundleno = 189 (0xbd), region = 90  ;;  %s457_s11 = sand.u32 (%p5537_p5), 1, %s5399_s17  }
  0x68   : > { %s4138_s12 = sshll.u32 (%p5537_p5), %s5403_s18, 6  ;;  %s5075_s28 = smul.u32 (%p5537_p5), 1536, %s457_s11 }
  0x69   : > { %s461_s30 = ssub.s32 (%p5537_p5), 88, %s4138_s12  ;;  %s4928_s6 = sshll.u32 (%p5537_p5), %s5403_s18, 9 }
  0x6a   : > { %p462_p4 = scmp.lt.s32.totalorder (%p5537_p5), %s461_s30, 64  ;;  %s5707_s14 = scalar_lea.vmem (%p5537_p5), %s7309_s1, %s4928_s6  }
  0x6b   : > { %s5712_s25 = scalar_lea.vmem (%p5537_p5), [#allocation3], %s5075_s28  }
  0x6c   : > { %s7548_s30 = smov (!%p462_p4, %s461_s30), 64 }
  0x6d   : > { %s464_s8 = smul.u32 24, %s7548_s30 }
  0x6f   : > { %p4141_p5 = scmp.eq.s32.totalorder %s464_s8, 0 }
  0x70   : > { %5255 = sdivrem.u32 (!%p4141_p5), %s7548_s30, 11 }
  0x71   : > { %470 = sbr.rel (%p4141_p5) target bundleno = 189 (0xbd), region = 94 }
  0x79   : > { %s5715_s10 = spop.drf %5255 }
  0x7a   : > { %s5257_s29 = spop.drf %5255  ;;  %p4142_p7 = scmp.le.s32.totalorder %s5715_s10, 0 }
  0x7b   : > { %s7322_s20 = smov (!%p4142_p7), %s5712_s25  ;;  %s7323_s22 = smov (!%p4142_p7), %s5707_s14 }
  0x7c   : > { %4075 = sbr.rel (%p4142_p7) target bundleno = 163 (0xa3), region = 242  ;;  %s5724_s23 = smov (!%p4142_p7), 0  }
  0x7d   : > { %s5726_s5 = smov (!%p4142_p7), 0  }
  0x81 LB: >> { %v603_v36 = vld [vmem:[%s5443_s22] sm:$0xff]  ;;  %v605_v37 = vld [vmem:[%s5443_s22 + $0x8] sm:$0xff]  ;;  %v607_v38 = vld [vmem:[%s5443_s22 + $0x10] sm:$0xff]  ;;  %s669_s9 = sadd.s32 1, %s5447_s23  ;;  %s597_s5 = sadd.s32 1, %s5451_s5   ;;  %s5451_s5 = sphi %s5726_s5, %s597_s5   ;;  %s5447_s23 = sphi %s5724_s23, %s7326_s23   ;;  %s5443_s22 = sphi %s7323_s22, %s7325_s22   ;;  %s5439_s20 = sphi %s7322_s20, %s7324_s20  }
  0x82   : >> { %604 = vst [vmem:[%s5439_s20] sm:$0xff] %v603_v36  ;;  %v609_v39 = vld [vmem:[%s5443_s22 + $0x18] sm:$0xff]  ;;  %p670_p10 = scmp.ge.s32.totalorder %s669_s9, %s5715_s10  ;;  %v611_v40 = vld [vmem:[%s5443_s22 + $0x20] sm:$0xff]  ;;  %v613_v41 = vld [vmem:[%s5443_s22 + $0x28] sm:$0xff]  ;;  %p596_p11 = scmp.ge.s32.totalorder %s597_s5, %s5715_s10 }
  0x83   : >> { %606 = vst [vmem:[%s5439_s20 + $0x8] sm:$0xff] %v605_v37  ;;  %v615_v42 = vld [vmem:[%s5443_s22 + $0x30] sm:$0xff]  ;;  %v617_v43 = vld [vmem:[%s5443_s22 + $0x38] sm:$0xff]  ;;  %v619_v44 = vld [vmem:[%s5443_s22 + $0x40] sm:$0xff] }
  0x84   : >> { %608 = vst [vmem:[%s5439_s20 + $0x10] sm:$0xff] %v607_v38  ;;  %s7550_s9 = smov (%p670_p10, %s669_s9), 0  ;;  %v621_v45 = vld [vmem:[%s5443_s22 + $0x48] sm:$0xff]  ;;  %v623_v46 = vld [vmem:[%s5443_s22 + $0x50] sm:$0xff]  ;;  %v625_v47 = vld [vmem:[%s5443_s22 + $0x2c0] sm:$0xff] }
  0x85   : >> { %610 = vst [vmem:[%s5439_s20 + $0x18] sm:$0xff] %v609_v39  ;;  %s672_s11 = smul.u32 88, %s7550_s9  ;;  %v627_v48 = vld [vmem:[%s5443_s22 + $0x2c8] sm:$0xff]  ;;  %v629_v49 = vld [vmem:[%s5443_s22 + $0x2d0] sm:$0xff]  ;;  %v631_v50 = vld [vmem:[%s5443_s22 + $0x2d8] sm:$0xff]  ;;  %s7326_s23 = smov %s7550_s9 }
  0x86   : >> { %612 = vst [vmem:[%s5439_s20 + $0x20] sm:$0xff] %v611_v40  ;;  %v633_v51 = vld [vmem:[%s5443_s22 + $0x2e0] sm:$0xff]  ;;  %v635_v52 = vld [vmem:[%s5443_s22 + $0x2e8] sm:$0xff]  ;;  %v637_v53 = vld [vmem:[%s5443_s22 + $0x2f0] sm:$0xff] }
  0x87   : >> { %614 = vst [vmem:[%s5439_s20 + $0x28] sm:$0xff] %v613_v41  ;;  %s5760_s12 = scalar_lea.vmem %s5707_s14, %s672_s11   ;;  %s5763_s28 = scalar_lea.vmem %s5712_s25, %s672_s11 [#allocation3]   ;;  %v639_v54 = vld [vmem:[%s5443_s22 + $0x2f8] sm:$0xff]  ;;  %v641_v55 = vld [vmem:[%s5443_s22 + $0x300] sm:$0xff]  ;;  %v643_v56 = vld [vmem:[%s5443_s22 + $0x308] sm:$0xff] }
  0x88   : >> { %616 = vst [vmem:[%s5439_s20 + $0x30] sm:$0xff] %v615_v42  ;;  %v645_v57 = vld [vmem:[%s5443_s22 + $0x310] sm:$0xff]  ;;  %v647_v58 = vld [vmem:[%s5443_s22 + $0x580] sm:$0xff]  ;;  %v649_v59 = vld [vmem:[%s5443_s22 + $0x588] sm:$0xff] }
  0x89   : >> { %618 = vst [vmem:[%s5439_s20 + $0x38] sm:$0xff] %v617_v43  ;;  %v651_v60 = vld [vmem:[%s5443_s22 + $0x590] sm:$0xff]  ;;  %v653_v61 = vld [vmem:[%s5443_s22 + $0x598] sm:$0xff]  ;;  %v655_v62 = vld [vmem:[%s5443_s22 + $0x5a0] sm:$0xff] }
  0x8a   : >> { %620 = vst [vmem:[%s5439_s20 + $0x40] sm:$0xff] %v619_v44  ;;  %v657_v63 = vld [vmem:[%s5443_s22 + $0x5a8] sm:$0xff]  ;;  %v659_v0 = vld [vmem:[%s5443_s22 + $0x5b0] sm:$0xff]  ;;  %v661_v1 = vld [vmem:[%s5443_s22 + $0x5b8] sm:$0xff] }
  0x8b   : >> { %622 = vst [vmem:[%s5439_s20 + $0x48] sm:$0xff] %v621_v45  ;;  %v663_v2 = vld [vmem:[%s5443_s22 + $0x5c0] sm:$0xff]  ;;  %v665_v3 = vld [vmem:[%s5443_s22 + $0x5c8] sm:$0xff]  ;;  %v667_v4 = vld [vmem:[%s5443_s22 + $0x5d0] sm:$0xff]  ;;  %s7325_s22 = smov %s5760_s12 }
  0x8c   : >> { %624 = vst [vmem:[%s5439_s20 + $0x50] sm:$0xff] %v623_v46 }
  0x8d   : >> { %626 = vst [vmem:[%s5439_s20 + $0x200] sm:$0xff] %v625_v47 }
  0x8e   : >> { %628 = vst [vmem:[%s5439_s20 + $0x208] sm:$0xff] %v627_v48 }
  0x8f   : >> { %630 = vst [vmem:[%s5439_s20 + $0x210] sm:$0xff] %v629_v49 }
  0x90   : >> { %632 = vst [vmem:[%s5439_s20 + $0x218] sm:$0xff] %v631_v50 }
  0x91   : >> { %634 = vst [vmem:[%s5439_s20 + $0x220] sm:$0xff] %v633_v51 }
  0x92   : >> { %636 = vst [vmem:[%s5439_s20 + $0x228] sm:$0xff] %v635_v52 }
  0x93   : >> { %638 = vst [vmem:[%s5439_s20 + $0x230] sm:$0xff] %v637_v53 }
  0x94   : >> { %640 = vst [vmem:[%s5439_s20 + $0x238] sm:$0xff] %v639_v54 }
  0x95   : >> { %642 = vst [vmem:[%s5439_s20 + $0x240] sm:$0xff] %v641_v55 }
  0x96   : >> { %644 = vst [vmem:[%s5439_s20 + $0x248] sm:$0xff] %v643_v56 }
  0x97   : >> { %646 = vst [vmem:[%s5439_s20 + $0x250] sm:$0xff] %v645_v57 }
  0x98   : >> { %648 = vst [vmem:[%s5439_s20 + $0x400] sm:$0xff] %v647_v58 }
  0x99   : >> { %650 = vst [vmem:[%s5439_s20 + $0x408] sm:$0xff] %v649_v59 }
  0x9a   : >> { %652 = vst [vmem:[%s5439_s20 + $0x410] sm:$0xff] %v651_v60 }
  0x9b   : >> { %654 = vst [vmem:[%s5439_s20 + $0x418] sm:$0xff] %v653_v61 }
  0x9c   : >> { %656 = vst [vmem:[%s5439_s20 + $0x420] sm:$0xff] %v655_v62 }
  0x9d   : >> { %658 = vst [vmem:[%s5439_s20 + $0x428] sm:$0xff] %v657_v63 }
  0x9e   : >> { %660 = vst [vmem:[%s5439_s20 + $0x430] sm:$0xff] %v659_v0  ;;  %599 = sbr.rel (!%p596_p11) target bundleno = 129 (0x81), region = 248 }
  0x9f   : >> { %662 = vst [vmem:[%s5439_s20 + $0x438] sm:$0xff] %v661_v1 }
  0xa0   : >> { %664 = vst [vmem:[%s5439_s20 + $0x440] sm:$0xff] %v663_v2 }
  0xa1   : >> { %666 = vst [vmem:[%s5439_s20 + $0x448] sm:$0xff] %v665_v3 }
  0xa2   : >> { %668 = vst [vmem:[%s5439_s20 + $0x450] sm:$0xff] %v667_v4  ;;  %s7324_s20 = smov %s5763_s28 }
  0xa3 PF: > { %5258 = sdivrem.u32 %s7548_s30, 11 }
  0xa4   : > { %s4143_s6 = smul.u32 88, %s5715_s10 }
  0xa6   : > { %s5830_s7 = scalar_lea.vmem %s5707_s14, %s4143_s6   ;;  %s5833_s13 = scalar_lea.vmem %s5712_s25, %s4143_s6 [#allocation3]  }
  0xac   : > { %s5259_s8 = spop.drf %5258 }
  0xad   : > { %s5835_s29 = spop.drf %5258 }
  0xae   : > { %p4145_p12 = scmp.le.s32.totalorder %s5835_s29, 0 }
  0xaf   : > { %s7327_s20 = smov (!%p4145_p12), %s5833_s13  ;;  %s5457_s22 = smov (!%p4145_p12), %s5830_s7  }
  0xb0   : > { %4089 = sbr.rel (%p4145_p12) target bundleno = 189 (0xbd), region = 253  ;;  %s5461_s23 = smov (!%p4145_p12), 0  }
  0xb1   : > { %s5465_s5 = smov (!%p4145_p12), 0  }
  0xb5 LB: >> { %v692_v5 = vld [vmem:[%s5459_s22] sm:$0xff]  ;;  %s698_s30 = sadd.s32 1, %s5463_s23  ;;  %s686_s5 = sadd.s32 1, %s5467_s5   ;;  %s5467_s5 = sphi %s5465_s5, %s686_s5   ;;  %s5463_s23 = sphi %s5461_s23, %s5462_s23   ;;  %s5459_s22 = sphi %s5457_s22, %s703_s22   ;;  %s5455_s20 = sphi %s7327_s20, %s704_s20  }
  0xb6   : >> { %v694_v6 = vld [vmem:[%s5459_s22 + $0x2c0] sm:$0xff]  ;;  %693 = vst [vmem:[%s5455_s20] sm:$0xff] %v692_v5  ;;  %p699_p13 = scmp.ge.s32.totalorder %s698_s30, %s5835_s29  ;;  %p685_p0 = scmp.ge.s32.totalorder %s686_s5, %s5835_s29 }
  0xb7   : >> { %v696_v7 = vld [vmem:[%s5459_s22 + $0x580] sm:$0xff]  ;;  %695 = vst [vmem:[%s5455_s20 + $0x200] sm:$0xff] %v694_v6 }
  0xb8   : >> { %697 = vst [vmem:[%s5455_s20 + $0x400] sm:$0xff] %v696_v7  ;;  %s7552_s30 = smov (%p699_p13, %s698_s30), 0  ;;  %688 = sbr.rel (!%p685_p0) target bundleno = 181 (0xb5), region = 259 }
  0xb9   : >> { %s4146_s14 = sshll.u32 %s7552_s30, 3  ;;  %s5462_s23 = smov %s7552_s30  }
  0xba   : >> { %s703_s22 = scalar_lea.vmem %s5830_s7, %s4146_s14   ;;  %s704_s20 = scalar_lea.vmem %s5833_s13, %s4146_s14 [#allocation3]  }
  0xbd PF: > { %p4148_p1 = scmp.ge.s32.totalorder %s5403_s18, 1  ;;  %p709_p2 = scmp.lt.s32.totalorder %s5403_s18, 3 }
  0xbf   : > { %p710_p3 = pnand %p4148_p1, %p709_p2 }
  0xc1   : > { %713 = sbr.rel (%p710_p3) target bundleno = 863 (0x35f), region = 142 }
  0xc6   : > { %v4968_v8 = vld [vmem:[%s7310_s2 + $0x38] sm:$0xff]  ;;  %s5860_s12 = sand.u32 1, %s5395_s16   ;;  %v5469_v10 = vmov 0   ;;  %v4967_v11 = vld [vmem:[%s7310_s2 + $0x30] sm:$0xff]  ;;  %v4966_v16 = vld [vmem:[%s7310_s2 + $0x28] sm:$0xff]  ;;  %s4919_s5 = sshll.u32 (%p5541_p6), %s5519_s19, 6 }
  0xc7   : > { %v5857_v9 = vld [vmem:[%s7310_s2 + $0x78] sm:$0xff]  ;;  %5263 = vset.pattern.permute.xlu2 %v5469_v10  ;;  %5262 = vset.pattern.permute.xlu1 %v5469_v10  ;;  %s5077_s28 = smul.u32 1536, %s5860_s12  ;;  %v5870_v12 = vld [vmem:[%s7310_s2 + $0x70] sm:$0xff]  ;;  %v5884_v17 = vld [vmem:[%s7310_s2 + $0x68] sm:$0xff]  ;;  %s4149_s8 = sshll.u32 %s5860_s12, 9 }
  0xc8   : > { %1087 = vmatpush.bf16.msra.mxu0 %v4968_v8  ;;  %5050 = vmatpush.bf16.msra.mxu3 %v4968_v8  ;;  %v5889_v18 = vld [vmem:[%s7310_s2 + $0xb8] sm:$0xff]  ;;  %v4965_v21 = vld [vmem:[%s7310_s2 + $0x20] sm:$0xff]  ;;  %v5907_v24 = vld [vmem:[%s7310_s2 + $0xb0] sm:$0xff]  ;;  %s5076_s6 = smul.u32 768, %s5860_s12  ;;  %s6830_s20 = scalar_lea.vmem [#allocation4], %s4149_s8 }
  0xc9   : > { %2026 = vmatpush.bf16.msra.mxu1 %v5857_v9  ;;  %5261 = vset.pattern.permute.xlu0 %v5469_v10  ;;  %s5872_s29 = scalar_lea.vmem [#allocation3], %s5077_s28  ;;  %v5902_v23 = vld [vmem:[%s7310_s2 + $0x60] sm:$0xff]  ;;  %v4964_v25 = vld [vmem:[%s7310_s2 + $0x18] sm:$0xff]  ;;  %v5922_v27 = vld [vmem:[%s7310_s2 + $0xa8] sm:$0xff]  ;;  %s3909_s23 = scalar_lea.sflag [#allocation5], %s5860_s12 }
  0xca   : > { %v1260_v13 = vld [vmem:[%s5872_s29 + $0x20] sm:$0xff]  ;;  %v1258_v14 = vld [vmem:[%s5872_s29 + $0x10] sm:$0xff]  ;;  %3030 = vmatpush.bf16.msra.mxu2 %v5889_v18  ;;  %v1261_v19 = vld [vmem:[%s5872_s29 + $0x28] sm:$0xff]  ;;  %s5974_s10 = scalar_lea.vmem [#allocation2], %s5076_s6  ;;  %s3917_s30 = ssub.s32 (%p5541_p6), 88, %s4919_s5 }
  0xcb   : > { %v1256_v15 = vld [vmem:[%s5872_s29] sm:$0xff]  ;;  %1342 = vperm.xlu2 %5263, %v1260_v13   ;;  %1332 = vperm.xlu1 %5262, %v1258_v14   ;;  %v1259_v20 = vld [vmem:[%s5872_s29 + $0x18] sm:$0xff]  ;;  %v1257_v22 = vld [vmem:[%s5872_s29 + $0x8] sm:$0xff]  ;;  %p3918_p4 = scmp.lt.s32.totalorder (%p5541_p6), %s3917_s30, 64 }
  0xcc   : > { %1322 = vperm.xlu0 %5261, %v1256_v15   ;;  %1088 = vmatpush.bf16.msra.mxu0 %v4967_v11  ;;  %v5916_v26 = vld [vmem:[%s7310_s2 + $0x58] sm:$0xff]  ;;  %v1264_v28 = vld [vmem:[%s5872_s29 + $0x40] sm:$0xff]  ;;  %v4963_v30 = vld [vmem:[%s7310_s2 + $0x10] sm:$0xff] }
  0xcd   : > { %5051 = vmatpush.bf16.msra.mxu3 %v4967_v11  ;;  %2027 = vmatpush.bf16.msra.mxu1 %v5870_v12  ;;  %v1263_v29 = vld [vmem:[%s5872_s29 + $0x38] sm:$0xff]  ;;  %v1262_v31 = vld [vmem:[%s5872_s29 + $0x30] sm:$0xff]  ;;  %v5940_v33 = vld [vmem:[%s7310_s2 + $0xa0] sm:$0xff] }
  0xce   : > { %3031 = vmatpush.bf16.msra.mxu2 %v5907_v24  ;;  %v5934_v32 = vld [vmem:[%s7310_s2 + $0x50] sm:$0xff]  ;;  %v4962_v34 = vld [vmem:[%s7310_s2 + $0x8] sm:$0xff]  ;;  %v5956_v36 = vld [vmem:[%s7310_s2 + $0x98] sm:$0xff] }
  0xcf   : > { %v5950_v35 = vld [vmem:[%s7310_s2 + $0x48] sm:$0xff]  ;;  %v1267_v37 = vld [vmem:[%s5872_s29 + $0x58] sm:$0xff]  ;;  %v1266_v38 = vld [vmem:[%s5872_s29 + $0x50] sm:$0xff] }
  0xd0   : > { %1089 = vmatpush.bf16.msra.mxu0 %v4966_v16  ;;  %v4961_v39 = vld [vmem:[%s7310_s2] sm:$0xff]  ;;  %v1265_v40 = vld [vmem:[%s5872_s29 + $0x48] sm:$0xff]  ;;  %v5972_v42 = vld [vmem:[%s7310_s2 + $0x90] sm:$0xff] }
  0xd1   : > { %5052 = vmatpush.bf16.msra.mxu3 %v4966_v16  ;;  %2028 = vmatpush.bf16.msra.mxu1 %v5884_v17  ;;  %v5001_v41 = vld [vmem:[%s7310_s2 + $0x40] sm:$0xff]  ;;  %v5983_v46 = vld [vmem:[%s7310_s2 + $0x88] sm:$0xff]  ;;  %v1270_v47 = vld [vmem:[%s5872_s29 + $0x70] sm:$0xff] }
  0xd2   : > { %3032 = vmatpush.bf16.msra.mxu2 %v5922_v27  ;;  %v4929_v43 = vld [vmem:[%s5974_s10] sm:$0xff]  ;;  %v1269_v48 = vld [vmem:[%s5872_s29 + $0x68] sm:$0xff]  ;;  %v1271_v54 = vld [vmem:[%s5872_s29 + $0x78] sm:$0xff] }
  0xd3   : > { %1347 = vperm.xlu2 %5263, %v1261_v19   ;;  %1337 = vperm.xlu1 %5262, %v1259_v20   ;;  %v4953_v44 = vld [vmem:[%s5974_s10 + $0xc0] sm:$0xff]  ;;  %v1273_v52 = vld [vmem:[%s5872_s29 + $0x88] sm:$0xff]  ;;  %v1275_v59 = vld [vmem:[%s5872_s29 + $0x98] sm:$0xff] }
  0xd4   : > { %1327 = vperm.xlu0 %5261, %v1257_v22   ;;  %1090 = vmatpush.bf16.msra.mxu0 %v4965_v21  ;;  %v4969_v45 = vld [vmem:[%s5974_s10 + $0x100] sm:$0xff]  ;;  %v4930_v55 = vld [vmem:[%s5974_s10 + $0x8] sm:$0xff]  ;;  %v1274_v60 = vld [vmem:[%s5872_s29 + $0x90] sm:$0xff] }
  0xd5   : > { %5053 = vmatpush.bf16.msra.mxu3 %v4965_v21  ;;  %2029 = vmatpush.bf16.msra.mxu1 %v5902_v23  ;;  %v1268_v49 = vld [vmem:[%s5872_s29 + $0x60] sm:$0xff]  ;;  %v4954_v56 = vld [vmem:[%s5974_s10 + $0xc8] sm:$0xff]  ;;  %v1279_v62 = vld [vmem:[%s5872_s29 + $0xb8] sm:$0xff] }
  0xd6   : > { %3033 = vmatpush.bf16.msra.mxu2 %v5940_v33  ;;  %v5993_v50 = vld [vmem:[%s7310_s2 + $0x80] sm:$0xff]  ;;  %v4970_v57 = vld [vmem:[%s5974_s10 + $0x108] sm:$0xff]  ;;  %v1278_v63 = vld [vmem:[%s5872_s29 + $0xb0] sm:$0xff] }
  0xd7   : > { %v5009_v51 = vld [vmem:[%s5974_s10 + $0x200] sm:$0xff]  ;;  %v5010_v61 = vld [vmem:[%s5974_s10 + $0x208] sm:$0xff]  ;;  %v4931_v1 = vld [vmem:[%s5974_s10 + $0x10] sm:$0xff] }
  0xd8   : > { %1091 = vmatpush.bf16.msra.mxu0 %v4964_v25  ;;  %v1272_v53 = vld [vmem:[%s5872_s29 + $0x80] sm:$0xff]  ;;  %v1277_v0 = vld [vmem:[%s5872_s29 + $0xa8] sm:$0xff]  ;;  %v4955_v2 = vld [vmem:[%s5974_s10 + $0xd0] sm:$0xff] }
  0xd9   : > { %5054 = vmatpush.bf16.msra.mxu3 %v4964_v25  ;;  %2030 = vmatpush.bf16.msra.mxu1 %v5916_v26  ;;  %v1276_v58 = vld [vmem:[%s5872_s29 + $0xa0] sm:$0xff]  ;;  %v4971_v3 = vld [vmem:[%s5974_s10 + $0x110] sm:$0xff]  ;;  %v1281_v5 = vld [vmem:[%s5872_s29 + $0xc8] sm:$0xff] }
  0xda   : > { %3034 = vmatpush.bf16.msra.mxu2 %v5956_v36  ;;  %v1282_v4 = vld [vmem:[%s5872_s29 + $0xd0] sm:$0xff]  ;;  %v1280_v6 = vld [vmem:[%s5872_s29 + $0xc0] sm:$0xff]  ;;  %v1285_v8 = vld [vmem:[%s5872_s29 + $0xe8] sm:$0xff] }
  0xdb   : > { %1362 = vperm.xlu2 %5263, %v1264_v28   ;;  %1357 = vperm.xlu1 %5262, %v1263_v29   ;;  %v5011_v7 = vld [vmem:[%s5974_s10 + $0x210] sm:$0xff]  ;;  %v1283_v10 = vld [vmem:[%s5872_s29 + $0xd8] sm:$0xff]  ;;  %v1288_v14 = vld [vmem:[%s5872_s29 + $0x100] sm:$0xff] }
  0xdc   : > { %1352 = vperm.xlu0 %5261, %v1262_v31   ;;  %1092 = vmatpush.bf16.msra.mxu0 %v4963_v30  ;;  %v4932_v11 = vld [vmem:[%s5974_s10 + $0x18] sm:$0xff]  ;;  %v1286_v16 = vld [vmem:[%s5872_s29 + $0xf0] sm:$0xff]  ;;  %v1289_v20 = vld [vmem:[%s5872_s29 + $0x108] sm:$0xff] }
  0xdd   : > { %5055 = vmatpush.bf16.msra.mxu3 %v4963_v30  ;;  %2031 = vmatpush.bf16.msra.mxu1 %v5934_v32  ;;  %v4972_v13 = vld [vmem:[%s5974_s10 + $0x118] sm:$0xff]  ;;  %v1290_v19 = vld [vmem:[%s5872_s29 + $0x110] sm:$0xff]  ;;  %v4933_v21 = vld [vmem:[%s5974_s10 + $0x20] sm:$0xff] }
  0xde   : > { %3035 = vmatpush.bf16.msra.mxu2 %v5972_v42  ;;  %v1287_v15 = vld [vmem:[%s5872_s29 + $0xf8] sm:$0xff]  ;;  %v4957_v22 = vld [vmem:[%s5974_s10 + $0xe0] sm:$0xff]  ;;  %v1294_v25 = vld [vmem:[%s5872_s29 + $0x130] sm:$0xff] }
  0xdf   : > { %v5013_v29 = vld [vmem:[%s5974_s10 + $0x220] sm:$0xff]  ;;  %v1297_v30 = vld [vmem:[%s5872_s29 + $0x148] sm:$0xff] }
  0xe0   : > { %1093 = vmatpush.bf16.msra.mxu0 %v4962_v34  ;;  %v1296_v31 = vld [vmem:[%s5872_s29 + $0x140] sm:$0xff] }
  0xe1   : > { %5056 = vmatpush.bf16.msra.mxu3 %v4962_v34  ;;  %2032 = vmatpush.bf16.msra.mxu1 %v5950_v35  ;;  %v4958_v34 = vld [vmem:[%s5974_s10 + $0xe8] sm:$0xff] }
  0xe2   : > { %3036 = vmatpush.bf16.msra.mxu2 %v5983_v46 }
  0xe3   : > { %1377 = vperm.xlu2 %5263, %v1267_v37   ;;  %1372 = vperm.xlu1 %5262, %v1266_v38   ;;  %v1300_v37 = vld [vmem:[%s5872_s29 + $0x160] sm:$0xff]  ;;  %v1299_v38 = vld [vmem:[%s5872_s29 + $0x158] sm:$0xff] }
  0xe4   : > { %1367 = vperm.xlu0 %5261, %v1265_v40   ;;  %1094 = vmatpush.bf16.msra.mxu0 %v4961_v39 }
  0xe5   : > { %5057 = vmatpush.bf16.msra.mxu3 %v4961_v39  ;;  %2033 = vmatpush.bf16.msra.mxu1 %v5001_v41  ;;  %v1298_v39 = vld [vmem:[%s5872_s29 + $0x150] sm:$0xff] }
  0xe6   : > { %3037 = vmatpush.bf16.msra.mxu2 %v5993_v50 }
  0xe7   : > { %1095 = vmatmul.bf16.vlgmr.msra.gmra.mxu0 %v4929_v43 }
  0xe8   : > { %1215 = vmatmul.bf16.vlgmr.msra.gmra.mxu3 %v4953_v44  ;;  %2034 = vmatmul.bf16.vlgmr.msra.gmra.mxu1 %v4969_v45  ;;  %v1303_v44 = vld [vmem:[%s5872_s29 + $0x178] sm:$0xff]  ;;  %v1302_v45 = vld [vmem:[%s5872_s29 + $0x170] sm:$0xff] }
  0xe9   : > { %5058 = vmatpush.bf16.msrb.mxu3 %v5857_v9  ;;  %3038 = vmatmul.bf16.vlgmr.msra.gmra.mxu2 %v5009_v51  ;;  %v1284_v9 = vld [vmem:[%s5872_s29 + $0xe0] sm:$0xff] }
  0xeb   : > { %1392 = vperm.xlu2 %5263, %v1270_v47   ;;  %1387 = vperm.xlu1 %5262, %v1269_v48   ;;  %v4935_v47 = vld [vmem:[%s5974_s10 + $0x30] sm:$0xff] }
  0xec   : > { %1382 = vperm.xlu0 %5261, %v1268_v49   ;;  %v4959_v48 = vld [vmem:[%s5974_s10 + $0xf0] sm:$0xff] }
  0xed   : > { %5059 = vmatpush.bf16.msrb.mxu3 %v5870_v12  ;;  %v4956_v12 = vld [vmem:[%s5974_s10 + $0xd8] sm:$0xff]  ;;  %v4975_v49 = vld [vmem:[%s5974_s10 + $0x130] sm:$0xff] }
  0xf1   : > { %5060 = vmatpush.bf16.msrb.mxu3 %v5884_v17  ;;  %v5012_v17 = vld [vmem:[%s5974_s10 + $0x218] sm:$0xff] }
  0xf3   : > { %1407 = vperm.xlu2 %5263, %v1273_v52   ;;  %1402 = vperm.xlu1 %5262, %v1272_v53   ;;  %v1306_v53 = vld [vmem:[%s5872_s29 + $0x190] sm:$0xff] }
  0xf4   : > { %1397 = vperm.xlu0 %5261, %v1271_v54   ;;  %v1305_v54 = vld [vmem:[%s5872_s29 + $0x188] sm:$0xff] }
  0xf5   : > { %5061 = vmatpush.bf16.msrb.mxu3 %v5902_v23  ;;  %v4973_v23 = vld [vmem:[%s5974_s10 + $0x120] sm:$0xff] }
  0xf7   : > { %1100 = vmatmul.bf16.gmra.mxu0 %v4930_v55  ;;  %v1304_v55 = vld [vmem:[%s5872_s29 + $0x180] sm:$0xff] }
  0xf8   : > { %1220 = vmatmul.bf16.gmra.mxu3 %v4954_v56  ;;  %2039 = vmatmul.bf16.gmra.mxu1 %v4970_v57 }
  0xf9   : > { %5062 = vmatpush.bf16.msrb.mxu3 %v5916_v26  ;;  %3043 = vmatmul.bf16.gmra.mxu2 %v5010_v61  ;;  %v1293_v26 = vld [vmem:[%s5872_s29 + $0x128] sm:$0xff]  ;;  %v1308_v61 = vld [vmem:[%s5872_s29 + $0x1a0] sm:$0xff] }
  0xfb   : > { %1422 = vperm.xlu2 %5263, %v1276_v58   ;;  %1417 = vperm.xlu1 %5262, %v1275_v59   ;;  %v5015_v58 = vld [vmem:[%s5974_s10 + $0x230] sm:$0xff] }
  0xfc   : > { %1412 = vperm.xlu0 %5261, %v1274_v60   ;;  %v1309_v60 = vld [vmem:[%s5872_s29 + $0x1a8] sm:$0xff] }
  0xfd   : > { %5063 = vmatpush.bf16.msrb.mxu3 %v5934_v32  ;;  %v1295_v32 = vld [vmem:[%s5872_s29 + $0x138] sm:$0xff] }
 0x101   : > { %5064 = vmatpush.bf16.msrb.mxu3 %v5950_v35  ;;  %v4974_v35 = vld [vmem:[%s5974_s10 + $0x128] sm:$0xff] }
 0x103   : > { %1437 = vperm.xlu2 %5263, %v1279_v62   ;;  %1432 = vperm.xlu1 %5262, %v1278_v63   ;;  %v1307_v62 = vld [vmem:[%s5872_s29 + $0x198] sm:$0xff] }
 0x104   : > { %1427 = vperm.xlu0 %5261, %v1277_v0   ;;  %v4936_v63 = vld [vmem:[%s5974_s10 + $0x38] sm:$0xff] }
 0x105   : > { %5065 = vmatpush.bf16.msrb.mxu3 %v5001_v41  ;;  %v4960_v0 = vld [vmem:[%s5974_s10 + $0xf8] sm:$0xff] }
 0x107   : > { %1105 = vmatmul.bf16.gmra.mxu0 %v4931_v1  ;;  %v4976_v1 = vld [vmem:[%s5974_s10 + $0x138] sm:$0xff] }
 0x108   : > { %1225 = vmatmul.bf16.gmra.mxu3 %v4955_v2  ;;  %2044 = vmatmul.bf16.gmra.mxu1 %v4971_v3 }
 0x109   : > { %5066 = vmatpush.bf16.msra.mxu3 %v5889_v18  ;;  %3048 = vmatmul.bf16.gmra.mxu2 %v5011_v7  ;;  %v1291_v18 = vld [vmem:[%s5872_s29 + $0x118] sm:$0xff]  ;;  %v1310_v7 = vld [vmem:[%s5872_s29 + $0x1b0] sm:$0xff] }
 0x10b   : > { %1452 = vperm.xlu2 %5263, %v1282_v4   ;;  %1447 = vperm.xlu1 %5262, %v1281_v5   ;;  %v1312_v5 = vld [vmem:[%s5872_s29 + $0x1c0] sm:$0xff] }
 0x10c   : > { %1442 = vperm.xlu0 %5261, %v1280_v6   ;;  %v1311_v6 = vld [vmem:[%s5872_s29 + $0x1b8] sm:$0xff] }
 0x10d   : > { %5067 = vmatpush.bf16.msra.mxu3 %v5907_v24 }
 0x111   : > { %5068 = vmatpush.bf16.msra.mxu3 %v5922_v27  ;;  %v1292_v27 = vld [vmem:[%s5872_s29 + $0x120] sm:$0xff] }
 0x113   : > { %1467 = vperm.xlu2 %5263, %v1285_v8   ;;  %1462 = vperm.xlu1 %5262, %v1284_v9  }
 0x114   : > { %1457 = vperm.xlu0 %5261, %v1283_v10   ;;  %v5016_v10 = vld [vmem:[%s5974_s10 + $0x238] sm:$0xff] }
 0x115   : > { %5069 = vmatpush.bf16.msra.mxu3 %v5940_v33  ;;  %v4934_v33 = vld [vmem:[%s5974_s10 + $0x28] sm:$0xff] }
 0x117   : > { %1110 = vmatmul.bf16.gmra.mxu0 %v4932_v11 }
 0x118   : > { %1230 = vmatmul.bf16.gmra.mxu3 %v4956_v12  ;;  %2049 = vmatmul.bf16.gmra.mxu1 %v4972_v13  ;;  %v1315_v12 = vld [vmem:[%s5872_s29 + $0x1d8] sm:$0xff]  ;;  %v1314_v13 = vld [vmem:[%s5872_s29 + $0x1d0] sm:$0xff] }
 0x119   : > { %5070 = vmatpush.bf16.msra.mxu3 %v5956_v36  ;;  %3053 = vmatmul.bf16.gmra.mxu2 %v5012_v17  ;;  %v4977_v17 = vld [vmem:[%s5974_s10 + $0x140] sm:$0xff] }
 0x11b   : > { %1482 = vperm.xlu2 %5263, %v1288_v14   ;;  %1477 = vperm.xlu1 %5262, %v1287_v15   ;;  %v1313_v14 = vld [vmem:[%s5872_s29 + $0x1c8] sm:$0xff]  ;;  %v4937_v15 = vld [vmem:[%s5974_s10 + $0x40] sm:$0xff] }
 0x11c   : > { %1472 = vperm.xlu0 %5261, %v1286_v16  }
 0x11d   : > { %5071 = vmatpush.bf16.msra.mxu3 %v5972_v42  ;;  %v5014_v42 = vld [vmem:[%s5974_s10 + $0x228] sm:$0xff] }
 0x121   : > { %5072 = vmatpush.bf16.msra.mxu3 %v5983_v46  ;;  %v1301_v46 = vld [vmem:[%s5872_s29 + $0x168] sm:$0xff] }
 0x123   : > { %1497 = vperm.xlu2 %5263, %v1291_v18   ;;  %1492 = vperm.xlu1 %5262, %v1290_v19   ;;  %v4993_v18 = vld [vmem:[%s5974_s10 + $0x1c0] sm:$0xff] }
 0x124   : > { %1487 = vperm.xlu0 %5261, %v1289_v20  }
 0x125   : > { %5073 = vmatpush.bf16.msra.mxu3 %v5993_v50  ;;  %v6047_v24 = vpop.permute.xlu2 %1342 }
 0x127   : > { %1115 = vmatmul.bf16.gmra.mxu0 %v4933_v21 }
 0x128   : > { %1235 = vmatmul.bf16.gmra.mxu3 %v4957_v22  ;;  %2054 = vmatmul.bf16.gmra.mxu1 %v4973_v23  ;;  %v1318_v23 = vld [vmem:[%s5872_s29 + $0x1f0] sm:$0xff] }
 0x129   : > { %3058 = vmatmul.bf16.gmra.mxu2 %v5013_v29 }
 0x12b   : > { %1512 = vperm.xlu2 %5263, %v1294_v25   ;;  %1507 = vperm.xlu1 %5262, %v1293_v26   ;;  %v1317_v25 = vld [vmem:[%s5872_s29 + $0x1e8] sm:$0xff]  ;;  %v1316_v26 = vld [vmem:[%s5872_s29 + $0x1e0] sm:$0xff] }
 0x12c   : > { %1502 = vperm.xlu0 %5261, %v1292_v27  }
 0x12d   : > { %v6052_v28 = vpop.permute.xlu2 %1347 }
 0x133   : > { %1527 = vperm.xlu2 %5263, %v1297_v30   ;;  %1522 = vperm.xlu1 %5262, %v1296_v31  }
 0x134   : > { %1517 = vperm.xlu0 %5261, %v1295_v32   ;;  %v5017_v32 = vld [vmem:[%s5974_s10 + $0x240] sm:$0xff] }
 0x135   : > { %v6061_v36 = vpop.permute.xlu2 %1362 }
 0x137   : > { %1120 = vmatmul.bf16.gmra.mxu0 %v4934_v33 }
 0x138   : > { %1240 = vmatmul.bf16.gmra.mxu3 %v4958_v34  ;;  %2059 = vmatmul.bf16.gmra.mxu1 %v4974_v35  ;;  %v4551_v35 = vld [vmem:[%s5872_s29 + $0x208] sm:$0xff] }
 0x139   : > { %3063 = vmatmul.bf16.gmra.mxu2 %v5014_v42  ;;  %v4938_v42 = vld [vmem:[%s5974_s10 + $0x48] sm:$0xff] }
 0x13b   : > { %1542 = vperm.xlu2 %5263, %v1300_v37   ;;  %1537 = vperm.xlu1 %5262, %v1299_v38   ;;  %v4550_v37 = vld [vmem:[%s5872_s29 + $0x200] sm:$0xff]  ;;  %v1319_v38 = vld [vmem:[%s5872_s29 + $0x1f8] sm:$0xff] }
 0x13c   : > { %1532 = vperm.xlu0 %5261, %v1298_v39  }
 0x13d   : > { %v6066_v40 = vpop.permute.xlu2 %1377  ;;  %v6068_v41 = vpop.permute.xlu1 %1332 }
 0x13e   : > { %v6071_v43 = vpop.permute.xlu0 %1322 }
 0x143   : > { %1557 = vperm.xlu2 %5263, %v1303_v44   ;;  %1552 = vperm.xlu1 %5262, %v1302_v45   ;;  %v4978_v45 = vld [vmem:[%s5974_s10 + $0x148] sm:$0xff] }
 0x144   : > { %1547 = vperm.xlu0 %5261, %v1301_v46  }
 0x145   : > { %v6079_v50 = vpop.permute.xlu2 %1392  ;;  %v6081_v51 = vpop.permute.xlu1 %1337 }
 0x146   : > { %v6083_v52 = vpop.permute.xlu0 %1327 }
 0x147   : > { %1125 = vmatmul.bf16.gmra.mxu0 %v4935_v47  ;;  %v4994_v47 = vld [vmem:[%s5974_s10 + $0x1c8] sm:$0xff] }
 0x148   : > { %1245 = vmatmul.bf16.gmra.mxu3 %v4959_v48  ;;  %2064 = vmatmul.bf16.gmra.mxu1 %v4975_v49 }
 0x149   : > { %3068 = vmatmul.bf16.gmra.mxu2 %v5015_v58  ;;  %v4553_v58 = vld [vmem:[%s5872_s29 + $0x218] sm:$0xff] }
 0x14b   : > { %1572 = vperm.xlu2 %5263, %v1306_v53   ;;  %1567 = vperm.xlu1 %5262, %v1305_v54  }
 0x14c   : > { %1562 = vperm.xlu0 %5261, %v1304_v55   ;;  %v4554_v55 = vld [vmem:[%s5872_s29 + $0x220] sm:$0xff] }
 0x14d   : > { %v6088_v56 = vpop.permute.xlu2 %1407  ;;  %v6090_v57 = vpop.permute.xlu1 %1357 }
 0x14e   : > { %7328 = vst [vmem:[#allocation7_spill] sm:$0xff] %v6088_v56  ;;  %v6093_v59 = vpop.permute.xlu0 %1352  ;;  %v4586_v56 = vld [vmem:[%s5872_s29 + $0x320] sm:$0xff] }
 0x153   : > { %1587 = vperm.xlu2 %5263, %v1309_v60   ;;  %1582 = vperm.xlu1 %5262, %v1308_v61   ;;  %v4552_v60 = vld [vmem:[%s5872_s29 + $0x210] sm:$0xff] }
 0x154   : > { %1577 = vperm.xlu0 %5261, %v1307_v62  }
 0x155   : > { %v6101_v2 = vpop.permute.xlu2 %1422  ;;  %v6103_v3 = vpop.permute.xlu1 %1372 }
 0x156   : > { %7329 = vst [vmem:[#allocation8_spill] sm:$0xff] %v6101_v2  ;;  %v6105_v4 = vpop.permute.xlu0 %1367 }
 0x157   : > { %1130 = vmatmul.bf16.gmra.mxu0 %v4936_v63 }
 0x158   : > { %1250 = vmatmul.bf16.gmra.mxu3 %v4960_v0  ;;  %2069 = vmatmul.bf16.gmra.mxu1 %v4976_v1 }
 0x159   : > { %3073 = vmatmul.bf16.gmra.mxu2 %v5016_v10  ;;  %v4557_v10 = vld [vmem:[%s5872_s29 + $0x238] sm:$0xff] }
 0x15b   : > { %1602 = vperm.xlu2 %5263, %v1312_v5   ;;  %1597 = vperm.xlu1 %5262, %v1311_v6   ;;  %v5018_v5 = vld [vmem:[%s5974_s10 + $0x248] sm:$0xff] }
 0x15c   : > { %1592 = vperm.xlu0 %5261, %v1310_v7  }
 0x15d   : > { %v6110_v8 = vpop.permute.xlu2 %1437  ;;  %v6112_v9 = vpop.permute.xlu1 %1387 }
 0x15e   : > { %7330 = vst [vmem:[#allocation9_spill] sm:$0xff] %v6110_v8  ;;  %v6115_v11 = vpop.permute.xlu0 %1382 }
 0x163   : > { %1617 = vperm.xlu2 %5263, %v1315_v12   ;;  %1612 = vperm.xlu1 %5262, %v1314_v13   ;;  %v4556_v12 = vld [vmem:[%s5872_s29 + $0x230] sm:$0xff]  ;;  %v4555_v13 = vld [vmem:[%s5872_s29 + $0x228] sm:$0xff] }
 0x164   : > { %1607 = vperm.xlu0 %5261, %v1313_v14   ;;  %v6121_v16 = vpop.f32.mrf.mxu0 }
 0x165   : > { %v6125_v19 = vpop.permute.xlu2 %1452  ;;  %v6127_v20 = vpop.permute.xlu1 %1402 }
 0x166   : > { %7331 = vst [vmem:[#allocation10_spill] sm:$0xff] %v6125_v19  ;;  %v6129_v21 = vpop.permute.xlu0 %1397  ;;  %v6131_v22 = vpop.f32.mrf.mxu1 }
 0x167   : > { %1135 = vmatmul.bf16.gmra.mxu0 %v4937_v15  ;;  %v4939_v15 = vld [vmem:[%s5974_s10 + $0x50] sm:$0xff] }
 0x168   : > { %2074 = vmatmul.bf16.gmra.mxu1 %v4977_v17  ;;  %2154 = vmatmul.bf16.vlgmr.msrb.gmra.mxu3 %v4993_v18  ;;  %v4979_v18 = vld [vmem:[%s5974_s10 + $0x150] sm:$0xff] }
 0x169   : > { %3078 = vmatmul.bf16.gmra.mxu2 %v5017_v32 }
 0x16b   : > { %1632 = vperm.xlu2 %5263, %v1318_v23   ;;  %1627 = vperm.xlu1 %5262, %v1317_v25   ;;  %v6136_v27 = vpop.f32.mrf.mxu3  ;;  %v4995_v25 = vld [vmem:[%s5974_s10 + $0x1d0] sm:$0xff] }
 0x16c   : > { %7332 = vst [vmem:[#allocation11_spill] sm:$0xff] %v6136_v27  ;;  %1622 = vperm.xlu0 %5261, %v1316_v26   ;;  %v6138_v29 = vpop.f32.mrf.mxu0  ;;  %v6158_v46 = vpop.f32.mrf.mxu2  ;;  %v4567_v27 = vld [vmem:[%s5872_s29 + $0x288] sm:$0xff] }
 0x16d   : > { %v6140_v30 = vpop.permute.xlu2 %1467  ;;  %v6142_v31 = vpop.permute.xlu1 %1417  ;;  %7336 = vst [vmem:[#allocation15_spill] sm:$0xff] %v6158_v46  ;;  %v5020_v46 = vld [vmem:[%s5974_s10 + $0x258] sm:$0xff] }
 0x16e   : > { %7333 = vst [vmem:[#allocation12_spill] sm:$0xff] %v6140_v30  ;;  %v6145_v33 = vpop.permute.xlu0 %1412  ;;  %v6147_v34 = vpop.f32.mrf.mxu1 }
 0x16f   : > { %7334 = vst [vmem:[#allocation13_spill] sm:$0xff] %v6145_v33  ;;  %v4585_v33 = vld [vmem:[%s5872_s29 + $0x318] sm:$0xff] }
 0x173   : > { %2267 = vperm.xlu2 %5263, %v4551_v35   ;;  %2262 = vperm.xlu1 %5262, %v4550_v37   ;;  %v6152_v39 = vpop.f32.mrf.mxu3 }
 0x174   : > { %7335 = vst [vmem:[#allocation14_spill] sm:$0xff] %v6152_v39  ;;  %1637 = vperm.xlu0 %5261, %v1319_v38   ;;  %v6155_v44 = vpop.f32.mrf.mxu0  ;;  %v6176_v63 = vpop.f32.mrf.mxu2  ;;  %v4560_v38 = vld [vmem:[%s5872_s29 + $0x250] sm:$0xff]  ;;  %v4571_v39 = vld [vmem:[%s5872_s29 + $0x2a8] sm:$0xff] }
 0x175   : > { %v6161_v48 = vpop.permute.xlu2 %1482  ;;  %v6163_v49 = vpop.permute.xlu1 %1432  ;;  %7339 = vst [vmem:[#allocation18_spill] sm:$0xff] %v6176_v63  ;;  %v4996_v63 = vld [vmem:[%s5974_s10 + $0x1d8] sm:$0xff] }
 0x176   : > { %7337 = vst [vmem:[#allocation16_spill] sm:$0xff] %v6161_v48  ;;  %v6165_v53 = vpop.permute.xlu0 %1427  ;;  %v6167_v54 = vpop.f32.mrf.mxu1 }
 0x177   : > { %7338 = vst [vmem:[#allocation17_spill] sm:$0xff] %v6165_v53  ;;  %1140 = vmatmul.bf16.gmra.mxu0 %v4938_v42  ;;  %v4559_v42 = vld [vmem:[%s5872_s29 + $0x248] sm:$0xff]  ;;  %v4582_v53 = vld [vmem:[%s5872_s29 + $0x300] sm:$0xff] }
 0x178   : > { %2079 = vmatmul.bf16.gmra.mxu1 %v4978_v45  ;;  %2159 = vmatmul.bf16.gmra.mxu3 %v4994_v47  ;;  %v4558_v45 = vld [vmem:[%s5872_s29 + $0x240] sm:$0xff] }
 0x179   : > { %3083 = vmatmul.bf16.gmra.mxu2 %v5018_v5 }
 0x17b   : > { %2282 = vperm.xlu2 %5263, %v4554_v55   ;;  %2277 = vperm.xlu1 %5262, %v4553_v58   ;;  %v6172_v61 = vpop.f32.mrf.mxu3 }
 0x17c   : > { %2272 = vperm.xlu0 %5261, %v4552_v60   ;;  %v6174_v62 = vpop.f32.mrf.mxu0  ;;  %v6196_v23 = vpop.f32.mrf.mxu2 }
 0x17d   : > { %v6178_v0 = vpop.permute.xlu2 %1497  ;;  %v6180_v1 = vpop.permute.xlu1 %1447  ;;  %7343 = vst [vmem:[#allocation22_spill] sm:$0xff] %v6196_v23 }
 0x17e   : > { %7340 = vst [vmem:[#allocation19_spill] sm:$0xff] %v6178_v0  ;;  %v6183_v6 = vpop.permute.xlu0 %1442  ;;  %v6185_v7 = vpop.f32.mrf.mxu1 }
 0x17f   : > { %7341 = vst [vmem:[#allocation20_spill] sm:$0xff] %v6180_v1 }
 0x180   : > { %7342 = vst [vmem:[#allocation21_spill] sm:$0xff] %v6183_v6 }
 0x183   : > { %2297 = vperm.xlu2 %5263, %v4557_v10   ;;  %2292 = vperm.xlu1 %5262, %v4556_v12   ;;  %v6190_v14 = vpop.f32.mrf.mxu3  ;;  %v5019_v10 = vld [vmem:[%s5974_s10 + $0x250] sm:$0xff] }
 0x184   : > { %2287 = vperm.xlu0 %5261, %v4555_v13   ;;  %v6193_v17 = vpop.f32.mrf.mxu0  ;;  %v6214_v58 = vpop.f32.mrf.mxu2 }
 0x185   : > { %v6199_v26 = vpop.permute.xlu2 %1512  ;;  %v6201_v32 = vpop.permute.xlu1 %1462  ;;  %7347 = vst [vmem:[#allocation26_spill] sm:$0xff] %v6214_v58 }
 0x186   : > { %7344 = vst [vmem:[#allocation23_spill] sm:$0xff] %v6199_v26  ;;  %v6203_v35 = vpop.permute.xlu0 %1457  ;;  %v6205_v37 = vpop.f32.mrf.mxu1 }
 0x187   : > { %7345 = vst [vmem:[#allocation24_spill] sm:$0xff] %v6201_v32  ;;  %1145 = vmatmul.bf16.gmra.mxu0 %v4939_v15  ;;  %v4563_v15 = vld [vmem:[%s5872_s29 + $0x268] sm:$0xff] }
 0x188   : > { %7346 = vst [vmem:[#allocation25_spill] sm:$0xff] %v6203_v35  ;;  %2084 = vmatmul.bf16.gmra.mxu1 %v4979_v18  ;;  %2164 = vmatmul.bf16.gmra.mxu3 %v4995_v25  ;;  %v4562_v18 = vld [vmem:[%s5872_s29 + $0x260] sm:$0xff]  ;;  %v4561_v25 = vld [vmem:[%s5872_s29 + $0x258] sm:$0xff]  ;;  %v4942_v32 = vld [vmem:[%s5974_s10 + $0x68] sm:$0xff] }
 0x189   : > { %3088 = vmatmul.bf16.gmra.mxu2 %v5019_v10 }
 0x18b   : > { %2312 = vperm.xlu2 %5263, %v4560_v38   ;;  %2307 = vperm.xlu1 %5262, %v4559_v42   ;;  %v6210_v47 = vpop.f32.mrf.mxu3  ;;  %v4940_v42 = vld [vmem:[%s5974_s10 + $0x58] sm:$0xff] }
 0x18c   : > { %2302 = vperm.xlu0 %5261, %v4558_v45   ;;  %v6212_v55 = vpop.f32.mrf.mxu0  ;;  %v6232_v26 = vpop.f32.mrf.mxu2 }
 0x18d   : > { %v6216_v60 = vpop.permute.xlu2 %1527  ;;  %v6218_v5 = vpop.permute.xlu1 %1477  ;;  %7351 = vst [vmem:[#allocation30_spill] sm:$0xff] %v6232_v26 }
 0x18e   : > { %7348 = vst [vmem:[#allocation27_spill] sm:$0xff] %v6216_v60  ;;  %v6221_v12 = vpop.permute.xlu0 %1472  ;;  %v6223_v13 = vpop.f32.mrf.mxu1  ;;  %v4980_v60 = vld [vmem:[%s5974_s10 + $0x158] sm:$0xff] }
 0x18f   : > { %7349 = vst [vmem:[#allocation28_spill] sm:$0xff] %v6218_v5 }
 0x190   : > { %7350 = vst [vmem:[#allocation29_spill] sm:$0xff] %v6221_v12 }
 0x193   : > { %2327 = vperm.xlu2 %5263, %v4563_v15   ;;  %2322 = vperm.xlu1 %5262, %v4562_v18   ;;  %v1228_v38 = vpop.f32.mrf.mxu3  ;;  %v4566_v15 = vld [vmem:[%s5872_s29 + $0x280] sm:$0xff]  ;;  %v4565_v18 = vld [vmem:[%s5872_s29 + $0x278] sm:$0xff] }
 0x194   : > { %2317 = vperm.xlu0 %5261, %v4561_v25   ;;  %v6229_v45 = vpop.f32.mrf.mxu0  ;;  %v4564_v25 = vld [vmem:[%s5872_s29 + $0x270] sm:$0xff] }
 0x195   : > { %v6235_v23 = vpop.permute.xlu2 %1542  ;;  %v6237_v58 = vpop.permute.xlu1 %1492 }
 0x196   : > { %7352 = vst [vmem:[#allocation31_spill] sm:$0xff] %v6235_v23  ;;  %v6239_v0 = vpop.permute.xlu0 %1487  ;;  %v6241_v10 = vpop.f32.mrf.mxu1 }
 0x197   : > { %7353 = vst [vmem:[#allocation32_spill] sm:$0xff] %v6237_v58  ;;  %1150 = vmatmul.bf16.gmra.mxu0 %v4940_v42 }
 0x198   : > { %7354 = vst [vmem:[#allocation33_spill] sm:$0xff] %v6239_v0  ;;  %2089 = vmatmul.bf16.gmra.mxu1 %v4980_v60  ;;  %2169 = vmatmul.bf16.gmra.mxu3 %v4996_v63  ;;  %v6250_v0 = vpop.f32.mrf.mxu2 }
 0x199   : > { %7355 = vst [vmem:[#allocation34_spill] sm:$0xff] %v6250_v0  ;;  %3093 = vmatmul.bf16.gmra.mxu2 %v5020_v46  ;;  %v4941_v0 = vld [vmem:[%s5974_s10 + $0x60] sm:$0xff] }
 0x19b   : > { %2342 = vperm.xlu2 %5263, %v4566_v15   ;;  %2337 = vperm.xlu1 %5262, %v4565_v18   ;;  %v6246_v26 = vpop.f32.mrf.mxu3  ;;  %v4569_v15 = vld [vmem:[%s5872_s29 + $0x298] sm:$0xff]  ;;  %v4568_v18 = vld [vmem:[%s5872_s29 + $0x290] sm:$0xff] }
 0x19c   : > { %2332 = vperm.xlu0 %5261, %v4564_v25   ;;  %v6248_v23 = vpop.f32.mrf.mxu0 }
 0x19d   : > { %v6252_v42 = vpop.permute.xlu2 %1557  ;;  %v6254_v60 = vpop.permute.xlu1 %1507 }
 0x19e   : > { %7356 = vst [vmem:[#allocation35_spill] sm:$0xff] %v6252_v42  ;;  %v6257_v58 = vpop.permute.xlu0 %1502  ;;  %v6259_v63 = vpop.f32.mrf.mxu1 }
 0x19f   : > { %7357 = vst [vmem:[#allocation36_spill] sm:$0xff] %v6254_v60  ;;  %v4981_v60 = vld [vmem:[%s5974_s10 + $0x160] sm:$0xff] }
 0x1a0   : > { %7358 = vst [vmem:[#allocation37_spill] sm:$0xff] %v6257_v58  ;;  %v6270_v48 = vpop.f32.mrf.mxu2  ;;  %v4997_v58 = vld [vmem:[%s5974_s10 + $0x1e0] sm:$0xff] }
 0x1a1   : > { %7359 = vst [vmem:[#allocation38_spill] sm:$0xff] %v6270_v48  ;;  %v4570_v48 = vld [vmem:[%s5872_s29 + $0x2a0] sm:$0xff] }
 0x1a3   : > { %2357 = vperm.xlu2 %5263, %v4569_v15   ;;  %2352 = vperm.xlu1 %5262, %v4568_v18   ;;  %v6264_v25 = vpop.f32.mrf.mxu3 }
 0x1a4   : > { %2347 = vperm.xlu0 %5261, %v4567_v27   ;;  %v6267_v42 = vpop.f32.mrf.mxu0  ;;  %v4572_v27 = vld [vmem:[%s5872_s29 + $0x2b0] sm:$0xff] }
 0x1a5   : > { %v1573_v5 = vpop.permute.xlu2 %1572  ;;  %v6273_v12 = vpop.permute.xlu1 %1522 }
 0x1a6   : > { %7360 = vst [vmem:[#allocation39_spill] sm:$0xff] %v6273_v12  ;;  %v6276_v46 = vmul.f32 %v1573_v5, %v6172_v61  ;;  %v6278_v15 = vpop.permute.xlu0 %1517  ;;  %v6280_v18 = vpop.f32.mrf.mxu1 }
 0x1a7   : > { %7362 = vst [vmem:[#allocation41_spill] sm:$0xff] %v6278_v15  ;;  %1155 = vmatmul.bf16.gmra.mxu0 %v4941_v0 }
 0x1a8   : > { %7361 = vst [vmem:[#allocation40_spill] sm:$0xff] %v6276_v46  ;;  %2094 = vmatmul.bf16.gmra.mxu1 %v4981_v60  ;;  %2174 = vmatmul.bf16.gmra.mxu3 %v4997_v58  ;;  %v6287_v5 = vpop.f32.mrf.mxu2  ;;  %v5021_v60 = vld [vmem:[%s5974_s10 + $0x260] sm:$0xff] }
 0x1a9   : > { %7363 = vst [vmem:[#allocation42_spill] sm:$0xff] %v6287_v5  ;;  %3098 = vmatmul.bf16.gmra.mxu2 %v5021_v60 }
 0x1ab   : > { %2372 = vperm.xlu2 %5263, %v4572_v27   ;;  %2367 = vperm.xlu1 %5262, %v4571_v39   ;;  %v1236_v12 = vpop.f32.mrf.mxu3  ;;  %v4575_v39 = vld [vmem:[%s5872_s29 + $0x2c8] sm:$0xff]  ;;  %v4574_v27 = vld [vmem:[%s5872_s29 + $0x2c0] sm:$0xff] }
 0x1ac   : > { %2362 = vperm.xlu0 %5261, %v4570_v48   ;;  %v6285_v61 = vpop.f32.mrf.mxu0  ;;  %v4573_v48 = vld [vmem:[%s5872_s29 + $0x2b8] sm:$0xff] }
 0x1ad   : > { %v1588_v15 = vpop.permute.xlu2 %1587  ;;  %v6289_v0 = vpop.permute.xlu1 %1537 }
 0x1ae   : > { %7364 = vst [vmem:[#allocation43_spill] sm:$0xff] %v6289_v0  ;;  %v6292_v46 = vmul.f32 %v1588_v15, %v1228_v38  ;;  %v6294_v58 = vpop.permute.xlu0 %1532  ;;  %v6296_v30 = vpop.f32.mrf.mxu1  ;;  %v4982_v38 = vld [vmem:[%s5974_s10 + $0x168] sm:$0xff] }
 0x1af   : > { %7366 = vst [vmem:[#allocation45_spill] sm:$0xff] %v6294_v58  ;;  %v4998_v58 = vld [vmem:[%s5974_s10 + $0x1e8] sm:$0xff] }
 0x1b0   : > { %7365 = vst [vmem:[#allocation44_spill] sm:$0xff] %v6292_v46  ;;  %v6307_v15 = vpop.f32.mrf.mxu2 }
 0x1b1   : > { %7368 = vst [vmem:[#allocation47_spill] sm:$0xff] %v6307_v15  ;;  %v4576_v15 = vld [vmem:[%s5872_s29 + $0x2d0] sm:$0xff] }
 0x1b3   : > { %2387 = vperm.xlu2 %5263, %v4575_v39   ;;  %2382 = vperm.xlu1 %5262, %v4574_v27   ;;  %v6301_v5 = vpop.f32.mrf.mxu3  ;;  %v4578_v27 = vld [vmem:[%s5872_s29 + $0x2e0] sm:$0xff] }
 0x1b4   : > { %7367 = vst [vmem:[#allocation46_spill] sm:$0xff] %v6301_v5  ;;  %2377 = vperm.xlu0 %5261, %v4573_v48   ;;  %v6304_v0 = vpop.f32.mrf.mxu0  ;;  %v4577_v48 = vld [vmem:[%s5872_s29 + $0x2d8] sm:$0xff] }
 0x1b5   : > { %v1603_v46 = vpop.permute.xlu2 %1602  ;;  %v6310_v35 = vpop.permute.xlu1 %1552 }
 0x1b6   : > { %7369 = vst [vmem:[#allocation48_spill] sm:$0xff] %v6310_v35  ;;  %v6312_v19 = vmul.f32 %v1603_v46, %v1236_v12  ;;  %v6314_v60 = vpop.permute.xlu0 %1547  ;;  %v6316_v39 = vpop.f32.mrf.mxu1  ;;  %v5022_v35 = vld [vmem:[%s5974_s10 + $0x268] sm:$0xff] }
 0x1b7   : > { %7371 = vst [vmem:[#allocation50_spill] sm:$0xff] %v6314_v60  ;;  %1160 = vmatmul.bf16.gmra.mxu0 %v4942_v32 }
 0x1b8   : > { %7370 = vst [vmem:[#allocation49_spill] sm:$0xff] %v6312_v19  ;;  %2099 = vmatmul.bf16.gmra.mxu1 %v4982_v38  ;;  %2179 = vmatmul.bf16.gmra.mxu3 %v4998_v58  ;;  %v6325_v46 = vpop.f32.mrf.mxu2  ;;  %v4579_v19 = vld [vmem:[%s5872_s29 + $0x2e8] sm:$0xff] }
 0x1b9   : > { %7372 = vst [vmem:[#allocation51_spill] sm:$0xff] %v6325_v46  ;;  %3103 = vmatmul.bf16.gmra.mxu2 %v5022_v35  ;;  %v4943_v46 = vld [vmem:[%s5974_s10 + $0x70] sm:$0xff] }
 0x1bb   : > { %2402 = vperm.xlu2 %5263, %v4578_v27   ;;  %2397 = vperm.xlu1 %5262, %v4577_v48   ;;  %v6321_v5 = vpop.f32.mrf.mxu3  ;;  %v4581_v27 = vld [vmem:[%s5872_s29 + $0x2f8] sm:$0xff]  ;;  %v4580_v48 = vld [vmem:[%s5872_s29 + $0x2f0] sm:$0xff] }
 0x1bc   : > { %2392 = vperm.xlu0 %5261, %v4576_v15   ;;  %v6323_v12 = vpop.f32.mrf.mxu0 }
 0x1bd   : > { %v6327_v32 = vpop.permute.xlu2 %1617  ;;  %v6329_v38 = vpop.permute.xlu1 %1567 }
 0x1be   : > { %7373 = vst [vmem:[#allocation52_spill] sm:$0xff] %v6327_v32  ;;  %v6332_v60 = vpop.permute.xlu0 %1562  ;;  %v6334_v58 = vpop.f32.mrf.mxu1 }
 0x1bf   : > { %7374 = vst [vmem:[#allocation53_spill] sm:$0xff] %v6329_v38  ;;  %v4983_v38 = vld [vmem:[%s5974_s10 + $0x170] sm:$0xff] }
 0x1c0   : > { %7375 = vst [vmem:[#allocation54_spill] sm:$0xff] %v6332_v60  ;;  %v6345_v1 = vpop.f32.mrf.mxu2  ;;  %v4999_v60 = vld [vmem:[%s5974_s10 + $0x1f0] sm:$0xff] }
 0x1c1   : > { %7377 = vst [vmem:[#allocation56_spill] sm:$0xff] %v6345_v1 }
 0x1c3   : > { %2417 = vperm.xlu2 %5263, %v4581_v27   ;;  %2412 = vperm.xlu1 %5262, %v4580_v48   ;;  %v6339_v15 = vpop.f32.mrf.mxu3 }
 0x1c4   : > { %7376 = vst [vmem:[#allocation55_spill] sm:$0xff] %v6339_v15  ;;  %2407 = vperm.xlu0 %5261, %v4579_v19   ;;  %v6342_v32 = vpop.f32.mrf.mxu0  ;;  %v4584_v19 = vld [vmem:[%s5872_s29 + $0x310] sm:$0xff]  ;;  %v4583_v15 = vld [vmem:[%s5872_s29 + $0x308] sm:$0xff] }
 0x1c5   : > { %v1633_v8 = vpop.permute.xlu2 %1632  ;;  %v1583_v6 = vpop.permute.xlu1 %1582 }
 0x1c6   : > { %v6349_v2 = vmul.f32 %v1583_v6, %v6210_v47  ;;  %v1578_v35 = vpop.permute.xlu0 %1577  ;;  %v6351_v27 = vpop.f32.mrf.mxu1 }
 0x1c7   : > { %v6354_v48 = vmul.f32 %v1578_v35, %v6190_v14  ;;  %1165 = vmatmul.bf16.gmra.mxu0 %v4943_v46  ;;  %v5023_v46 = vld [vmem:[%s5974_s10 + $0x270] sm:$0xff] }
 0x1c8   : > { %7378 = vst [vmem:[#allocation57_spill] sm:$0xff] %v6349_v2  ;;  %2104 = vmatmul.bf16.gmra.mxu1 %v4983_v38  ;;  %2184 = vmatmul.bf16.gmra.mxu3 %v4999_v60  ;;  %v6361_v47 = vpop.f32.mrf.mxu2  ;;  %v1641_v38 = vmul.f32 %v6083_v52, %v6138_v29 }
 0x1c9   : > { %7379 = vst [vmem:[#allocation58_spill] sm:$0xff] %v6354_v48  ;;  %v4587_v48 = vld [vmem:[%s5872_s29 + $0x328] sm:$0xff]  ;;  %3108 = vmatmul.bf16.gmra.mxu2 %v5023_v46 }
 0x1ca   : > { %7380 = vst [vmem:[#allocation59_spill] sm:$0xff] %v6361_v47 }
 0x1cb   : > { %2432 = vperm.xlu2 %5263, %v4584_v19   ;;  %2427 = vperm.xlu1 %5262, %v4583_v15   ;;  %v1246_v1 = vpop.f32.mrf.mxu3 }
 0x1cc   : > { %2422 = vperm.xlu0 %5261, %v4582_v53   ;;  %v6359_v6 = vpop.f32.mrf.mxu0 }
 0x1cd   : > { %v2268_v2 = vpop.permute.xlu2 %2267  ;;  %v1598_v14 = vpop.permute.xlu1 %1597 }
 0x1ce   : > { %v2581_v60 = vmul.f32 %v2268_v2, %v6147_v34  ;;  %v6368_v15 = vmul.f32 %v1598_v14, %v6264_v25  ;;  %v1593_v35 = vpop.permute.xlu0 %1592  ;;  %v6370_v19 = vpop.f32.mrf.mxu1  ;;  %v4944_v2 = vld [vmem:[%s5974_s10 + $0x78] sm:$0xff] }
 0x1cf   : > { %v6373_v53 = vmul.f32 %v1593_v35, %v6246_v26  ;;  %v4984_v34 = vld [vmem:[%s5974_s10 + $0x178] sm:$0xff]  ;;  %v4590_v35 = vld [vmem:[%s5872_s29 + $0x340] sm:$0xff] }
 0x1d0   : > { %v6375_v47 = vadd.f32 %v2581_v60, %v1641_v38  ;;  %v6386_v26 = vpop.f32.mrf.mxu2  ;;  %v1644_v38 = vmul.f32 %v6047_v24, %v6193_v17 }
 0x1d1   : > { %7382 = vst [vmem:[#allocation61_spill] sm:$0xff] %v6386_v26  ;;  %v4588_v26 = vld [vmem:[%s5872_s29 + $0x330] sm:$0xff] }
 0x1d2   : > { %7381 = vst [vmem:[#allocation60_spill] sm:$0xff] %v6375_v47  ;;  %v4589_v47 = vld [vmem:[%s5872_s29 + $0x338] sm:$0xff] }
 0x1d3   : > { %2447 = vperm.xlu2 %5263, %v4587_v48   ;;  %2442 = vperm.xlu1 %5262, %v4586_v56   ;;  %v6380_v52 = vpop.f32.mrf.mxu3 }
 0x1d4   : > { %2437 = vperm.xlu0 %5261, %v4585_v33   ;;  %v6383_v29 = vpop.f32.mrf.mxu0 }
 0x1d5   : > { %v2283_v25 = vpop.permute.xlu2 %2282  ;;  %v1613_v14 = vpop.permute.xlu1 %1612 }
 0x1d6   : > { %v2584_v48 = vmul.f32 %v2283_v25, %v6205_v37  ;;  %v6392_v56 = vmul.f32 %v1613_v14, %v6321_v5  ;;  %v6394_v46 = vpop.permute.xlu0 %1607  ;;  %v6396_v60 = vpop.f32.mrf.mxu1  ;;  %v1647_v14 = vmul.f32 %v6090_v57, %v6248_v23  ;;  %v4945_v57 = vld [vmem:[%s5974_s10 + $0x80] sm:$0xff] }
 0x1d7   : > { %1170 = vmatmul.bf16.gmra.mxu0 %v4944_v2 }
 0x1d8   : > { %v6398_v33 = vadd.f32 %v2584_v48, %v1644_v38  ;;  %2109 = vmatmul.bf16.gmra.mxu1 %v4984_v34  ;;  %v6407_v5 = vpop.f32.mrf.mxu2  ;;  %v5024_v34 = vld [vmem:[%s5974_s10 + $0x278] sm:$0xff] }
 0x1d9   : > { %7385 = vst [vmem:[#allocation64_spill] sm:$0xff] %v6407_v5  ;;  %v4591_v5 = vld [vmem:[%s5872_s29 + $0x348] sm:$0xff]  ;;  %3113 = vmatmul.bf16.gmra.mxu2 %v5024_v34  ;;  %v1640_v34 = vmul.f32 %v6071_v43, %v6121_v16  ;;  %v4594_v43 = vld [vmem:[%s5872_s29 + $0x360] sm:$0xff] }
 0x1da   : > { %7383 = vst [vmem:[#allocation62_spill] sm:$0xff] %v6398_v33  ;;  %v5000_v33 = vld [vmem:[%s5974_s10 + $0x1f8] sm:$0xff] }
 0x1db   : > { %2462 = vperm.xlu2 %5263, %v4590_v35   ;;  %2457 = vperm.xlu1 %5262, %v4589_v47   ;;  %v1251_v24 = vpop.f32.mrf.mxu3  ;;  %v4593_v35 = vld [vmem:[%s5872_s29 + $0x358] sm:$0xff] }
 0x1dc   : > { %2452 = vperm.xlu0 %5261, %v4588_v26   ;;  %v6403_v17 = vmul.f32 %v1633_v8, %v1251_v24  ;;  %v6405_v37 = vpop.f32.mrf.mxu0  ;;  %v4592_v24 = vld [vmem:[%s5872_s29 + $0x350] sm:$0xff]  ;;  %2189 = vmatmul.bf16.gmra.mxu3 %v5000_v33 }
 0x1dd   : > { %v2298_v2 = vpop.permute.xlu2 %2297  ;;  %v6409_v25 = vpop.permute.xlu1 %1627 }
 0x1de   : > { %7384 = vst [vmem:[#allocation63_spill] sm:$0xff] %v6403_v17  ;;  %v2587_v47 = vmul.f32 %v2298_v2, %v6259_v63  ;;  %v1623_v38 = vpop.permute.xlu0 %1622  ;;  %v6415_v26 = vpop.f32.mrf.mxu1  ;;  %v4985_v63 = vld [vmem:[%s5974_s10 + $0x180] sm:$0xff] }
 0x1df   : > { %v6417_v8 = vmul.f32 %v1623_v38, %v1246_v1 }
 0x1e0   : > { %v6419_v48 = vadd.f32 %v2587_v47, %v1647_v14  ;;  %v6429_v2 = vpop.f32.mrf.mxu2  ;;  %v1650_v47 = vmul.f32 %v6103_v3, %v6304_v0 }
 0x1e1   : > { %7388 = vst [vmem:[#allocation67_spill] sm:$0xff] %v6429_v2 }
 0x1e2   : > { %7386 = vst [vmem:[#allocation65_spill] sm:$0xff] %v6419_v48  ;;  %v4596_v48 = vld [vmem:[%s5872_s29 + $0x370] sm:$0xff] }
 0x1e3   : > { %2477 = vperm.xlu2 %5263, %v4593_v35   ;;  %2472 = vperm.xlu1 %5262, %v4592_v24   ;;  %v6425_v17 = vpop.f32.mrf.mxu3 }
 0x1e4   : > { %7387 = vst [vmem:[#allocation66_spill] sm:$0xff] %v6425_v17  ;;  %2467 = vperm.xlu0 %5261, %v4591_v5   ;;  %v1136_v23 = vpop.f32.mrf.mxu0  ;;  %v4595_v17 = vld [vmem:[%s5872_s29 + $0x368] sm:$0xff] }
 0x1e5   : > { %v2313_v1 = vpop.permute.xlu2 %2312  ;;  %v2263_v14 = vpop.permute.xlu1 %2262 }
 0x1e6   : > { %v2590_v38 = vmul.f32 %v2313_v1, %v6316_v39  ;;  %v2580_v5 = vmul.f32 %v2263_v14, %v6131_v22  ;;  %v6437_v35 = vpop.permute.xlu0 %1637  ;;  %v2075_v24 = vpop.f32.mrf.mxu1 }
 0x1e7   : > { %1175 = vmatmul.bf16.gmra.mxu0 %v4945_v57  ;;  %v5025_v57 = vld [vmem:[%s5974_s10 + $0x280] sm:$0xff] }
 0x1e8   : > { %v6439_v2 = vadd.f32 %v2590_v38, %v1650_v47  ;;  %v6441_v33 = vadd.f32 %v2580_v5, %v1640_v34  ;;  %2114 = vmatmul.bf16.gmra.mxu1 %v4985_v63  ;;  %v6450_v22 = vpop.f32.mrf.mxu2  ;;  %v1643_v63 = vmul.f32 %v6081_v51, %v6174_v62  ;;  %v1642_v47 = vmul.f32 %v6068_v41, %v6155_v44  ;;  %v4599_v62 = vld [vmem:[%s5872_s29 + $0x388] sm:$0xff] }
 0x1e9   : > { %3118 = vmatmul.bf16.gmra.mxu2 %v5025_v57  ;;  %v4986_v41 = vld [vmem:[%s5974_s10 + $0x188] sm:$0xff]  ;;  %v1656_v57 = vmul.f32 %v6127_v20, %v1136_v23  ;;  %v4601_v20 = vld [vmem:[%s5872_s29 + $0x398] sm:$0xff] }
 0x1eb   : > { %2492 = vperm.xlu2 %5263, %v4596_v48   ;;  %2487 = vperm.xlu1 %5262, %v4595_v17   ;;  %v6446_v3 = vpop.f32.mrf.mxu3  ;;  %v1653_v48 = vmul.f32 %v6112_v9, %v6359_v6  ;;  %v4598_v9 = vld [vmem:[%s5872_s29 + $0x380] sm:$0xff] }
 0x1ec   : > { %2482 = vperm.xlu0 %5261, %v4594_v43   ;;  %v6448_v16 = vpop.f32.mrf.mxu0 }
 0x1ed   : > { %v2328_v0 = vpop.permute.xlu2 %2327  ;;  %v2278_v39 = vpop.permute.xlu1 %2277 }
 0x1ee   : > { %v2593_v17 = vmul.f32 %v2328_v0, %v6370_v19  ;;  %v2583_v1 = vmul.f32 %v2278_v39, %v6185_v7  ;;  %v2273_v14 = vpop.permute.xlu0 %2272  ;;  %v6459_v34 = vpop.f32.mrf.mxu1  ;;  %v4597_v19 = vld [vmem:[%s5872_s29 + $0x378] sm:$0xff]  ;;  %v4946_v7 = vld [vmem:[%s5974_s10 + $0x88] sm:$0xff] }
 0x1ef   : > { %v2582_v38 = vmul.f32 %v2273_v14, %v6167_v54 }
 0x1f0   : > { %v6464_v5 = vadd.f32 %v2593_v17, %v1653_v48  ;;  %v6466_v51 = vadd.f32 %v2583_v1, %v1643_v63  ;;  %v6479_v44 = vpop.f32.mrf.mxu2  ;;  %v1646_v63 = vmul.f32 %v6093_v59, %v6229_v45  ;;  %v4602_v59 = vld [vmem:[%s5872_s29 + $0x3a0] sm:$0xff] }
 0x1f1   : > { %v6470_v6 = vadd.f32 %v2582_v38, %v1642_v47  ;;  %7389 = vst [vmem:[#allocation68_spill] sm:$0xff] %v6479_v44  ;;  %v1645_v47 = vmul.f32 %v6052_v28, %v6212_v55  ;;  %v4874_v44 = vld [vmem:[%s5872_s29 + $0x4a0] sm:$0xff] }
 0x1f3   : > { %2507 = vperm.xlu2 %5263, %v4599_v62   ;;  %2502 = vperm.xlu1 %5262, %v4598_v9   ;;  %v6474_v43 = vpop.f32.mrf.mxu3 }
 0x1f4   : > { %2497 = vperm.xlu0 %5261, %v4597_v19   ;;  %v6476_v0 = vpop.f32.mrf.mxu0 }
 0x1f5   : > { %v2343_v54 = vpop.permute.xlu2 %2342  ;;  %v2293_v39 = vpop.permute.xlu1 %2292 }
 0x1f6   : > { %v2596_v48 = vmul.f32 %v2343_v54, %v2075_v24  ;;  %v2586_v17 = vmul.f32 %v2293_v39, %v6241_v10  ;;  %v2288_v1 = vpop.permute.xlu0 %2287  ;;  %v6485_v14 = vpop.f32.mrf.mxu1  ;;  %v4600_v10 = vld [vmem:[%s5872_s29 + $0x390] sm:$0xff] }
 0x1f7   : > { %v2585_v38 = vmul.f32 %v2288_v1, %v6223_v13  ;;  %1180 = vmatmul.bf16.gmra.mxu0 %v4946_v7  ;;  %v5026_v7 = vld [vmem:[%s5974_s10 + $0x288] sm:$0xff] }
 0x1f8   : > { %v6490_v62 = vadd.f32 %v2596_v48, %v1656_v57  ;;  %v6492_v9 = vadd.f32 %v2586_v17, %v1646_v63  ;;  %2119 = vmatmul.bf16.gmra.mxu1 %v4986_v41  ;;  %v6501_v55 = vpop.f32.mrf.mxu2  ;;  %v1649_v41 = vmul.f32 %v6105_v4, %v6285_v61  ;;  %v1648_v57 = vmul.f32 %v6061_v36, %v6267_v42  ;;  %v4603_v4 = vld [vmem:[%s5872_s29 + $0x3a8] sm:$0xff]  ;;  %v4947_v61 = vld [vmem:[%s5974_s10 + $0x90] sm:$0xff] }
 0x1f9   : > { %v6496_v45 = vadd.f32 %v2585_v38, %v1645_v47  ;;  %v4604_v47 = vld [vmem:[%s5872_s29 + $0x3b0] sm:$0xff]  ;;  %3123 = vmatmul.bf16.gmra.mxu2 %v5026_v7 }
 0x1fa   : > { %7390 = vst [vmem:[#allocation69_spill] sm:$0xff] %v6490_v62  ;;  %v4987_v42 = vld [vmem:[%s5974_s10 + $0x190] sm:$0xff] }
 0x1fb   : > { %2522 = vperm.xlu2 %5263, %v4602_v59   ;;  %2517 = vperm.xlu1 %5262, %v4601_v20   ;;  %v6499_v23 = vpop.f32.mrf.mxu3 }
 0x1fc   : > { %2512 = vperm.xlu0 %5261, %v4600_v10   ;;  %v1143_v28 = vpop.f32.mrf.mxu0 }
 0x1fd   : > { %v2358_v13 = vpop.permute.xlu2 %2357  ;;  %v2308_v24 = vpop.permute.xlu1 %2307  ;;  %v1659_v19 = vmul.f32 %v6142_v31, %v1143_v28  ;;  %v4605_v31 = vld [vmem:[%s5872_s29 + $0x3b8] sm:$0xff] }
 0x1fe   : > { %v2589_v54 = vmul.f32 %v2308_v24, %v6296_v30  ;;  %v2303_v39 = vpop.permute.xlu0 %2302  ;;  %v2082_v63 = vpop.f32.mrf.mxu1  ;;  %v5033_v30 = vld [vmem:[%s5974_s10 + $0x2c0] sm:$0xff] }
 0x1ff   : > { %v2588_v48 = vmul.f32 %v2303_v39, %v6280_v18  ;;  %v2599_v17 = vmul.f32 %v2358_v13, %v2082_v63  ;;  %3158 = vmatmul.bf16.vlgmr.msra.gmra.mxu3 %v5033_v30  ;;  %v1652_v13 = vmul.f32 %v6115_v11, %v6342_v32  ;;  %v4608_v63 = vld [vmem:[%s5872_s29 + $0x3d0] sm:$0xff]  ;;  %v4606_v11 = vld [vmem:[%s5872_s29 + $0x3c0] sm:$0xff] }
 0x200   : > { %v6511_v1 = vadd.f32 %v2589_v54, %v1649_v41  ;;  %v6527_v18 = vpop.f32.mrf.mxu2  ;;  %v1651_v41 = vmul.f32 %v6066_v40, %v6323_v12 }
 0x201   : > { %v6515_v38 = vadd.f32 %v2588_v48, %v1648_v57  ;;  %v6517_v59 = vadd.f32 %v2599_v17, %v1659_v19  ;;  %v4607_v57 = vld [vmem:[%s5872_s29 + $0x3c8] sm:$0xff]  ;;  %v5027_v17 = vld [vmem:[%s5974_s10 + $0x290] sm:$0xff] }
 0x203   : > { %7391 = vst [vmem:[#allocation70_spill] sm:$0xff] %v6517_v59  ;;  %2537 = vperm.xlu2 %5263, %v4605_v31   ;;  %2532 = vperm.xlu1 %5262, %v4604_v47   ;;  %v6522_v20 = vpop.f32.mrf.mxu3  ;;  %v1655_v31 = vmul.f32 %v6129_v21, %v6405_v37  ;;  %v4948_v21 = vld [vmem:[%s5974_s10 + $0x98] sm:$0xff]  ;;  %v5030_v59 = vld [vmem:[%s5974_s10 + $0x2a8] sm:$0xff] }
 0x204   : > { %2527 = vperm.xlu0 %5261, %v4603_v4   ;;  %v6524_v36 = vpop.f32.mrf.mxu0 }
 0x205   : > { %v2373_v10 = vpop.permute.xlu2 %2372  ;;  %v2323_v28 = vpop.permute.xlu1 %2322 }
 0x206   : > { %v2592_v24 = vmul.f32 %v2323_v28, %v6351_v27  ;;  %v2318_v19 = vpop.permute.xlu0 %2317  ;;  %v6532_v7 = vpop.f32.mrf.mxu1 }
 0x207   : > { %v2591_v54 = vmul.f32 %v2318_v19, %v6334_v58  ;;  %1185 = vmatmul.bf16.gmra.mxu0 %v4947_v61  ;;  %v1654_v61 = vmul.f32 %v6079_v50, %v6383_v29 }
 0x208   : > { %v6537_v39 = vadd.f32 %v2592_v24, %v1652_v13  ;;  %2124 = vmatmul.bf16.gmra.mxu1 %v4987_v42  ;;  %v6546_v12 = vpop.f32.mrf.mxu2  ;;  %v4611_v13 = vld [vmem:[%s5872_s29 + $0x3e8] sm:$0xff]  ;;  %v4610_v24 = vld [vmem:[%s5872_s29 + $0x3e0] sm:$0xff] }
 0x209   : > { %v6541_v48 = vadd.f32 %v2591_v54, %v1651_v41  ;;  %7392 = vst [vmem:[#allocation71_spill] sm:$0xff] %v6546_v12  ;;  %v4609_v41 = vld [vmem:[%s5872_s29 + $0x3d8] sm:$0xff]  ;;  %3128 = vmatmul.bf16.gmra.mxu2 %v5027_v17  ;;  %v5034_v54 = vld [vmem:[%s5974_s10 + $0x2c8] sm:$0xff] }
 0x20b   : > { %2552 = vperm.xlu2 %5263, %v4608_v63   ;;  %2547 = vperm.xlu1 %5262, %v4607_v57   ;;  %v6544_v32 = vpop.f32.mrf.mxu3  ;;  %v7394_v57 = vld [vmem:[#allocation13_spill] sm:$0xff] }
 0x20c   : > { %2542 = vperm.xlu0 %5261, %v4606_v11   ;;  %v1148_v40 = vpop.f32.mrf.mxu0  ;;  %v1658_v11 = vmul.f32 %v7394_v57, %v6476_v0 }
 0x20d   : > { %v6548_v58 = vpop.permute.xlu2 %2387  ;;  %v2338_v27 = vpop.permute.xlu1 %2337 }
 0x20e   : > { %v2595_v47 = vmul.f32 %v2338_v27, %v6415_v26  ;;  %v2333_v4 = vpop.permute.xlu0 %2332  ;;  %v2087_v30 = vpop.f32.mrf.mxu1  ;;  %v4988_v26 = vld [vmem:[%s5974_s10 + $0x198] sm:$0xff] }
 0x20f   : > { %v2594_v42 = vmul.f32 %v2333_v4, %v6396_v60  ;;  %3163 = vmatmul.bf16.gmra.mxu3 %v5034_v54  ;;  %v4612_v54 = vld [vmem:[%s5872_s29 + $0x3f0] sm:$0xff] }
 0x210   : > { %v6557_v28 = vadd.f32 %v2595_v47, %v1655_v31  ;;  %v6567_v63 = vpop.f32.mrf.mxu2  ;;  %v7395_v47 = vld [vmem:[#allocation7_spill] sm:$0xff] }
 0x211   : > { %v6561_v19 = vadd.f32 %v2594_v42, %v1654_v61  ;;  %7393 = vst [vmem:[#allocation72_spill] sm:$0xff] %v6567_v63  ;;  %v1657_v4 = vmul.f32 %v7395_v47, %v6448_v16  ;;  %v4871_v63 = vld [vmem:[%s5872_s29 + $0x488] sm:$0xff] }
 0x213   : > { %2567 = vperm.xlu2 %5263, %v4611_v13   ;;  %2562 = vperm.xlu1 %5262, %v4610_v24   ;;  %v6578_v13 = vpop.f32.mrf.mxu3 }
 0x214   : > { %2557 = vperm.xlu0 %5261, %v4609_v41   ;;  %v1151_v37 = vpop.f32.mrf.mxu0  ;;  %v4613_v41 = vld [vmem:[%s5872_s29 + $0x3f8] sm:$0xff] }
 0x215   : > { %v6569_v50 = vpop.permute.xlu2 %2402  ;;  %v2353_v29 = vpop.permute.xlu1 %2352  ;;  %v1662_v60 = vmul.f32 %v6163_v49, %v1151_v37  ;;  %v4854_v49 = vld [vmem:[%s5872_s29 + $0x400] sm:$0xff]  ;;  %v5028_v37 = vld [vmem:[%s5974_s10 + $0x298] sm:$0xff] }
 0x216   : > { %v2598_v27 = vmul.f32 %v2353_v29, %v6485_v14  ;;  %v2348_v17 = vpop.permute.xlu0 %2347  ;;  %v2090_v31 = vpop.f32.mrf.mxu1 }
 0x217   : > { %v2597_v61 = vmul.f32 %v2348_v17, %v6459_v34  ;;  %v2602_v42 = vmul.f32 %v2373_v10, %v2090_v31  ;;  %1190 = vmatmul.bf16.gmra.mxu0 %v4948_v21 }
 0x218   : > { %v6580_v24 = vadd.f32 %v2598_v27, %v1658_v11  ;;  %2129 = vmatmul.bf16.gmra.mxu1 %v4988_v26  ;;  %v6589_v34 = vpop.f32.mrf.mxu2  ;;  %v7398_v26 = vld [vmem:[#allocation17_spill] sm:$0xff]  ;;  %v7399_v27 = vld [vmem:[#allocation8_spill] sm:$0xff] }
 0x219   : > { %v6584_v0 = vadd.f32 %v2597_v61, %v1657_v4  ;;  %v6586_v14 = vadd.f32 %v2602_v42, %v1662_v60  ;;  %v1661_v29 = vmul.f32 %v7398_v26, %v1148_v40  ;;  %v1660_v17 = vmul.f32 %v7399_v27, %v6524_v36  ;;  %v4857_v4 = vld [vmem:[%s5872_s29 + $0x418] sm:$0xff]  ;;  %v4856_v61 = vld [vmem:[%s5872_s29 + $0x410] sm:$0xff]  ;;  %3133 = vmatmul.bf16.gmra.mxu2 %v5028_v37 }
 0x21a   : > { %v5035_v40 = vld [vmem:[%s5974_s10 + $0x2d0] sm:$0xff] }
 0x21b   : > { %7396 = vst [vmem:[#allocation13_spill] sm:$0xff] %v6584_v0  ;;  %3266 = vperm.xlu2 %5263, %v4854_v49   ;;  %2577 = vperm.xlu1 %5262, %v4613_v41   ;;  %v4855_v49 = vld [vmem:[%s5872_s29 + $0x408] sm:$0xff]  ;;  %v6605_v41 = vpop.f32.mrf.mxu3  ;;  %v7403_v27 = vld [vmem:[#allocation9_spill] sm:$0xff] }
 0x21c   : > { %7397 = vst [vmem:[#allocation7_spill] sm:$0xff] %v6586_v14  ;;  %2572 = vperm.xlu0 %5261, %v4612_v54   ;;  %v1153_v16 = vpop.f32.mrf.mxu0  ;;  %v4989_v54 = vld [vmem:[%s5974_s10 + $0x1a0] sm:$0xff] }
 0x21d   : > { %v6591_v10 = vpop.permute.xlu2 %2417  ;;  %v2368_v21 = vpop.permute.xlu1 %2367 }
 0x21e   : > { %v2601_v60 = vmul.f32 %v2368_v21, %v2087_v30  ;;  %v2363_v57 = vpop.permute.xlu0 %2362  ;;  %v2092_v11 = vpop.f32.mrf.mxu1  ;;  %v4949_v30 = vld [vmem:[%s5974_s10 + $0xa0] sm:$0xff] }
 0x21f   : > { %v2600_v31 = vmul.f32 %v2363_v57, %v6532_v7  ;;  %3168 = vmatmul.bf16.gmra.mxu3 %v5035_v40 }
 0x220   : > { %v6598_v47 = vadd.f32 %v2601_v60, %v1661_v29  ;;  %v6610_v7 = vpop.f32.mrf.mxu2  ;;  %v7402_v29 = vld [vmem:[#allocation21_spill] sm:$0xff] }
 0x221   : > { %v6602_v42 = vadd.f32 %v2600_v31, %v1660_v17  ;;  %7401 = vst [vmem:[#allocation8_spill] sm:$0xff] %v6610_v7  ;;  %v1663_v17 = vmul.f32 %v7403_v27, %v1153_v16  ;;  %v4858_v7 = vld [vmem:[%s5872_s29 + $0x420] sm:$0xff] }
 0x223   : > { %7400 = vst [vmem:[#allocation17_spill] sm:$0xff] %v6602_v42  ;;  %3281 = vperm.xlu2 %5263, %v4857_v4   ;;  %3276 = vperm.xlu1 %5262, %v4856_v61   ;;  %v4860_v61 = vld [vmem:[%s5872_s29 + $0x430] sm:$0xff]  ;;  %v4867_v42 = vld [vmem:[%s5872_s29 + $0x468] sm:$0xff] }
 0x224   : > { %3271 = vperm.xlu0 %5261, %v4855_v49   ;;  %v1156_v36 = vpop.f32.mrf.mxu0  ;;  %v4859_v49 = vld [vmem:[%s5872_s29 + $0x428] sm:$0xff] }
 0x225   : > { %v6612_v21 = vpop.permute.xlu2 %2432  ;;  %v2383_v26 = vpop.permute.xlu1 %2382  ;;  %v1664_v37 = vmul.f32 %v7402_v29, %v1156_v36 }
 0x226   : > { %v2378_v60 = vpop.permute.xlu0 %2377  ;;  %v2095_v57 = vpop.f32.mrf.mxu1 }
 0x227   : > { %v2603_v31 = vmul.f32 %v2378_v60, %v2092_v11  ;;  %v2604_v4 = vmul.f32 %v2383_v26, %v2095_v57  ;;  %1195 = vmatmul.bf16.gmra.mxu0 %v4949_v30  ;;  %v6623_v36 = vpop.f32.mrf.mxu3  ;;  %v7406_v26 = vld [vmem:[#allocation20_spill] sm:$0xff] }
 0x228   : > { %2134 = vmatmul.bf16.gmra.mxu1 %v4989_v54  ;;  %v6625_v11 = vpop.f32.mrf.mxu2 }
 0x229   : > { %v6618_v14 = vadd.f32 %v2603_v31, %v1663_v17  ;;  %v6620_v40 = vadd.f32 %v2604_v4, %v1664_v37  ;;  %7405 = vst [vmem:[#allocation9_spill] sm:$0xff] %v6625_v11  ;;  %v5029_v37 = vld [vmem:[%s5974_s10 + $0x2a0] sm:$0xff]  ;;  %v4863_v17 = vld [vmem:[%s5872_s29 + $0x448] sm:$0xff]  ;;  %v4865_v11 = vld [vmem:[%s5872_s29 + $0x458] sm:$0xff] }
 0x22a   : > { %v4862_v31 = vld [vmem:[%s5872_s29 + $0x440] sm:$0xff]  ;;  %3138 = vmatmul.bf16.gmra.mxu2 %v5029_v37 }
 0x22b   : > { %7404 = vst [vmem:[#allocation21_spill] sm:$0xff] %v6618_v14  ;;  %3296 = vperm.xlu2 %5263, %v4860_v61   ;;  %3291 = vperm.xlu1 %5262, %v4859_v49   ;;  %v5036_v61 = vld [vmem:[%s5974_s10 + $0x2d8] sm:$0xff]  ;;  %v4950_v49 = vld [vmem:[%s5974_s10 + $0xa8] sm:$0xff] }
 0x22c   : > { %3286 = vperm.xlu0 %5261, %v4858_v7   ;;  %v1158_v16 = vpop.f32.mrf.mxu0  ;;  %v4861_v7 = vld [vmem:[%s5872_s29 + $0x438] sm:$0xff] }
 0x22d   : > { %v6627_v30 = vpop.permute.xlu2 %2447  ;;  %v2398_v54 = vpop.permute.xlu1 %2397  ;;  %v1665_v29 = vmul.f32 %v7406_v26, %v1158_v16  ;;  %v4990_v26 = vld [vmem:[%s5974_s10 + $0x1a8] sm:$0xff] }
 0x22e   : > { %v2393_v60 = vpop.permute.xlu0 %2392  ;;  %v2097_v57 = vpop.f32.mrf.mxu1 }
 0x22f   : > { %v2605_v27 = vmul.f32 %v6548_v58, %v2097_v57  ;;  %3173 = vmatmul.bf16.gmra.mxu3 %v5036_v61 }
 0x230   : > { %v6640_v14 = vpop.f32.mrf.mxu2 }
 0x231   : > { %v6634_v4 = vadd.f32 %v2605_v27, %v1665_v29  ;;  %v7409_v29 = vld [vmem:[#allocation10_spill] sm:$0xff] }
 0x233   : > { %7407 = vst [vmem:[#allocation20_spill] sm:$0xff] %v6634_v4  ;;  %3311 = vperm.xlu2 %5263, %v4863_v17   ;;  %3306 = vperm.xlu1 %5262, %v4862_v31   ;;  %v6649_v4 = vpop.f32.mrf.mxu3 }
 0x234   : > { %3301 = vperm.xlu0 %5261, %v4861_v7   ;;  %v1161_v16 = vpop.f32.mrf.mxu0  ;;  %v4866_v7 = vld [vmem:[%s5872_s29 + $0x460] sm:$0xff] }
 0x235   : > { %v6642_v58 = vpop.permute.xlu2 %2462  ;;  %v6644_v57 = vpop.permute.xlu1 %2412  ;;  %v1666_v27 = vmul.f32 %v7409_v29, %v1161_v16 }
 0x236   : > { %7408 = vst [vmem:[#allocation73_spill] sm:$0xff] %v6642_v58  ;;  %v6647_v37 = vpop.permute.xlu0 %2407  ;;  %v2100_v17 = vpop.f32.mrf.mxu1  ;;  %v4864_v58 = vld [vmem:[%s5872_s29 + $0x450] sm:$0xff] }
 0x237   : > { %v2606_v31 = vmul.f32 %v2393_v60, %v2100_v17  ;;  %1200 = vmatmul.bf16.gmra.mxu0 %v4950_v49 }
 0x238   : > { %2139 = vmatmul.bf16.gmra.mxu1 %v4990_v26  ;;  %v6656_v29 = vpop.f32.mrf.mxu2  ;;  %v7414_v26 = vld [vmem:[#allocation25_spill] sm:$0xff] }
 0x239   : > { %v6653_v61 = vadd.f32 %v2606_v31, %v1666_v27  ;;  %7411 = vst [vmem:[#allocation74_spill] sm:$0xff] %v6656_v29  ;;  %v4991_v29 = vld [vmem:[%s5974_s10 + $0x1b0] sm:$0xff] }
 0x23a   : > { %3143 = vmatmul.bf16.gmra.mxu2 %v5030_v59 }
 0x23b   : > { %7410 = vst [vmem:[#allocation10_spill] sm:$0xff] %v6653_v61  ;;  %3326 = vperm.xlu2 %5263, %v4866_v7   ;;  %3321 = vperm.xlu1 %5262, %v4865_v11   ;;  %v4869_v7 = vld [vmem:[%s5872_s29 + $0x478] sm:$0xff]  ;;  %v4868_v11 = vld [vmem:[%s5872_s29 + $0x470] sm:$0xff]  ;;  %v6671_v12 = vpop.f32.mrf.mxu3 }
 0x23c   : > { %3316 = vperm.xlu0 %5261, %v4864_v58   ;;  %v1163_v16 = vpop.f32.mrf.mxu0 }
 0x23d   : > { %v6658_v60 = vpop.permute.xlu2 %2477  ;;  %v6660_v49 = vpop.permute.xlu1 %2427  ;;  %v1667_v17 = vmul.f32 %v7414_v26, %v1163_v16  ;;  %v4951_v16 = vld [vmem:[%s5974_s10 + $0xb0] sm:$0xff] }
 0x23e   : > { %7412 = vst [vmem:[#allocation75_spill] sm:$0xff] %v6658_v60  ;;  %v6664_v27 = vpop.permute.xlu0 %2422  ;;  %v2102_v31 = vpop.f32.mrf.mxu1  ;;  %v5037_v60 = vld [vmem:[%s5974_s10 + $0x2e0] sm:$0xff] }
 0x23f   : > { %7413 = vst [vmem:[#allocation76_spill] sm:$0xff] %v6660_v49  ;;  %v2607_v61 = vmul.f32 %v2398_v54, %v2102_v31  ;;  %3178 = vmatmul.bf16.gmra.mxu3 %v5037_v60 }
 0x240   : > { %v6676_v49 = vpop.f32.mrf.mxu2 }
 0x241   : > { %v6668_v58 = vadd.f32 %v2607_v61, %v1667_v17  ;;  %7416 = vst [vmem:[#allocation77_spill] sm:$0xff] %v6676_v49  ;;  %v7419_v17 = vld [vmem:[#allocation24_spill] sm:$0xff]  ;;  %v4870_v49 = vld [vmem:[%s5872_s29 + $0x480] sm:$0xff] }
 0x243   : > { %7415 = vst [vmem:[#allocation25_spill] sm:$0xff] %v6668_v58  ;;  %3341 = vperm.xlu2 %5263, %v4869_v7   ;;  %3336 = vperm.xlu1 %5262, %v4868_v11   ;;  %v6691_v60 = vpop.f32.mrf.mxu3  ;;  %v4875_v58 = vld [vmem:[%s5872_s29 + $0x4a8] sm:$0xff] }
 0x244   : > { %3331 = vperm.xlu0 %5261, %v4867_v42   ;;  %v1166_v26 = vpop.f32.mrf.mxu0  ;;  %v4872_v42 = vld [vmem:[%s5872_s29 + $0x490] sm:$0xff] }
 0x245   : > { %v6678_v54 = vpop.permute.xlu2 %2492  ;;  %v6680_v61 = vpop.permute.xlu1 %2442  ;;  %v1668_v31 = vmul.f32 %v7419_v17, %v1166_v26 }
 0x246   : > { %7417 = vst [vmem:[#allocation78_spill] sm:$0xff] %v6678_v54  ;;  %v6683_v59 = vpop.permute.xlu0 %2437  ;;  %v2105_v7 = vpop.f32.mrf.mxu1 }
 0x247   : > { %7418 = vst [vmem:[#allocation79_spill] sm:$0xff] %v6680_v61  ;;  %v2608_v11 = vmul.f32 %v6569_v50, %v2105_v7  ;;  %1205 = vmatmul.bf16.gmra.mxu0 %v4951_v16 }
 0x248   : > { %2144 = vmatmul.bf16.gmra.mxu1 %v4991_v29  ;;  %v6693_v17 = vpop.f32.mrf.mxu2  ;;  %v7422_v29 = vld [vmem:[#allocation12_spill] sm:$0xff] }
 0x249   : > { %v6688_v62 = vadd.f32 %v2608_v11, %v1668_v31  ;;  %v5031_v31 = vld [vmem:[%s5974_s10 + $0x2b0] sm:$0xff]  ;;  %v7423_v11 = vld [vmem:[#allocation14_spill] sm:$0xff] }
 0x24a   : > { %3148 = vmatmul.bf16.gmra.mxu2 %v5031_v31 }
 0x24b   : > { %7420 = vst [vmem:[#allocation24_spill] sm:$0xff] %v6688_v62  ;;  %3356 = vperm.xlu2 %5263, %v4872_v42   ;;  %3351 = vperm.xlu1 %5262, %v4871_v63   ;;  %v7424_v42 = vld [vmem:[#allocation53_spill] sm:$0xff] }
 0x24c   : > { %3346 = vperm.xlu0 %5261, %v4870_v49   ;;  %v1168_v26 = vpop.f32.mrf.mxu0  ;;  %v1689_v54 = vmul.f32 %v7424_v42, %v7423_v11  ;;  %v4952_v11 = vld [vmem:[%s5974_s10 + $0xb8] sm:$0xff] }
 0x24d   : > { %v2508_v50 = vpop.permute.xlu2 %2507  ;;  %v6695_v16 = vpop.permute.xlu1 %2457  ;;  %v1669_v7 = vmul.f32 %v7422_v29, %v1168_v26  ;;  %v4873_v26 = vld [vmem:[%s5872_s29 + $0x498] sm:$0xff]  ;;  %v5038_v29 = vld [vmem:[%s5974_s10 + $0x2e8] sm:$0xff] }
 0x24e   : > { %7421 = vst [vmem:[#allocation80_spill] sm:$0xff] %v6695_v16  ;;  %v2629_v63 = vmul.f32 %v2508_v50, %v6474_v43  ;;  %v6702_v62 = vpop.permute.xlu0 %2452  ;;  %v2107_v49 = vpop.f32.mrf.mxu1  ;;  %v4992_v50 = vld [vmem:[%s5974_s10 + $0x1b8] sm:$0xff] }
 0x24f   : > { %7425 = vst [vmem:[#allocation12_spill] sm:$0xff] %v6702_v62  ;;  %v2609_v61 = vmul.f32 %v6647_v37, %v2107_v49  ;;  %3183 = vmatmul.bf16.gmra.mxu3 %v5038_v29  ;;  %v6724_v49 = vpop.f32.mrf.mxu3  ;;  %v4878_v29 = vld [vmem:[%s5872_s29 + $0x4c0] sm:$0xff]  ;;  %v4877_v62 = vld [vmem:[%s5872_s29 + $0x4b8] sm:$0xff] }
 0x250   : > { %v6705_v0 = vadd.f32 %v2629_v63, %v1689_v54  ;;  %v6715_v42 = vpop.f32.mrf.mxu2 }
 0x251   : > { %v6709_v16 = vadd.f32 %v2609_v61, %v1669_v7  ;;  %v7429_v61 = vld [vmem:[#allocation29_spill] sm:$0xff] }
 0x252   : > { %7426 = vst [vmem:[#allocation14_spill] sm:$0xff] %v6705_v0 }
 0x253   : > { %7427 = vst [vmem:[#allocation53_spill] sm:$0xff] %v6709_v16  ;;  %3371 = vperm.xlu2 %5263, %v4875_v58   ;;  %3366 = vperm.xlu1 %5262, %v4874_v44   ;;  %v5039_v16 = vld [vmem:[%s5974_s10 + $0x2f0] sm:$0xff] }
 0x254   : > { %3361 = vperm.xlu0 %5261, %v4873_v26   ;;  %v1171_v43 = vpop.f32.mrf.mxu0  ;;  %v7431_v26 = vld [vmem:[#allocation57_spill] sm:$0xff] }
 0x255   : > { %v2523_v37 = vpop.permute.xlu2 %2522  ;;  %v6717_v54 = vpop.permute.xlu1 %2472  ;;  %v1670_v7 = vmul.f32 %v7429_v61, %v1171_v43  ;;  %v4876_v43 = vld [vmem:[%s5872_s29 + $0x4b0] sm:$0xff] }
 0x256   : > { %7428 = vst [vmem:[#allocation81_spill] sm:$0xff] %v6717_v54  ;;  %v2632_v31 = vmul.f32 %v2523_v37, %v6544_v32  ;;  %v6721_v63 = vpop.permute.xlu0 %2467  ;;  %v2110_v44 = vpop.f32.mrf.mxu1 }
 0x257   : > { %7430 = vst [vmem:[#allocation29_spill] sm:$0xff] %v6721_v63  ;;  %v2610_v58 = vmul.f32 %v6644_v57, %v2110_v44  ;;  %1210 = vmatmul.bf16.gmra.mxu0 %v4952_v11  ;;  %v6751_v63 = vpop.f32.mrf.mxu3 }
 0x258   : > { %v6727_v0 = vadd.f32 %v2632_v31, %v7431_v26  ;;  %2149 = vmatmul.bf16.gmra.mxu1 %v4992_v50  ;;  %v6734_v57 = vpop.f32.mrf.mxu2  ;;  %v7434_v50 = vld [vmem:[#allocation28_spill] sm:$0xff]  ;;  %v4881_v26 = vld [vmem:[%s5872_s29 + $0x4d8] sm:$0xff] }
 0x259   : > { %v6731_v54 = vadd.f32 %v2610_v58, %v1670_v7 }
 0x25a   : > { %7432 = vst [vmem:[#allocation57_spill] sm:$0xff] %v6727_v0  ;;  %v4879_v0 = vld [vmem:[%s5872_s29 + $0x4c8] sm:$0xff] }
 0x25b   : > { %3386 = vperm.xlu2 %5263, %v4878_v29   ;;  %3381 = vperm.xlu1 %5262, %v4877_v62   ;;  %v4880_v29 = vld [vmem:[%s5872_s29 + $0x4d0] sm:$0xff] }
 0x25c   : > { %3376 = vperm.xlu0 %5261, %v4876_v43   ;;  %v1173_v32 = vpop.f32.mrf.mxu0 }
 0x25d   : > { %v2538_v11 = vpop.permute.xlu2 %2537  ;;  %v6736_v37 = vpop.permute.xlu1 %2487  ;;  %v1671_v61 = vmul.f32 %v7434_v50, %v1173_v32 }
 0x25e   : > { %7433 = vst [vmem:[#allocation82_spill] sm:$0xff] %v6736_v37  ;;  %v2635_v31 = vmul.f32 %v2538_v11, %v6623_v36  ;;  %v6740_v7 = vpop.permute.xlu0 %2482  ;;  %v2112_v44 = vpop.f32.mrf.mxu1  ;;  %v5032_v37 = vld [vmem:[%s5974_s10 + $0x2b8] sm:$0xff]  ;;  %v7438_v11 = vld [vmem:[#allocation16_spill] sm:$0xff] }
 0x25f   : > { %7435 = vst [vmem:[#allocation28_spill] sm:$0xff] %v6740_v7  ;;  %v2611_v58 = vmul.f32 %v6591_v10, %v2112_v44  ;;  %3153 = vmatmul.bf16.gmra.mxu2 %v5032_v37  ;;  %3188 = vmatmul.bf16.gmra.mxu3 %v5039_v16 }
 0x260   : > { %v6744_v62 = vadd.f32 %v2635_v31, %v6368_v15  ;;  %v6755_v32 = vpop.f32.mrf.mxu2  ;;  %v7440_v31 = vld [vmem:[#allocation54_spill] sm:$0xff] }
 0x261   : > { %v6748_v43 = vadd.f32 %v2611_v58, %v1671_v61  ;;  %v7439_v61 = vld [vmem:[#allocation11_spill] sm:$0xff] }
 0x262   : > { %7436 = vst [vmem:[#allocation83_spill] sm:$0xff] %v6744_v62  ;;  %v1688_v44 = vmul.f32 %v7440_v31, %v7439_v61 }
 0x263   : > { %7437 = vst [vmem:[#allocation84_spill] sm:$0xff] %v6748_v43  ;;  %3401 = vperm.xlu2 %5263, %v4881_v26   ;;  %3396 = vperm.xlu1 %5262, %v4880_v29   ;;  %v4884_v43 = vld [vmem:[%s5872_s29 + $0x4f0] sm:$0xff] }
 0x264   : > { %3391 = vperm.xlu0 %5261, %v4879_v0   ;;  %v1176_v36 = vpop.f32.mrf.mxu0 }
 0x265   : > { %v2553_v15 = vpop.permute.xlu2 %2552  ;;  %v2503_v10 = vpop.permute.xlu1 %2502  ;;  %v1672_v50 = vmul.f32 %v7438_v11, %v1176_v36  ;;  %v4883_v36 = vld [vmem:[%s5872_s29 + $0x4e8] sm:$0xff]  ;;  %v4882_v11 = vld [vmem:[%s5872_s29 + $0x4e0] sm:$0xff] }
 0x266   : > { %v2638_v58 = vmul.f32 %v2553_v15, %v6691_v60  ;;  %v2628_v26 = vmul.f32 %v2503_v10, %v6446_v3  ;;  %v6762_v0 = vpop.permute.xlu0 %2497  ;;  %v2115_v29 = vpop.f32.mrf.mxu1  ;;  %v1701_v10 = vmul.f32 %v6409_v25, %v6380_v52  ;;  %v5040_v52 = vld [vmem:[%s5974_s10 + $0x2f8] sm:$0xff] }
 0x267   : > { %7441 = vst [vmem:[#allocation16_spill] sm:$0xff] %v6762_v0  ;;  %v2612_v62 = vmul.f32 %v6664_v27, %v2115_v29  ;;  %v2187_v3 = vpop.f32.mrf.mxu3  ;;  %v4887_v29 = vld [vmem:[%s5872_s29 + $0x508] sm:$0xff]  ;;  %v4885_v0 = vld [vmem:[%s5872_s29 + $0x4f8] sm:$0xff] }
 0x268   : > { %v6766_v37 = vadd.f32 %v2638_v58, %v6392_v56  ;;  %v6768_v7 = vadd.f32 %v2628_v26, %v1688_v44  ;;  %v6777_v27 = vpop.f32.mrf.mxu2  ;;  %v7443_v44 = vld [vmem:[#allocation58_spill] sm:$0xff] }
 0x269   : > { %v6772_v16 = vadd.f32 %v2612_v62, %v1672_v50 }
 0x26a   : > { %7442 = vst [vmem:[#allocation11_spill] sm:$0xff] %v6766_v37 }
 0x26b   : > { %3416 = vperm.xlu2 %5263, %v4884_v43   ;;  %3411 = vperm.xlu1 %5262, %v4883_v36   ;;  %v4886_v36 = vld [vmem:[%s5872_s29 + $0x500] sm:$0xff] }
 0x26c   : > { %3406 = vperm.xlu0 %5261, %v4882_v11   ;;  %v6775_v60 = vpop.f32.mrf.mxu0  ;;  %v7445_v11 = vld [vmem:[#allocation40_spill] sm:$0xff] }
 0x26d   : > { %v2568_v56 = vpop.permute.xlu2 %2567  ;;  %v2518_v15 = vpop.permute.xlu1 %2517 }
 0x26e   : > { %v2631_v62 = vmul.f32 %v2518_v15, %v6522_v20  ;;  %v2513_v50 = vpop.permute.xlu0 %2512  ;;  %v6782_v43 = vpop.f32.mrf.mxu1  ;;  %v2641_v61 = vmul.f32 %v2568_v56, %v2187_v3  ;;  %v7447_v15 = vld [vmem:[#allocation32_spill] sm:$0xff] }
 0x26f   : > { %v2630_v31 = vmul.f32 %v2513_v50, %v6499_v23  ;;  %v6797_v25 = vpop.f32.mrf.mxu3  ;;  %3193 = vmatmul.bf16.gmra.mxu3 %v5040_v52  ;;  %v7448_v50 = vld [vmem:[#allocation15_spill] sm:$0xff] }
 0x270   : > { %v6786_v58 = vadd.f32 %v2631_v62, %v7443_v44  ;;  %v6788_v26 = vadd.f32 %v2641_v61, %v1701_v10  ;;  %v6799_v23 = vpop.f32.mrf.mxu2  ;;  %v6805_v62 = vld [vmem:[%s7311_s3] ss:$0 sm:$0xff] }
 0x271   : > { %v6793_v37 = vadd.f32 %v2630_v31, %v7445_v11 }
 0x272   : > { %7444 = vst [vmem:[#allocation54_spill] sm:$0xff] %v6788_v26  ;;  %v7449_v26 = vld [vmem:[#allocation44_spill] sm:$0xff] }
 0x273   : > { %7446 = vst [vmem:[#allocation58_spill] sm:$0xff] %v6793_v37  ;;  %3431 = vperm.xlu2 %5263, %v4887_v29   ;;  %3426 = vperm.xlu1 %5262, %v4886_v36  }
 0x274   : > { %3421 = vperm.xlu0 %5261, %v4885_v0   ;;  %v1181_v20 = vpop.f32.mrf.mxu0 }
 0x275   : > { %v3267_v3 = vpop.permute.xlu2 %3266  ;;  %v2533_v56 = vpop.permute.xlu1 %2532  ;;  %v1674_v10 = vmul.f32 %v7447_v15, %v1181_v20  ;;  %v4890_v20 = vld [vmem:[%s5872_s29 + $0x520] sm:$0xff]  ;;  %v4889_v15 = vld [vmem:[%s5872_s29 + $0x518] sm:$0xff] }
 0x276   : > { %v3584_v61 = vmul.f32 %v3267_v3, %v7448_v50  ;;  %v2634_v0 = vmul.f32 %v2533_v56, %v6605_v41  ;;  %v2528_v31 = vpop.permute.xlu0 %2527  ;;  %v2120_v44 = vpop.f32.mrf.mxu1  ;;  %v4888_v41 = vld [vmem:[%s5872_s29 + $0x510] sm:$0xff] }
 0x277   : > { %v2633_v29 = vmul.f32 %v2528_v31, %v6578_v13  ;;  %v2614_v36 = vmul.f32 %v6612_v21, %v2120_v44  ;;  %v7453_v31 = vld [vmem:[#allocation26_spill] sm:$0xff] }
 0x278   : > { %v3648_v11 = vadd.f32 %v3584_v61, %v6441_v33  ;;  %v6814_v52 = vadd.f32 %v2634_v0, %v6373_v53  ;;  %v6825_v50 = vpop.f32.mrf.mxu2  ;;  %v7451_v61 = vld [vmem:[#allocation19_spill] sm:$0xff] }
 0x279   : > { %v6819_v37 = vadd.f32 %v2633_v29, %v7449_v26  ;;  %v6821_v3 = vadd.f32 %v2614_v36, %v1674_v10  ;;  %v7452_v26 = vld [vmem:[#allocation46_spill] sm:$0xff] }
 0x27a   : > { %v3716_v56 = vadd.f32 %v6805_v62, %v3648_v11  ;;  %v1697_v10 = vmul.f32 %v6394_v46, %v7452_v26  ;;  %v7454_v26 = vld [vmem:[#allocation49_spill] sm:$0xff] }
 0x27b   : > { %7450 = vst [vmem:[#allocation40_spill] sm:$0xff] %v6819_v37  ;;  %3446 = vperm.xlu2 %5263, %v4890_v20   ;;  %3441 = vperm.xlu1 %5262, %v4889_v15   ;;  %v4898_v37 = vld [vmem:[%s5872_s29 + $0x560] sm:$0xff] }
 0x27c   : > { %v3780_v13 = vmax.f32 %v3716_v56, 0.0  ;;  %3436 = vperm.xlu0 %5261, %v4888_v41   ;;  %v1183_v21 = vpop.f32.mrf.mxu0  ;;  %v2192_v41 = vpop.f32.mrf.mxu3 }
 0x27d   : > { %v3282_v53 = vpop.permute.xlu2 %3281  ;;  %v2548_v33 = vpop.permute.xlu1 %2547  ;;  %v1675_v0 = vmul.f32 %v7451_v61, %v1183_v21  ;;  %v4893_v21 = vld [vmem:[%s5872_s29 + $0x538] sm:$0xff]  ;;  %v4892_v61 = vld [vmem:[%s5872_s29 + $0x530] sm:$0xff] }
 0x27e   : > { %3844 = vst [vmem:[%s6830_s20] sm:$0xff] %v3780_v13  ;;  %v3587_v44 = vmul.f32 %v3282_v53, %v7453_v31  ;;  %v2637_v29 = vmul.f32 %v2548_v33, %v6671_v12  ;;  %v2543_v36 = vpop.permute.xlu0 %2542  ;;  %v2122_v11 = vpop.f32.mrf.mxu1  ;;  %v4891_v12 = vld [vmem:[%s5872_s29 + $0x528] sm:$0xff] }
 0x27f   : > { %v2636_v20 = vmul.f32 %v2543_v36, %v6649_v4  ;;  %v2615_v15 = vmul.f32 %v6683_v59, %v2122_v11 }
 0x280   : > { %v3651_v56 = vadd.f32 %v3587_v44, %v6466_v51  ;;  %v6838_v46 = vadd.f32 %v2637_v29, %v1697_v10  ;;  %v6851_v59 = vpop.f32.mrf.mxu2  ;;  %v7456_v44 = vld [vmem:[#allocation38_spill] sm:$0xff] }
 0x281   : > { %v6843_v13 = vadd.f32 %v2636_v20, %v7454_v26  ;;  %v6845_v53 = vadd.f32 %v2615_v15, %v1675_v0  ;;  %v7457_v20 = vld [vmem:[#allocation55_spill] sm:$0xff]  ;;  %v7458_v15 = vld [vmem:[#allocation52_spill] sm:$0xff] }
 0x282   : > { %v3719_v33 = vadd.f32 %v6805_v62, %v3651_v56  ;;  %v1699_v56 = vmul.f32 %v7458_v15, %v7457_v20  ;;  %v7461_v20 = vld [vmem:[#allocation66_spill] sm:$0xff] }
 0x283   : > { %7455 = vst [vmem:[#allocation32_spill] sm:$0xff] %v6843_v13  ;;  %3461 = vperm.xlu2 %5263, %v4893_v21   ;;  %3456 = vperm.xlu1 %5262, %v4892_v61   ;;  %v1703_v15 = vmul.f32 %v6437_v35, %v7461_v20  ;;  %v7464_v35 = vld [vmem:[#allocation63_spill] sm:$0xff]  ;;  %v4897_v20 = vld [vmem:[%s5872_s29 + $0x558] sm:$0xff] }
 0x284   : > { %v3783_v4 = vmax.f32 %v3719_v33, 0.0  ;;  %3451 = vperm.xlu0 %5261, %v4891_v12   ;;  %v6849_v51 = vpop.f32.mrf.mxu0  ;;  %v6861_v61 = vpop.f32.mrf.mxu3  ;;  %v4896_v33 = vld [vmem:[%s5872_s29 + $0x550] sm:$0xff] }
 0x285   : > { %v3297_v10 = vpop.permute.xlu2 %3296  ;;  %v2563_v31 = vpop.permute.xlu1 %2562 }
 0x286   : > { %3847 = vst [vmem:[%s6830_s20 + $0x18] sm:$0xff] %v3783_v4  ;;  %v3590_v0 = vmul.f32 %v3297_v10, %v7456_v44  ;;  %v2640_v29 = vmul.f32 %v2563_v31, %v6751_v63  ;;  %v2558_v36 = vpop.permute.xlu0 %2557  ;;  %v6856_v11 = vpop.f32.mrf.mxu1  ;;  %v4895_v4 = vld [vmem:[%s5872_s29 + $0x548] sm:$0xff]  ;;  %v4894_v63 = vld [vmem:[%s5872_s29 + $0x540] sm:$0xff] }
 0x287   : > { %v2639_v21 = vmul.f32 %v2558_v36, %v6724_v49 }
 0x288   : > { %v3654_v26 = vadd.f32 %v3590_v0, %v6492_v9  ;;  %v6865_v12 = vadd.f32 %v2640_v29, %v6417_v8  ;;  %v6873_v36 = vpop.f32.mrf.mxu2  ;;  %v7460_v0 = vld [vmem:[#allocation36_spill] sm:$0xff] }
 0x289   : > { %v6869_v10 = vadd.f32 %v2639_v21, %v1699_v56  ;;  %v7462_v56 = vld [vmem:[#allocation51_spill] sm:$0xff] }
 0x28a   : > { %v3722_v31 = vadd.f32 %v6805_v62, %v3654_v26 }
 0x28b   : > { %7459 = vst [vmem:[#allocation15_spill] sm:$0xff] %v6869_v10  ;;  %3476 = vperm.xlu2 %5263, %v4896_v33   ;;  %3471 = vperm.xlu1 %5262, %v4895_v4  }
 0x28c   : > { %v3786_v44 = vmax.f32 %v3722_v31, 0.0  ;;  %3466 = vperm.xlu0 %5261, %v4894_v63   ;;  %v1188_v49 = vpop.f32.mrf.mxu0  ;;  %v6882_v10 = vpop.f32.mrf.mxu3 }
 0x28d   : > { %v3312_v9 = vpop.permute.xlu2 %3311  ;;  %v2578_v8 = vpop.permute.xlu1 %2577  ;;  %v1677_v29 = vmul.f32 %v7460_v0, %v1188_v49  ;;  %v4899_v0 = vld [vmem:[%s5872_s29 + $0x568] sm:$0xff] }
 0x28e   : > { %3850 = vst [vmem:[%s6830_s20 + $0x30] sm:$0xff] %v3786_v44  ;;  %v3593_v21 = vmul.f32 %v3312_v9, %v7462_v56  ;;  %v2573_v26 = vpop.permute.xlu0 %2572  ;;  %v2127_v33 = vpop.f32.mrf.mxu1  ;;  %v2643_v4 = vmul.f32 %v2578_v8, %v2192_v41 }
 0x28f   : > { %v2642_v63 = vmul.f32 %v2573_v26, %v6797_v25  ;;  %v2617_v31 = vmul.f32 %v6627_v30, %v2127_v33  ;;  %v7468_v33 = vld [vmem:[#allocation18_spill] sm:$0xff] }
 0x290   : > { %v3657_v13 = vadd.f32 %v3593_v21, %v6511_v1  ;;  %v6885_v49 = vadd.f32 %v2643_v4, %v1703_v15  ;;  %v6896_v1 = vpop.f32.mrf.mxu2  ;;  %v7466_v15 = vld [vmem:[#allocation61_spill] sm:$0xff]  ;;  %v7467_v21 = vld [vmem:[#allocation22_spill] sm:$0xff] }
 0x291   : > { %v6890_v44 = vadd.f32 %v2642_v63, %v7464_v35  ;;  %v6892_v9 = vadd.f32 %v2617_v31, %v1677_v29  ;;  %v4901_v31 = vld [vmem:[%s5872_s29 + $0x578] sm:$0xff]  ;;  %v7469_v35 = vld [vmem:[#allocation60_spill] sm:$0xff] }
 0x292   : > { %7463 = vst [vmem:[#allocation44_spill] sm:$0xff] %v6885_v49  ;;  %v3725_v25 = vadd.f32 %v6805_v62, %v3657_v13 }
 0x293   : > { %7465 = vst [vmem:[#allocation19_spill] sm:$0xff] %v6890_v44  ;;  %3491 = vperm.xlu2 %5263, %v4899_v0   ;;  %3486 = vperm.xlu1 %5262, %v4898_v37   ;;  %v4902_v37 = vld [vmem:[%s5872_s29 + $0x580] sm:$0xff]  ;;  %v4903_v44 = vld [vmem:[%s5872_s29 + $0x588] sm:$0xff] }
 0x294   : > { %v3789_v30 = vmax.f32 %v3725_v25, 0.0  ;;  %3481 = vperm.xlu0 %5261, %v4897_v20   ;;  %v6906_v0 = vpop.f32.mrf.mxu3  ;;  %v4900_v25 = vld [vmem:[%s5872_s29 + $0x570] sm:$0xff] }
 0x295   : > { %v3327_v41 = vpop.permute.xlu2 %3326  ;;  %v3277_v8 = vpop.permute.xlu1 %3276 }
 0x296   : > { %3853 = vst [vmem:[%s6830_s20 + $0x48] sm:$0xff] %v3789_v30  ;;  %v3596_v56 = vmul.f32 %v3327_v41, %v7466_v15  ;;  %v3586_v29 = vmul.f32 %v3277_v8, %v7467_v21  ;;  %v3272_v26 = vpop.permute.xlu0 %3271 }
 0x297   : > { %v3585_v4 = vmul.f32 %v3272_v26, %v7468_v33  ;;  %v6916_v26 = vpop.f32.mrf.mxu0 }
 0x298   : > { %v3660_v13 = vadd.f32 %v3596_v56, %v6537_v39  ;;  %v3650_v63 = vadd.f32 %v3586_v29, %v6470_v6  ;;  %v6913_v15 = vpop.f32.mrf.mxu2 }
 0x299   : > { %v3649_v20 = vadd.f32 %v3585_v4, %v7469_v35  ;;  %v7470_v4 = vld [vmem:[#allocation34_spill] sm:$0xff]  ;;  %v6923_v35 = vpop.f32.mrf.mxu1 }
 0x29a   : > { %v3728_v30 = vadd.f32 %v6805_v62, %v3660_v13  ;;  %v3718_v41 = vadd.f32 %v6805_v62, %v3650_v63 }
 0x29b   : > { %v3717_v8 = vadd.f32 %v6805_v62, %v3649_v20  ;;  %3506 = vperm.xlu2 %5263, %v4902_v37   ;;  %3501 = vperm.xlu1 %5262, %v4901_v31   ;;  %v7471_v37 = vld [vmem:[#allocation30_spill] sm:$0xff] }
 0x29c   : > { %v3792_v39 = vmax.f32 %v3728_v30, 0.0  ;;  %v3782_v6 = vmax.f32 %v3718_v41, 0.0  ;;  %3496 = vperm.xlu0 %5261, %v4900_v25   ;;  %v4905_v30 = vld [vmem:[%s5872_s29 + $0x598] sm:$0xff]  ;;  %v4904_v41 = vld [vmem:[%s5872_s29 + $0x590] sm:$0xff] }
 0x29d   : > { %v3781_v56 = vmax.f32 %v3717_v8, 0.0  ;;  %v3342_v21 = vpop.permute.xlu2 %3341  ;;  %v3292_v29 = vpop.permute.xlu1 %3291  ;;  %v7472_v8 = vld [vmem:[#allocation62_spill] sm:$0xff] }
 0x29e   : > { %3856 = vst [vmem:[%s6830_s20 + $0x60] sm:$0xff] %v3792_v39  ;;  %v3599_v33 = vmul.f32 %v3342_v21, %v6450_v22  ;;  %v3589_v13 = vmul.f32 %v3292_v29, %v7470_v4  ;;  %v3287_v63 = vpop.permute.xlu0 %3286 }
 0x29f   : > { %3846 = vst [vmem:[%s6830_s20 + $0x10] sm:$0xff] %v3782_v6  ;;  %v3588_v31 = vmul.f32 %v3287_v63, %v7471_v37  ;;  %v6933_v6 = vpop.f32.mrf.mxu3  ;;  %v7473_v37 = vld [vmem:[#allocation47_spill] sm:$0xff] }
 0x2a0   : > { %3845 = vst [vmem:[%s6830_s20 + $0x8] sm:$0xff] %v3781_v56  ;;  %v3663_v20 = vadd.f32 %v3599_v33, %v6557_v28  ;;  %v3653_v25 = vadd.f32 %v3589_v13, %v6496_v45  ;;  %v6936_v29 = vpop.f32.mrf.mxu2 }
 0x2a1   : > { %v3652_v39 = vadd.f32 %v3588_v31, %v7472_v8 }
 0x2a2   : > { %v3731_v22 = vadd.f32 %v6805_v62, %v3663_v20  ;;  %v3721_v21 = vadd.f32 %v6805_v62, %v3653_v25  ;;  %v7474_v25 = vld [vmem:[#allocation42_spill] sm:$0xff] }
 0x2a3   : > { %v3720_v56 = vadd.f32 %v6805_v62, %v3652_v39  ;;  %3521 = vperm.xlu2 %5263, %v4905_v30   ;;  %3516 = vperm.xlu1 %5262, %v4904_v41   ;;  %v6944_v41 = vpop.f32.mrf.mxu0  ;;  %v4908_v39 = vld [vmem:[%s5872_s29 + $0x5b0] sm:$0xff] }
 0x2a4   : > { %v3795_v28 = vmax.f32 %v3731_v22, 0.0  ;;  %v3785_v45 = vmax.f32 %v3721_v21, 0.0  ;;  %3511 = vperm.xlu0 %5261, %v4903_v44   ;;  %v4907_v22 = vld [vmem:[%s5872_s29 + $0x5a8] sm:$0xff]  ;;  %v7475_v21 = vld [vmem:[#allocation65_spill] sm:$0xff] }
 0x2a5   : > { %v3784_v33 = vmax.f32 %v3720_v56, 0.0  ;;  %v3357_v4 = vpop.permute.xlu2 %3356  ;;  %v3307_v13 = vpop.permute.xlu1 %3306 }
 0x2a6   : > { %3859 = vst [vmem:[%s6830_s20 + $0x78] sm:$0xff] %v3795_v28  ;;  %v3602_v63 = vmul.f32 %v3357_v4, %v6527_v18  ;;  %v3592_v31 = vmul.f32 %v3307_v13, %v7473_v37  ;;  %v3302_v20 = vpop.permute.xlu0 %3301  ;;  %v4906_v28 = vld [vmem:[%s5872_s29 + $0x5a0] sm:$0xff]  ;;  %v6952_v18 = vpop.f32.mrf.mxu1 }
 0x2a7   : > { %3849 = vst [vmem:[%s6830_s20 + $0x28] sm:$0xff] %v3785_v45  ;;  %v3591_v30 = vmul.f32 %v3302_v20, %v7474_v25  ;;  %v6957_v13 = vpop.f32.mrf.mxu3  ;;  %v7476_v25 = vld [vmem:[#allocation59_spill] sm:$0xff] }
 0x2a8   : > { %3848 = vst [vmem:[%s6830_s20 + $0x20] sm:$0xff] %v3784_v33  ;;  %v3666_v44 = vadd.f32 %v3602_v63, %v6580_v24  ;;  %v3656_v8 = vadd.f32 %v3592_v31, %v6515_v38 }
 0x2a9   : > { %v3655_v56 = vadd.f32 %v3591_v30, %v7475_v21 }
 0x2aa   : > { %v3734_v4 = vadd.f32 %v6805_v62, %v3666_v44  ;;  %v3724_v45 = vadd.f32 %v6805_v62, %v3656_v8  ;;  %v6962_v8 = vpop.f32.mrf.mxu2 }
 0x2ab   : > { %v3723_v33 = vadd.f32 %v6805_v62, %v3655_v56  ;;  %3536 = vperm.xlu2 %5263, %v4908_v39   ;;  %3531 = vperm.xlu1 %5262, %v4907_v22   ;;  %v7477_v39 = vld [vmem:[#allocation56_spill] sm:$0xff] }
 0x2ac   : > { %v3798_v24 = vmax.f32 %v3734_v4, 0.0  ;;  %v3788_v38 = vmax.f32 %v3724_v45, 0.0  ;;  %3526 = vperm.xlu0 %5261, %v4906_v28   ;;  %v4911_v28 = vld [vmem:[%s5872_s29 + $0x5c8] sm:$0xff]  ;;  %v4910_v4 = vld [vmem:[%s5872_s29 + $0x5c0] sm:$0xff] }
 0x2ad   : > { %v3787_v63 = vmax.f32 %v3723_v33, 0.0  ;;  %v3372_v37 = vpop.permute.xlu2 %3371  ;;  %v3322_v31 = vpop.permute.xlu1 %3321  ;;  %v4909_v33 = vld [vmem:[%s5872_s29 + $0x5b8] sm:$0xff] }
 0x2ae   : > { %3862 = vst [vmem:[%s6830_s20 + $0x90] sm:$0xff] %v3798_v24  ;;  %v3605_v20 = vmul.f32 %v3372_v37, %v6589_v34  ;;  %v3595_v30 = vmul.f32 %v3322_v31, %v7476_v25  ;;  %v3317_v44 = vpop.permute.xlu0 %3316  ;;  %v6973_v34 = vpop.f32.mrf.mxu0 }
 0x2af   : > { %3852 = vst [vmem:[%s6830_s20 + $0x40] sm:$0xff] %v3788_v38  ;;  %v3594_v22 = vmul.f32 %v3317_v44, %v7477_v39 }
 0x2b0   : > { %3851 = vst [vmem:[%s6830_s20 + $0x38] sm:$0xff] %v3787_v63  ;;  %v3669_v21 = vadd.f32 %v3605_v20, %v6598_v47  ;;  %v3659_v56 = vadd.f32 %v3595_v30, %v6541_v48  ;;  %v6978_v47 = vpop.f32.mrf.mxu1  ;;  %v7478_v30 = vld [vmem:[#allocation67_spill] sm:$0xff] }
 0x2b1   : > { %v3658_v45 = vadd.f32 %v3594_v22, %v6439_v2  ;;  %v6983_v22 = vpop.f32.mrf.mxu3 }
 0x2b2   : > { %v3737_v24 = vadd.f32 %v6805_v62, %v3669_v21  ;;  %v3727_v37 = vadd.f32 %v6805_v62, %v3659_v56  ;;  %v7479_v21 = vld [vmem:[#allocation64_spill] sm:$0xff] }
 0x2b3   : > { %v3726_v38 = vadd.f32 %v6805_v62, %v3658_v45  ;;  %3551 = vperm.xlu2 %5263, %v4911_v28   ;;  %3546 = vperm.xlu1 %5262, %v4910_v4   ;;  %v4914_v45 = vld [vmem:[%s5872_s29 + $0x5e0] sm:$0xff] }
 0x2b4   : > { %v3801_v48 = vmax.f32 %v3737_v24, 0.0  ;;  %v3791_v63 = vmax.f32 %v3727_v37, 0.0  ;;  %3541 = vperm.xlu0 %5261, %v4909_v33   ;;  %v4913_v33 = vld [vmem:[%s5872_s29 + $0x5d8] sm:$0xff]  ;;  %v6992_v24 = vpop.f32.mrf.mxu2  ;;  %v4912_v37 = vld [vmem:[%s5872_s29 + $0x5d0] sm:$0xff] }
 0x2b5   : > { %v3790_v2 = vmax.f32 %v3726_v38, 0.0  ;;  %v3387_v31 = vpop.permute.xlu2 %3386  ;;  %v3337_v20 = vpop.permute.xlu1 %3336 }
 0x2b6   : > { %3865 = vst [vmem:[%s6830_s20 + $0xa8] sm:$0xff] %v3801_v48  ;;  %v3608_v25 = vmul.f32 %v3387_v31, %v6640_v14  ;;  %v3598_v44 = vmul.f32 %v3337_v20, %v7478_v30  ;;  %v3332_v39 = vpop.permute.xlu0 %3331 }
 0x2b7   : > { %3855 = vst [vmem:[%s6830_s20 + $0x58] sm:$0xff] %v3791_v63  ;;  %v3597_v56 = vmul.f32 %v3332_v39, %v7479_v21  ;;  %v7480_v21 = vld [vmem:[#allocation68_spill] sm:$0xff] }
 0x2b8   : > { %3854 = vst [vmem:[%s6830_s20 + $0x50] sm:$0xff] %v3790_v2  ;;  %v3672_v28 = vadd.f32 %v3608_v25, %v6620_v40  ;;  %v3662_v4 = vadd.f32 %v3598_v44, %v6561_v19  ;;  %v6999_v40 = vpop.f32.mrf.mxu0  ;;  %v7001_v25 = vpop.f32.mrf.mxu1 }
 0x2b9   : > { %v3661_v14 = vadd.f32 %v3597_v56, %v6464_v5 }
 0x2ba   : > { %v3740_v38 = vadd.f32 %v6805_v62, %v3672_v28  ;;  %v3730_v48 = vadd.f32 %v6805_v62, %v3662_v4  ;;  %v7481_v28 = vld [vmem:[#allocation25_spill] sm:$0xff] }
 0x2bb   : > { %v3729_v63 = vadd.f32 %v6805_v62, %v3661_v14  ;;  %3566 = vperm.xlu2 %5263, %v4914_v45   ;;  %3561 = vperm.xlu1 %5262, %v4913_v33   ;;  %v7482_v45 = vld [vmem:[#allocation13_spill] sm:$0xff]  ;;  %v4917_v14 = vld [vmem:[%s5872_s29 + $0x5f8] sm:$0xff] }
 0x2bc   : > { %v3804_v19 = vmax.f32 %v3740_v38, 0.0  ;;  %v3794_v2 = vmax.f32 %v3730_v48, 0.0  ;;  %3556 = vperm.xlu0 %5261, %v4912_v37   ;;  %v4916_v37 = vld [vmem:[%s5872_s29 + $0x5f0] sm:$0xff]  ;;  %v7013_v38 = vpop.f32.mrf.mxu3 }
 0x2bd   : > { %v3793_v31 = vmax.f32 %v3729_v63, 0.0  ;;  %v3402_v5 = vpop.permute.xlu2 %3401  ;;  %v3352_v20 = vpop.permute.xlu1 %3351  ;;  %v7483_v48 = vld [vmem:[#allocation69_spill] sm:$0xff] }
 0x2be   : > { %3868 = vst [vmem:[%s6830_s20 + $0xc0] sm:$0xff] %v3804_v19  ;;  %v3611_v30 = vmul.f32 %v3402_v5, %v6693_v17  ;;  %v3601_v44 = vmul.f32 %v3352_v20, %v6501_v55  ;;  %v3347_v39 = vpop.permute.xlu0 %3346  ;;  %v4915_v19 = vld [vmem:[%s5872_s29 + $0x5e8] sm:$0xff] }
 0x2bf   : > { %3858 = vst [vmem:[%s6830_s20 + $0x70] sm:$0xff] %v3794_v2  ;;  %v3600_v56 = vmul.f32 %v3347_v39, %v7480_v21  ;;  %v7019_v2 = vpop.f32.mrf.mxu2 }
 0x2c0   : > { %3857 = vst [vmem:[%s6830_s20 + $0x68] sm:$0xff] %v3793_v31  ;;  %v3675_v4 = vadd.f32 %v3611_v30, %v7481_v28  ;;  %v3665_v33 = vadd.f32 %v3601_v44, %v7482_v45  ;;  %v7485_v45 = vld [vmem:[#allocation71_spill] sm:$0xff] }
 0x2c1   : > { %v3664_v63 = vadd.f32 %v3600_v56, %v7483_v48  ;;  %v7484_v56 = vld [vmem:[#allocation72_spill] sm:$0xff]  ;;  %v7027_v48 = vpop.f32.mrf.mxu0 }
 0x2c2   : > { %v3743_v17 = vadd.f32 %v6805_v62, %v3675_v4  ;;  %v3733_v55 = vadd.f32 %v6805_v62, %v3665_v33 }
 0x2c3   : > { %v3732_v31 = vadd.f32 %v6805_v62, %v3664_v63  ;;  %3581 = vperm.xlu2 %5263, %v4917_v14   ;;  %3576 = vperm.xlu1 %5262, %v4916_v37   ;;  %v7029_v14 = vpop.f32.mrf.mxu1  ;;  %v7486_v63 = vld [vmem:[#allocation17_spill] sm:$0xff] }
 0x2c4   : > { %v3807_v5 = vmax.f32 %v3743_v17, 0.0  ;;  %v3797_v20 = vmax.f32 %v3733_v55, 0.0  ;;  %3571 = vperm.xlu0 %5261, %v4915_v19   ;;  %v7487_v17 = vld [vmem:[#allocation70_spill] sm:$0xff] }
 0x2c5   : > { %v3796_v30 = vmax.f32 %v3732_v31, 0.0  ;;  %v3417_v44 = vpop.permute.xlu2 %3416  ;;  %v3367_v39 = vpop.permute.xlu1 %3366 }
 0x2c6   : > { %3871 = vst [vmem:[%s6830_s20 + $0xd8] sm:$0xff] %v3807_v5  ;;  %v3614_v21 = vmul.f32 %v3417_v44, %v6755_v32  ;;  %v3604_v28 = vmul.f32 %v3367_v39, %v7484_v56  ;;  %v3362_v4 = vpop.permute.xlu0 %3361  ;;  %v7488_v32 = vld [vmem:[#allocation33_spill] sm:$0xff]  ;;  %v7489_v5 = vld [vmem:[#allocation76_spill] sm:$0xff] }
 0x2c7   : > { %3861 = vst [vmem:[%s6830_s20 + $0x88] sm:$0xff] %v3797_v20  ;;  %v3603_v33 = vmul.f32 %v3362_v4, %v7485_v45  ;;  %v1673_v31 = vmul.f32 %v7488_v32, %v6775_v60  ;;  %v2613_v20 = vmul.f32 %v7489_v5, %v6782_v43 }
 0x2c8   : > { %3860 = vst [vmem:[%s6830_s20 + $0x80] sm:$0xff] %v3796_v30  ;;  %v3678_v37 = vadd.f32 %v3614_v21, %v6731_v54  ;;  %v3668_v19 = vadd.f32 %v3604_v28, %v7486_v63  ;;  %v7041_v30 = vpop.f32.mrf.mxu3  ;;  %v7044_v28 = vpop.f32.mrf.mxu2  ;;  %v7491_v63 = vld [vmem:[#allocation9_spill] sm:$0xff] }
 0x2c9   : > { %v3667_v55 = vadd.f32 %v3603_v33, %v7487_v17  ;;  %7490 = vst [vmem:[#allocation46_spill] sm:$0xff] %v7041_v30  ;;  %v2677_v33 = vadd.f32 %v2613_v20, %v1673_v31  ;;  %v7496_v31 = vld [vmem:[#allocation79_spill] sm:$0xff] }
 0x2ca   : > { %v3746_v44 = vadd.f32 %v6805_v62, %v3678_v37  ;;  %v3736_v39 = vadd.f32 %v6805_v62, %v3668_v19  ;;  %v7492_v19 = vld [vmem:[#allocation8_spill] sm:$0xff]  ;;  %v2616_v20 = vmul.f32 %v7496_v31, %v6856_v11 }
 0x2cb   : > { %v3735_v54 = vadd.f32 %v6805_v62, %v3667_v55  ;;  %v7493_v55 = vld [vmem:[#allocation21_spill] sm:$0xff] }
 0x2cc   : > { %v3810_v21 = vmax.f32 %v3746_v44, 0.0  ;;  %v3800_v56 = vmax.f32 %v3736_v39, 0.0  ;;  %v7494_v39 = vld [vmem:[#allocation7_spill] sm:$0xff] }
 0x2cd   : > { %v3799_v4 = vmax.f32 %v3735_v54, 0.0  ;;  %v3432_v45 = vpop.permute.xlu2 %3431  ;;  %v3382_v60 = vpop.permute.xlu1 %3381  ;;  %v7495_v54 = vld [vmem:[#allocation37_spill] sm:$0xff] }
 0x2ce   : > { %3874 = vst [vmem:[%s6830_s20 + $0xf0] sm:$0xff] %v3810_v21  ;;  %v3617_v43 = vmul.f32 %v3432_v45, %v6825_v50  ;;  %v3607_v37 = vmul.f32 %v3382_v60, %v7491_v63  ;;  %v3377_v17 = vpop.permute.xlu0 %3376  ;;  %v1676_v49 = vmul.f32 %v7495_v54, %v6849_v51  ;;  %v7058_v50 = vpop.f32.mrf.mxu0  ;;  %v7499_v54 = vld [vmem:[#allocation10_spill] sm:$0xff] }
 0x2cf   : > { %3864 = vst [vmem:[%s6830_s20 + $0xa0] sm:$0xff] %v3800_v56  ;;  %v3606_v32 = vmul.f32 %v3377_v17, %v7492_v19  ;;  %v7060_v21 = vpop.f32.mrf.mxu1  ;;  %v7497_v19 = vld [vmem:[#allocation77_spill] sm:$0xff] }
 0x2d0   : > { %3863 = vst [vmem:[%s6830_s20 + $0x98] sm:$0xff] %v3799_v4  ;;  %v3681_v5 = vadd.f32 %v3617_v43, %v2677_v33  ;;  %v3671_v44 = vadd.f32 %v3607_v37, %v7493_v55  ;;  %v7065_v43 = vpop.f32.mrf.mxu3  ;;  %v2680_v11 = vadd.f32 %v2616_v20, %v1676_v49  ;;  %v7501_v49 = vld [vmem:[#allocation41_spill] sm:$0xff] }
 0x2d1   : > { %v3670_v30 = vadd.f32 %v3606_v32, %v7494_v39  ;;  %v7072_v39 = vpop.f32.mrf.mxu2  ;;  %v1679_v20 = vmul.f32 %v7501_v49, %v6944_v41  ;;  %v7504_v49 = vld [vmem:[#allocation24_spill] sm:$0xff] }
 0x2d2   : > { %v3749_v56 = vadd.f32 %v6805_v62, %v3681_v5  ;;  %v3739_v4 = vadd.f32 %v6805_v62, %v3671_v44  ;;  %v7498_v5 = vld [vmem:[#allocation74_spill] sm:$0xff] }
 0x2d3   : > { %v3738_v45 = vadd.f32 %v6805_v62, %v3670_v30 }
 0x2d4   : > { %v3813_v60 = vmax.f32 %v3749_v56, 0.0  ;;  %v3803_v33 = vmax.f32 %v3739_v4, 0.0  ;;  %v7500_v56 = vld [vmem:[#allocation20_spill] sm:$0xff] }
 0x2d5   : > { %v3802_v51 = vmax.f32 %v3738_v45, 0.0  ;;  %v3447_v63 = vpop.permute.xlu2 %3446  ;;  %v3397_v37 = vpop.permute.xlu1 %3396 }
 0x2d6   : > { %3877 = vst [vmem:[%s6830_s20 + $0x108] sm:$0xff] %v3813_v60  ;;  %v3620_v17 = vmul.f32 %v3447_v63, %v6896_v1  ;;  %v3610_v32 = vmul.f32 %v3397_v37, %v7497_v19  ;;  %v3392_v55 = vpop.permute.xlu0 %3391  ;;  %v7502_v1 = vld [vmem:[#allocation80_spill] sm:$0xff] }
 0x2d7   : > { %3867 = vst [vmem:[%s6830_s20 + $0xb8] sm:$0xff] %v3803_v33  ;;  %v3609_v44 = vmul.f32 %v3392_v55, %v7498_v5  ;;  %v2619_v45 = vmul.f32 %v7502_v1, %v6952_v18  ;;  %v7086_v37 = vpop.f32.mrf.mxu1 }
 0x2d8   : > { %3866 = vst [vmem:[%s6830_s20 + $0xb0] sm:$0xff] %v3802_v51  ;;  %v3684_v30 = vadd.f32 %v3620_v17, %v2680_v11  ;;  %v3674_v31 = vadd.f32 %v3610_v32, %v7499_v54  ;;  %v7084_v51 = vpop.f32.mrf.mxu0 }
 0x2d9   : > { %v3673_v4 = vadd.f32 %v3609_v44, %v7500_v56  ;;  %v2683_v55 = vadd.f32 %v2619_v45, %v1679_v20  ;;  %v7503_v56 = vld [vmem:[#allocation53_spill] sm:$0xff] }
 0x2da   : > { %v3752_v60 = vadd.f32 %v6805_v62, %v3684_v30  ;;  %v3742_v33 = vadd.f32 %v6805_v62, %v3674_v31  ;;  %v7091_v30 = vpop.f32.mrf.mxu3  ;;  %v7505_v20 = vld [vmem:[#allocation45_spill] sm:$0xff] }
 0x2db   : > { %v3741_v63 = vadd.f32 %v6805_v62, %v3673_v4 }
 0x2dc   : > { %v3816_v11 = vmax.f32 %v3752_v60, 0.0  ;;  %v3806_v17 = vmax.f32 %v3742_v33, 0.0  ;;  %v7098_v60 = vpop.f32.mrf.mxu2 }
 0x2dd   : > { %v3805_v19 = vmax.f32 %v3741_v63, 0.0  ;;  %v3462_v32 = vpop.permute.xlu2 %3461  ;;  %v3412_v41 = vpop.permute.xlu1 %3411 }
 0x2de   : > { %3880 = vst [vmem:[%s6830_s20 + $0x120] sm:$0xff] %v3816_v11  ;;  %v3623_v18 = vmul.f32 %v3462_v32, %v6962_v8  ;;  %v3613_v5 = vmul.f32 %v3412_v41, %v6734_v57  ;;  %v3407_v44 = vpop.permute.xlu0 %3406  ;;  %v1682_v8 = vmul.f32 %v7505_v20, %v7027_v48  ;;  %v7506_v57 = vld [vmem:[#allocation81_spill] sm:$0xff]  ;;  %v7508_v20 = vld [vmem:[#allocation50_spill] sm:$0xff] }
 0x2df   : > { %3870 = vst [vmem:[%s6830_s20 + $0xd0] sm:$0xff] %v3806_v17  ;;  %v3612_v54 = vmul.f32 %v3407_v44, %v6715_v42  ;;  %v2622_v45 = vmul.f32 %v7506_v57, %v7029_v14  ;;  %v2147_v44 = vpop.f32.mrf.mxu1 }
 0x2e0   : > { %3869 = vst [vmem:[%s6830_s20 + $0xc8] sm:$0xff] %v3805_v19  ;;  %v3687_v31 = vadd.f32 %v3623_v18, %v2683_v55  ;;  %v3677_v4 = vadd.f32 %v3613_v5, %v7503_v56  ;;  %v1208_v5 = vpop.f32.mrf.mxu0 }
 0x2e1   : > { %v3676_v1 = vadd.f32 %v3612_v54, %v7504_v49  ;;  %v2686_v55 = vadd.f32 %v2622_v45, %v1682_v8  ;;  %v7507_v49 = vld [vmem:[#allocation84_spill] sm:$0xff]  ;;  %v1685_v8 = vmul.f32 %v7508_v20, %v1208_v5 }
 0x2e2   : > { %v3755_v33 = vadd.f32 %v6805_v62, %v3687_v31  ;;  %v3745_v42 = vadd.f32 %v6805_v62, %v3677_v4  ;;  %v7114_v4 = vpop.f32.mrf.mxu3 }
 0x2e3   : > { %v3744_v63 = vadd.f32 %v6805_v62, %v3676_v1 }
 0x2e4   : > { %v3819_v11 = vmax.f32 %v3755_v33, 0.0  ;;  %v3809_v17 = vmax.f32 %v3745_v42, 0.0  ;;  %v3151_v33 = vpop.f32.mrf.mxu2 }
 0x2e5   : > { %v3808_v19 = vmax.f32 %v3744_v63, 0.0  ;;  %v3477_v32 = vpop.permute.xlu2 %3476  ;;  %v3427_v41 = vpop.permute.xlu1 %3426 }
 0x2e6   : > { %3883 = vst [vmem:[%s6830_s20 + $0x138] sm:$0xff] %v3819_v11  ;;  %v3626_v48 = vmul.f32 %v3477_v32, %v7044_v28  ;;  %v3616_v18 = vmul.f32 %v3427_v41, %v6799_v23  ;;  %v3422_v14 = vpop.permute.xlu0 %3421  ;;  %v7509_v28 = vld [vmem:[#allocation82_spill] sm:$0xff] }
 0x2e7   : > { %3873 = vst [vmem:[%s6830_s20 + $0xe8] sm:$0xff] %v3809_v17  ;;  %v3615_v54 = vmul.f32 %v3422_v14, %v6777_v27  ;;  %v2625_v23 = vmul.f32 %v7509_v28, %v2147_v44  ;;  %v7510_v44 = vld [vmem:[#allocation23_spill] sm:$0xff] }
 0x2e8   : > { %3872 = vst [vmem:[%s6830_s20 + $0xe0] sm:$0xff] %v3808_v19  ;;  %v3690_v31 = vadd.f32 %v3626_v48, %v2686_v55  ;;  %v3680_v56 = vadd.f32 %v3616_v18, %v6772_v16 }
 0x2e9   : > { %v3679_v1 = vadd.f32 %v3615_v54, %v7507_v49  ;;  %v2689_v19 = vadd.f32 %v2625_v23, %v1685_v8  ;;  %v1678_v54 = vmul.f32 %v7510_v44, %v6916_v26 }
 0x2ea   : > { %v3758_v57 = vadd.f32 %v6805_v62, %v3690_v31  ;;  %v3748_v45 = vadd.f32 %v6805_v62, %v3680_v56  ;;  %v7511_v31 = vld [vmem:[#allocation12_spill] sm:$0xff] }
 0x2eb   : > { %v3747_v27 = vadd.f32 %v6805_v62, %v3679_v1  ;;  %v2618_v56 = vmul.f32 %v7511_v31, %v6923_v35 }
 0x2ec   : > { %v3822_v42 = vmax.f32 %v3758_v57, 0.0  ;;  %v3812_v63 = vmax.f32 %v3748_v45, 0.0 }
 0x2ed   : > { %v3811_v16 = vmax.f32 %v3747_v27, 0.0  ;;  %v3492_v11 = vpop.permute.xlu2 %3491  ;;  %v3442_v17 = vpop.permute.xlu1 %3441  ;;  %v2682_v23 = vadd.f32 %v2618_v56, %v1678_v54 }
 0x2ee   : > { %3886 = vst [vmem:[%s6830_s20 + $0x150] sm:$0xff] %v3822_v42  ;;  %v3619_v32 = vmul.f32 %v3442_v17, %v6873_v36  ;;  %v3437_v41 = vpop.permute.xlu0 %3436  ;;  %v3629_v55 = vmul.f32 %v3492_v11, %v3151_v33  ;;  %v7513_v11 = vld [vmem:[#allocation29_spill] sm:$0xff] }
 0x2ef   : > { %3876 = vst [vmem:[%s6830_s20 + $0x100] sm:$0xff] %v3812_v63  ;;  %v3618_v48 = vmul.f32 %v3437_v41, %v6851_v59  ;;  %v7135_v59 = vpop.f32.mrf.mxu3  ;;  %v7512_v63 = vld [vmem:[#allocation27_spill] sm:$0xff]  ;;  %v2621_v17 = vmul.f32 %v7513_v11, %v7001_v25  ;;  %v1211_v41 = vpop.f32.mrf.mxu0 }
 0x2f0   : > { %3875 = vst [vmem:[%s6830_s20 + $0xf8] sm:$0xff] %v3811_v16  ;;  %v3683_v18 = vadd.f32 %v3619_v32, %v6845_v53  ;;  %v3693_v14 = vadd.f32 %v3629_v55, %v2689_v19  ;;  %v1681_v16 = vmul.f32 %v7512_v63, %v6999_v40  ;;  %v7514_v19 = vld [vmem:[#allocation39_spill] sm:$0xff]  ;;  %v7515_v32 = vld [vmem:[#allocation73_spill] sm:$0xff]  ;;  %v2150_v40 = vpop.f32.mrf.mxu1 }
 0x2f1   : > { %v3682_v5 = vadd.f32 %v3618_v48, %v6821_v3 }
 0x2f2   : > { %v3751_v36 = vadd.f32 %v6805_v62, %v3683_v18  ;;  %v3761_v49 = vadd.f32 %v6805_v62, %v3693_v14  ;;  %v2685_v44 = vadd.f32 %v2621_v17, %v1681_v16 }
 0x2f3   : > { %v3750_v1 = vadd.f32 %v6805_v62, %v3682_v5 }
 0x2f4   : > { %v3815_v53 = vmax.f32 %v3751_v36, 0.0  ;;  %v3825_v20 = vmax.f32 %v3761_v49, 0.0 }
 0x2f5   : > { %v3814_v8 = vmax.f32 %v3750_v1, 0.0  ;;  %v3507_v3 = vpop.permute.xlu2 %3506  ;;  %v3457_v28 = vpop.permute.xlu1 %3456 }
 0x2f6   : > { %3879 = vst [vmem:[%s6830_s20 + $0x118] sm:$0xff] %v3815_v53  ;;  %v3632_v26 = vmul.f32 %v3507_v3, %v6861_v61  ;;  %v3622_v35 = vmul.f32 %v3457_v28, %v6936_v29  ;;  %v3452_v57 = vpop.permute.xlu0 %3451  ;;  %v3154_v53 = vpop.f32.mrf.mxu2  ;;  %v7517_v3 = vld [vmem:[#allocation28_spill] sm:$0xff] }
 0x2f7   : > { %3878 = vst [vmem:[%s6830_s20 + $0x110] sm:$0xff] %v3814_v8  ;;  %v3621_v45 = vmul.f32 %v3452_v57, %v6913_v15  ;;  %v1680_v15 = vmul.f32 %v7514_v19, %v6973_v34  ;;  %v7157_v18 = vpop.f32.mrf.mxu3 }
 0x2f8   : > { %3889 = vst [vmem:[%s6830_s20 + $0x168] sm:$0xff] %v3825_v20  ;;  %v3696_v27 = vadd.f32 %v3632_v26, %v6768_v7  ;;  %v3686_v33 = vadd.f32 %v3622_v35, %v2682_v23  ;;  %v2620_v7 = vmul.f32 %v7515_v32, %v6978_v47  ;;  %v7516_v20 = vld [vmem:[#allocation31_spill] sm:$0xff]  ;;  %v2152_v17 = vpop.f32.mrf.mxu1 }
 0x2f9   : > { %v3685_v42 = vadd.f32 %v3621_v45, %v6892_v9  ;;  %v1684_v8 = vmul.f32 %v7516_v20, %v7084_v51  ;;  %v7518_v23 = vld [vmem:[#allocation43_spill] sm:$0xff] }
 0x2fa   : > { %v3764_v61 = vadd.f32 %v6805_v62, %v3696_v27  ;;  %v3754_v29 = vadd.f32 %v6805_v62, %v3686_v33  ;;  %v2684_v31 = vadd.f32 %v2620_v7, %v1680_v15  ;;  %v7519_v26 = vld [vmem:[#allocation75_spill] sm:$0xff] }
 0x2fb   : > { %v3753_v9 = vadd.f32 %v6805_v62, %v3685_v42  ;;  %v1213_v42 = vpop.f32.mrf.mxu0  ;;  %v7520_v32 = vld [vmem:[#allocation35_spill] sm:$0xff] }
 0x2fc   : > { %v3828_v55 = vmax.f32 %v3764_v61, 0.0  ;;  %v3818_v48 = vmax.f32 %v3754_v29, 0.0  ;;  %v1687_v7 = vmul.f32 %v7520_v32, %v1213_v42  ;;  %v7526_v32 = vld [vmem:[#allocation40_spill] sm:$0xff] }
 0x2fd   : > { %v3817_v25 = vmax.f32 %v3753_v9, 0.0  ;;  %v3522_v14 = vpop.permute.xlu2 %3521  ;;  %v3472_v5 = vpop.permute.xlu1 %3471  ;;  %v7521_v9 = vld [vmem:[#allocation16_spill] sm:$0xff] }
 0x2fe   : > { %3892 = vst [vmem:[%s6830_s20 + $0x180] sm:$0xff] %v3828_v55  ;;  %v3635_v34 = vmul.f32 %v3522_v14, %v6933_v6  ;;  %v3625_v54 = vmul.f32 %v3472_v5, %v7019_v2  ;;  %v3467_v47 = vpop.permute.xlu0 %3466  ;;  %v2624_v6 = vmul.f32 %v7517_v3, %v7086_v37 }
 0x2ff   : > { %3882 = vst [vmem:[%s6830_s20 + $0x130] sm:$0xff] %v3818_v48  ;;  %v3624_v56 = vmul.f32 %v3467_v47, %v6992_v24  ;;  %v1683_v24 = vmul.f32 %v7518_v23, %v7058_v50  ;;  %v7182_v61 = vpop.f32.mrf.mxu3  ;;  %v7522_v48 = vld [vmem:[#allocation48_spill] sm:$0xff] }
 0x300   : > { %3881 = vst [vmem:[%s6830_s20 + $0x128] sm:$0xff] %v3817_v25  ;;  %v3699_v36 = vadd.f32 %v3635_v34, %v6786_v58  ;;  %v3689_v49 = vadd.f32 %v3625_v54, %v2685_v44  ;;  %v2623_v58 = vmul.f32 %v7519_v26, %v7060_v21  ;;  %v2688_v37 = vadd.f32 %v2624_v6, %v1684_v8 }
 0x301   : > { %v3688_v1 = vadd.f32 %v3624_v56, %v2684_v31  ;;  %v1686_v25 = vmul.f32 %v7522_v48, %v1211_v41 }
 0x302   : > { %v3767_v2 = vadd.f32 %v6805_v62, %v3699_v36  ;;  %v3757_v28 = vadd.f32 %v6805_v62, %v3689_v49  ;;  %v2687_v11 = vadd.f32 %v2623_v58, %v1683_v24 }
 0x303   : > { %v3756_v35 = vadd.f32 %v6805_v62, %v3688_v1 }
 0x304   : > { %v3831_v57 = vmax.f32 %v3767_v2, 0.0  ;;  %v3821_v45 = vmax.f32 %v3757_v28, 0.0 }
 0x305   : > { %v3820_v51 = vmax.f32 %v3756_v35, 0.0  ;;  %v3537_v27 = vpop.permute.xlu2 %3536  ;;  %v3487_v33 = vpop.permute.xlu1 %3486 }
 0x306   : > { %3895 = vst [vmem:[%s6830_s20 + $0x198] sm:$0xff] %v3831_v57  ;;  %v3638_v63 = vmul.f32 %v3537_v27, %v7013_v38  ;;  %v3628_v16 = vmul.f32 %v3487_v33, %v7098_v60  ;;  %v3482_v50 = vpop.permute.xlu0 %3481  ;;  %v2627_v38 = vmul.f32 %v7521_v9, %v2152_v17  ;;  %v7524_v27 = vld [vmem:[#allocation58_spill] sm:$0xff]  ;;  %v7527_v9 = vld [vmem:[#allocation44_spill] sm:$0xff] }
 0x307   : > { %3885 = vst [vmem:[%s6830_s20 + $0x148] sm:$0xff] %v3821_v45  ;;  %v3627_v21 = vmul.f32 %v3482_v50, %v7072_v39  ;;  %v7523_v39 = vld [vmem:[#allocation78_spill] sm:$0xff]  ;;  %v7198_v6 = vpop.f32.mrf.mxu3 }
 0x308   : > { %3884 = vst [vmem:[%s6830_s20 + $0x140] sm:$0xff] %v3820_v51  ;;  %v3702_v29 = vadd.f32 %v3638_v63, %v6814_v52  ;;  %v3692_v19 = vadd.f32 %v3628_v16, %v2688_v37  ;;  %v2626_v14 = vmul.f32 %v7523_v39, %v2150_v40  ;;  %v3156_v52 = vpop.f32.mrf.mxu2  ;;  %v2691_v56 = vadd.f32 %v2627_v38, %v1687_v7  ;;  %v7525_v37 = vld [vmem:[#allocation14_spill] sm:$0xff] }
 0x309   : > { %v3691_v15 = vadd.f32 %v3627_v21, %v2687_v11 }
 0x30a   : > { %v3770_v60 = vadd.f32 %v6805_v62, %v3702_v29  ;;  %v3760_v55 = vadd.f32 %v6805_v62, %v3692_v19  ;;  %v2690_v20 = vadd.f32 %v2626_v14, %v1686_v25 }
 0x30b   : > { %v3759_v5 = vadd.f32 %v6805_v62, %v3691_v15 }
 0x30c   : > { %v3834_v44 = vmax.f32 %v3770_v60, 0.0  ;;  %v3824_v34 = vmax.f32 %v3760_v55, 0.0  ;;  %v7528_v60 = vld [vmem:[#allocation57_spill] sm:$0xff] }
 0x30d   : > { %v3823_v54 = vmax.f32 %v3759_v5, 0.0  ;;  %v3552_v47 = vpop.permute.xlu2 %3551  ;;  %v3502_v31 = vpop.permute.xlu1 %3501 }
 0x30e   : > { %3898 = vst [vmem:[%s6830_s20 + $0x1b0] sm:$0xff] %v3834_v44  ;;  %v3641_v36 = vmul.f32 %v3552_v47, %v7091_v30  ;;  %v3497_v49 = vpop.permute.xlu0 %3496  ;;  %v3631_v1 = vmul.f32 %v3502_v31, %v3156_v52  ;;  %v7530_v47 = vld [vmem:[#allocation32_spill] sm:$0xff] }
 0x30f   : > { %3888 = vst [vmem:[%s6830_s20 + $0x160] sm:$0xff] %v3824_v34  ;;  %v3630_v41 = vmul.f32 %v3497_v49, %v3154_v53  ;;  %v3196_v50 = vpop.f32.mrf.mxu3  ;;  %v7529_v34 = vld [vmem:[#allocation46_spill] sm:$0xff] }
 0x310   : > { %3887 = vst [vmem:[%s6830_s20 + $0x158] sm:$0xff] %v3823_v54  ;;  %v3705_v40 = vadd.f32 %v3641_v36, %v6838_v46  ;;  %v3695_v8 = vadd.f32 %v3631_v1, %v2691_v56  ;;  %v7531_v56 = vld [vmem:[#allocation83_spill] sm:$0xff] }
 0x311   : > { %v3694_v3 = vadd.f32 %v3630_v41, %v2690_v20 }
 0x312   : > { %v3773_v2 = vadd.f32 %v6805_v62, %v3705_v40  ;;  %v3763_v28 = vadd.f32 %v6805_v62, %v3695_v8 }
 0x313   : > { %v3762_v30 = vadd.f32 %v6805_v62, %v3694_v3 }
 0x314   : > { %v3837_v23 = vmax.f32 %v3773_v2, 0.0  ;;  %v3827_v24 = vmax.f32 %v3763_v28, 0.0  ;;  %v7532_v2 = vld [vmem:[#allocation15_spill] sm:$0xff] }
 0x315   : > { %v3826_v26 = vmax.f32 %v3762_v30, 0.0  ;;  %v3567_v58 = vpop.permute.xlu2 %3566  ;;  %v3517_v53 = vpop.permute.xlu1 %3516  ;;  %v7533_v30 = vld [vmem:[#allocation11_spill] sm:$0xff] }
 0x316   : > { %3901 = vst [vmem:[%s6830_s20 + $0x1c8] sm:$0xff] %v3837_v23  ;;  %v3644_v46 = vmul.f32 %v3567_v58, %v7157_v18  ;;  %v3634_v35 = vmul.f32 %v3517_v53, %v6906_v0  ;;  %v3512_v57 = vpop.permute.xlu0 %3511  ;;  %v5265_v0 = vld [vmem:[%s7311_s3] ss:$0 sm:$0xff] }
 0x317   : > { %3890 = vst [vmem:[%s6830_s20 + $0x170] sm:$0xff] %v3826_v26  ;;  %v3633_v45 = vmul.f32 %v3512_v57, %v6882_v10 }
 0x318   : > { %3891 = vst [vmem:[%s6830_s20 + $0x178] sm:$0xff] %v3827_v24  ;;  %v3708_v51 = vadd.f32 %v3644_v46, %v6865_v12  ;;  %v3698_v33 = vadd.f32 %v3634_v35, %v7524_v27 }
 0x319   : > { %v3697_v42 = vadd.f32 %v3633_v45, %v7525_v37 }
 0x31a   : > { %v3776_v63 = vadd.f32 %v6805_v62, %v3708_v51  ;;  %v3766_v18 = vadd.f32 %v5265_v0, %v3698_v33  ;;  %v7535_v51 = vld [vmem:[#allocation54_spill] sm:$0xff] }
 0x31b   : > { %v3765_v16 = vadd.f32 %v5265_v0, %v3697_v42 }
 0x31c   : > { %v3840_v11 = vmax.f32 %v3776_v63, 0.0  ;;  %v3830_v10 = vmax.f32 %v3766_v18, 0.0 }
 0x31d   : > { %v3829_v17 = vmax.f32 %v3765_v16, 0.0  ;;  %v3582_v21 = vpop.permute.xlu2 %3581  ;;  %v3532_v12 = vpop.permute.xlu1 %3531 }
 0x31e   : > { %3904 = vst [vmem:[%s6830_s20 + $0x1e0] sm:$0xff] %v3840_v11  ;;  %v3637_v29 = vmul.f32 %v3532_v12, %v6983_v22  ;;  %v3527_v19 = vpop.permute.xlu0 %3526  ;;  %v3647_v15 = vmul.f32 %v3582_v21, %v3196_v50 }
 0x31f   : > { %3894 = vst [vmem:[%s6830_s20 + $0x190] sm:$0xff] %v3830_v10  ;;  %v3636_v62 = vmul.f32 %v3527_v19, %v6957_v13 }
 0x320   : > { %3893 = vst [vmem:[%s6830_s20 + $0x188] sm:$0xff] %v3829_v17  ;;  %v3701_v7 = vadd.f32 %v3637_v29, %v7526_v32  ;;  %v3711_v38 = vadd.f32 %v3647_v15, %v7527_v9 }
 0x321   : > { %v3700_v55 = vadd.f32 %v3636_v62, %v7528_v60 }
 0x322   : > { %v3769_v48 = vadd.f32 %v5265_v0, %v3701_v7  ;;  %v3779_v25 = vadd.f32 %v5265_v0, %v3711_v38 }
 0x323   : > { %v3768_v39 = vadd.f32 %v5265_v0, %v3700_v55 }
 0x324   : > { %v3833_v14 = vmax.f32 %v3769_v48, 0.0  ;;  %v3843_v22 = vmax.f32 %v3779_v25, 0.0 }
 0x325   : > { %v3832_v5 = vmax.f32 %v3768_v39, 0.0  ;;  %v3547_v52 = vpop.permute.xlu1 %3546 }
 0x326   : > { %3897 = vst [vmem:[%s6830_s20 + $0x1a8] sm:$0xff] %v3833_v14  ;;  %v3640_v13 = vmul.f32 %v3547_v52, %v7065_v43  ;;  %v3542_v44 = vpop.permute.xlu0 %3541 }
 0x327   : > { %3896 = vst [vmem:[%s6830_s20 + $0x1a0] sm:$0xff] %v3832_v5  ;;  %v3639_v54 = vmul.f32 %v3542_v44, %v7529_v34 }
 0x328   : > { %3907 = vst [vmem:[%s6830_s20 + $0x1f8] sm:$0xff] %v3843_v22  ;;  %v3704_v31 = vadd.f32 %v3640_v13, %v7530_v47 }
 0x329   : > { %v3703_v36 = vadd.f32 %v3639_v54, %v7531_v56 }
 0x32a   : > { %v3772_v49 = vadd.f32 %v5265_v0, %v3704_v31 }
 0x32b   : > { %v3771_v1 = vadd.f32 %v5265_v0, %v3703_v36 }
 0x32c   : > { %v3836_v20 = vmax.f32 %v3772_v49, 0.0 }
 0x32d   : > { %v3835_v41 = vmax.f32 %v3771_v1, 0.0  ;;  %v3562_v40 = vpop.permute.xlu1 %3561 }
 0x32e   : > { %3900 = vst [vmem:[%s6830_s20 + $0x1c0] sm:$0xff] %v3836_v20  ;;  %v3643_v8 = vmul.f32 %v3562_v40, %v7135_v59  ;;  %v3557_v43 = vpop.permute.xlu0 %3556 }
 0x32f   : > { %3899 = vst [vmem:[%s6830_s20 + $0x1b8] sm:$0xff] %v3835_v41  ;;  %v3642_v3 = vmul.f32 %v3557_v43, %v7114_v4  ;;  %v7534_v4 = vld [vmem:[#allocation19_spill] sm:$0xff] }
 0x330   : > { %v3707_v28 = vadd.f32 %v3643_v8, %v7532_v2 }
 0x331   : > { %v3706_v23 = vadd.f32 %v3642_v3, %v7533_v30 }
 0x332   : > { %v3775_v24 = vadd.f32 %v5265_v0, %v3707_v28 }
 0x333   : > { %v3774_v26 = vadd.f32 %v5265_v0, %v3706_v23 }
 0x334   : > { %v3839_v58 = vmax.f32 %v3775_v24, 0.0 }
 0x335   : > { %v3838_v53 = vmax.f32 %v3774_v26, 0.0  ;;  %v3577_v46 = vpop.permute.xlu1 %3576 }
 0x336   : > { %3903 = vst [vmem:[%s6830_s20 + $0x1d8] sm:$0xff] %v3839_v58  ;;  %v3646_v35 = vmul.f32 %v3577_v46, %v7198_v6  ;;  %v3572_v59 = vpop.permute.xlu0 %3571 }
 0x337   : > { %3902 = vst [vmem:[%s6830_s20 + $0x1d0] sm:$0xff] %v3838_v53  ;;  %v3645_v57 = vmul.f32 %v3572_v59, %v7182_v61 }
 0x338   : > { %v3710_v45 = vadd.f32 %v3646_v35, %v7534_v4 }
 0x339   : > { %v3709_v27 = vadd.f32 %v3645_v57, %v7535_v51 }
 0x33a   : > { %v3778_v33 = vadd.f32 %v5265_v0, %v3710_v45 }
 0x33b   : > { %v3777_v37 = vadd.f32 %v5265_v0, %v3709_v27  ;;  %3915 = sbr.rel (!%p5541_p6) target bundleno = 863 (0x35f), region = 154 }
 0x33c   : > { %v3842_v42 = vmax.f32 %v3778_v33, 0.0 }
 0x33d   : > { %v3841_v63 = vmax.f32 %v3777_v37, 0.0 }
 0x33e   : > { %3906 = vst [vmem:[%s6830_s20 + $0x1f0] sm:$0xff] %v3842_v42 }
 0x33f   : > { %3905 = vst [vmem:[%s6830_s20 + $0x1e8] sm:$0xff] %v3841_v63 }
 0x340   : > { %s7554_s30 = smov (!%p3918_p4, %s3917_s30), 64 }
 0x341   : > { %s4920_s14 = sshll.u32 %s7554_s30, 3 }
 0x342   : > { %s3921_s25 = ssub.s32 512, %s4920_s14 }
 0x343   : > { %s3922_s10 = sshll.u32 %s3921_s25, 4 }
 0x344   : > { %3923 = vsyncadd %s3909_s23, %s3922_s10  ;;  %p7254_p5 = scmp.ne.s32.totalorder %s4920_s14, 0  ;;  %s5049_s9 = sshll.u32 %s5519_s19, 9 }
 0x345   : > { %s3926_s6 = scalar_lea.hbm %s7312_s4, %s5049_s9  ;;  %s3928_s7 = sshll.u32 %s6830_s20, 4  ;;  %s7263_s7 = int_to_ptr.vmem [resolvable:$true] %s3928_s7 }
 0x346   : > { %s3930_s13 = sshll.u32 %s3926_s6, 4  ;;  %s4924_s8 = sshll.u32 %s7554_s30, 7  ;;  %s7265_s13 = int_to_ptr.hbm [resolvable:$true] %s3930_s13 }
 0x347   : > { %s5266_s29 = sshra.s32 %s7263_s7, 4  ;;  %s5268_s22 = sshrl.u32 %s4924_s8, 4  ;;  %s5267_s29 = int_to_ptr.vmem [resolvable:$true] %s5266_s29 }
 0x348   : > { %s5273_s5 = scalar_lea.vmem %s5267_s29, %s5268_s22  ;;  %s5470_s19 = smov [#allocation4]  }
 0x349   : > { %p5274_p6 = scmp.ne.s32.totalorder %s5267_s29, %s5273_s5  ;;  %s5277_s14 = scalar_lea.vmem %s5470_s19, 1024 }
 0x34a   : > { %p5279_p11 = scmp.lt.s32.totalorder %s5277_s14, %s5273_s5 }
 0x34b   : > { %p5275_p7 = pnand %p5274_p6, %p7254_p5 }
 0x34d   : > { %p5276_p10 = pneg %p5275_p7 }
 0x34f   : > { %p5281_p12 = pnand %p5279_p11, %p5276_p10 }
 0x351   : > { %5284 = shalt.err (!%p5281_p12)
}
 0x352   : > { %s5285_s20 = sshra.s32 %s7265_s13, 4  ;;  %s5296_s11 = scalar_lea.hbm %s7312_s4, 704  ;;  %s5286_s20 = int_to_ptr.hbm [resolvable:$true] %s5285_s20 }
 0x353   : > { %s5292_s25 = scalar_lea.hbm %s5286_s20, %s5268_s22  ;;  %p5297_p2 = scmp.lt.s32.totalorder %s5286_s20, %s7312_s4 }
 0x354   : > { %p5293_p13 = scmp.ne.s32.totalorder %s5286_s20, %s5292_s25  ;;  %p5298_p3 = scmp.lt.s32.totalorder %s5296_s11, %s5292_s25 }
 0x356   : > { %p5294_p0 = pnand %p5293_p13, %p7254_p5  ;;  %p5299_p4 = por %p5298_p3, %p5297_p2 }
 0x358   : > { %p5295_p1 = pneg %p5294_p0 }
 0x35a   : > { %p5300_p6 = pnand %p5299_p4, %p5295_p1 }
 0x35c   : > { %5303 = shalt.err (!%p5300_p6)
}
 0x35d   : > { %s5471_s29 = smov 128   ;;  %s5472_s22 = smov 8  }
 0x35e   : > { %3936 = dma.vmem_to_hbm [thread:$0]  (%p7254_p5), %s7263_s7, %s4924_s8, %s7265_s13, %s3909_s23, %s5471_s29, %s5471_s29, %s5472_s22  }
 0x35f PF: > { %s3945_s5 = sand.u32 1, %s5391_s15   ;;  %p5080_p7 = pnand %p4127_p9, %p5545_p8 }
 0x360   : > { %s3946_s19 = scalar_lea.sflag [#allocation5], %s3945_s5 }
 0x361   : > { %p5081_p10 = pneg %p5080_p7 }
 0x363   : > { %5386 = dma.done.wait (%p5081_p10), %s3946_s19, 8192  }
 0x364   : > { %5388 = vsyncadd (%p5081_p10), %s3946_s19, 4294959104  ;;  %p14_p11 = scmp.ge.s32.totalorder %s5523_s21, 4   ;;  %s7537_s15 = smov %s5395_s16 }
 0x365   : > { %s7538_s16 = smov %s5399_s17  ;;  %s7539_s17 = smov %s5535_s24 }
 0x366   : > { %s7540_s18 = smov %s5523_s21  ;;  %16 = sbr.rel (!%p14_p11) target bundleno = 3 (0x3), region = 270 }
 0x36b   :  { %3952 = vsyncpa [#allocation5], 1 }
 0x36c   :  { %3954 = vsyncpa [#allocation5 + $0x1], 1 }

</bundles_post_ra>
